<compile_context>
chip_gen: v6e
topology: v6e:2x2x1
jax: 0.10.0
libtpu: 0.0.40
codegen_flags: <defaults>
</compile_context>

<pallas_src>
from functools import partial

import numpy as np
import jax
import jax.numpy as jnp
from jax import lax
from jax.experimental import pallas as pl
from jax.experimental.pallas import tpu as pltpu


def _round_up(x, m):
    return ((x + m - 1) // m) * m


VMEM_BUDGET = 48 * 1024 * 1024   # fits inside v7x 64 MiB, v5e/v6e 128 MiB


# ----------------------------- Kernel 1: AttentionSum -----------------------
def attn_sum_kernel(pic_ref, txt_ref, wpf_ref, bpf_ref, wtf_ref, btf_ref,
                    wrow_ref, out_ref):
    out_x = jnp.dot(pic_ref[...], wpf_ref[...],
                    preferred_element_type=jnp.float32) + bpf_ref[...]
    out_y = jnp.dot(txt_ref[...], wtf_ref[...],
                    preferred_element_type=jnp.float32) + btf_ref[...]
    w = wrow_ref[...]                                             # [1, D]
    # w-projection as VPU multiply + lane reduce (no N=1 MXU pass).
    a = jnp.maximum(jnp.sum(out_x * w, axis=1, keepdims=True), 0.0)   # [TI,1]
    b = jnp.maximum(jnp.sum(out_y * w, axis=1, keepdims=True), 0.0)   # [TI,1]
    # softmax over 2 columns == sigmoid(a - b); stable, exp+recip on the EUP.
    wa = pl.reciprocal(1.0 + jnp.exp(b - a), approx=True)
    out_ref[...] = wa * out_x + (1.0 - wa) * out_y


def attention_sum(picture, text, W_pf, b_pf, W_tf, b_tf, w_vec, *,
                  tile_items=512):
    NI, PIC_D = picture.shape
    TXT_D = text.shape[1]
    D = W_pf.shape[1]

    ti = min(tile_items, _round_up(NI, 8))
    NI_pad = _round_up(NI, ti)
    if NI_pad != NI:
        picture = jnp.pad(picture, ((0, NI_pad - NI), (0, 0)))
        text = jnp.pad(text, ((0, NI_pad - NI), (0, 0)))
    w_row = w_vec.reshape(1, D)

    out = pl.pallas_call(
        attn_sum_kernel,
        out_shape=jax.ShapeDtypeStruct((NI_pad, D), jnp.float32),
        grid=(NI_pad // ti,),
        in_specs=[
            pl.BlockSpec((ti, PIC_D), lambda i: (i, 0)),
            pl.BlockSpec((ti, TXT_D), lambda i: (i, 0)),
            pl.BlockSpec((PIC_D, D), lambda i: (0, 0)),
            pl.BlockSpec((1, D), lambda i: (0, 0)),
            pl.BlockSpec((TXT_D, D), lambda i: (0, 0)),
            pl.BlockSpec((1, D), lambda i: (0, 0)),
            pl.BlockSpec((1, D), lambda i: (0, 0)),
        ],
        out_specs=pl.BlockSpec((ti, D), lambda i: (i, 0)),
        compiler_params=pltpu.CompilerParams(
            dimension_semantics=("parallel",),
            vmem_limit_bytes=VMEM_BUDGET),
    )(picture, text, W_pf, b_pf, W_tf, b_tf, w_row)
    return out[:NI]


# ----------------------------- Kernel 2: GraphConv hop ----------------------
def gcn_hop_kernel(neigh_ref, head_ref, res_ref, emb_out_ref, res_out_ref,
                   ssum_ref, cnt_ref):
    e_idx = pl.program_id(1)
    tn = res_ref.shape[0]              # entity tile rows
    te = neigh_ref.shape[0]            # edge chunk size

    @pl.when(e_idx == 0)
    def _():
        ssum_ref[...] = jnp.zeros_like(ssum_ref)
        cnt_ref[...] = jnp.zeros_like(cnt_ref)

    row0 = pl.program_id(0) * tn
    rows = row0 + lax.broadcasted_iota(jnp.int32, (tn, te), 0)     # [TN, TE]
    heads = head_ref[...]                                          # [1,  TE]
    mask = rows == heads                                           # one-hot
    # bf16 mask (exact 0/1) x bf16 neigh chunk on the MXU, f32 accumulate.
    ssum_ref[...] += jnp.dot(mask.astype(jnp.bfloat16), neigh_ref[...],
                             preferred_element_type=jnp.float32)
    cnt_ref[...] += jnp.sum(mask.astype(jnp.float32), axis=1, keepdims=True)

    @pl.when(e_idx == pl.num_programs(1) - 1)
    def _():
        # scatter_mean; row-scale error from the approx recip cancels exactly
        # in the following L2-normalize.
        mean = ssum_ref[...] * pl.reciprocal(
            jnp.maximum(cnt_ref[...], 1.0), approx=True)
        sumsq = jnp.sum(mean * mean, axis=1, keepdims=True)
        normed = mean * lax.rsqrt(jnp.maximum(sumsq, 1e-24))       # F.normalize
        emb_out_ref[...] = normed.astype(emb_out_ref.dtype)        # bf16 hop emb
        res_out_ref[...] = res_ref[...] + normed                   # f32 residual


def gcn_hop(neigh_bf16, head2d, res, *, te_ent, te_edge):
    NE_pad, D = res.shape
    E_pad = neigh_bf16.shape[0]
    grid = (NE_pad // te_ent, E_pad // te_edge)    # (parallel, reduction-last)

    emb, res_out = pl.pallas_call(
        gcn_hop_kernel,
        out_shape=(jax.ShapeDtypeStruct((NE_pad, D), jnp.bfloat16),
                   jax.ShapeDtypeStruct((NE_pad, D), jnp.float32)),
        grid=grid,
        in_specs=[
            pl.BlockSpec((te_edge, D), lambda i, e: (e, 0)),       # neigh chunk
            pl.BlockSpec((1, te_edge), lambda i, e: (0, e)),       # head chunk
            pl.BlockSpec((te_ent, D), lambda i, e: (i, 0)),        # residual
        ],
        out_specs=(pl.BlockSpec((te_ent, D), lambda i, e: (i, 0)),
                   pl.BlockSpec((te_ent, D), lambda i, e: (i, 0))),
        scratch_shapes=[pltpu.VMEM((te_ent, D), jnp.float32),      # ssum acc
                        pltpu.VMEM((te_ent, 1), jnp.float32)],     # cnt  acc
        input_output_aliases={2: 1},   # residual-in aliases residual-out
        compiler_params=pltpu.CompilerParams(
            dimension_semantics=("parallel", "arbitrary"),
            vmem_limit_bytes=VMEM_BUDGET),
    )(neigh_bf16, head2d, res)
    return emb, res_out


def graph_conv(all_embed, head, tail, rel_e, *, n_hops,
               tile_entities=512, tile_edges=512):
    """Multi-hop relational GCN; pads once, runs `n_hops` hop kernels."""
    NE, D = all_embed.shape
    E = head.shape[0]

    te_ent = min(tile_entities, _round_up(NE, 8))
    te_edge = min(tile_edges, _round_up(E, 128))
    NE_pad = _round_up(NE, te_ent)
    E_pad = _round_up(E, te_edge)

    emb = all_embed
    res = all_embed
    if NE_pad != NE:
        pad = ((0, NE_pad - NE), (0, 0))
        emb = jnp.pad(emb, pad)
        res = jnp.pad(res, pad)
    if E_pad != E:
        head = jnp.pad(head, (0, E_pad - E), constant_values=-1)   # never matches
        tail = jnp.pad(tail, (0, E_pad - E))                       # gathers row 0
        rel_e = jnp.pad(rel_e, ((0, E_pad - E), (0, 0)))           # scaled by 0
    head2d = head.reshape(1, E_pad).astype(jnp.int32)

    for _ in range(n_hops):
        # Glue gather + relation scale; XLA fuses gather*mul*convert into one
        # pass that emits the bf16 edge stream directly (half HBM traffic).
        neigh = (emb[tail] * rel_e).astype(jnp.bfloat16)
        emb, res = gcn_hop(neigh, head2d, res, te_ent=te_ent, te_edge=te_edge)
    return res[:NE]


# ----------------------------- Kernel 3: BPR loss ---------------------------
# Note: at small batch this is launch-overhead dominated; kept as a kernel for
# completeness of the module's forward pass.
def bpr_kernel(u_ref, p_ref, n_ref, mf_ref, reg_ref):
    u = u_ref[...]
    p = p_ref[...]
    n = n_ref[...]
    pos = jnp.sum(u * p, axis=1, keepdims=True)                    # [B,1]
    neg = jnp.sum(u * n, axis=1, keepdims=True)                    # [B,1]
    diff = pos - neg
    # stable log-sigmoid
    logsig = jnp.minimum(diff, 0.0) - jnp.log1p(jnp.exp(-jnp.abs(diff)))
    mf_ref[...] = -jnp.mean(logsig, axis=0, keepdims=True)         # (1,1)
    reg_ref[...] = 0.5 * (jnp.sum(u * u, keepdims=True)
                          + jnp.sum(p * p, keepdims=True)
                          + jnp.sum(n * n, keepdims=True))         # (1,1)


def bpr_loss(u_e, pos_e, neg_e, decay):
    B, D = u_e.shape
    mf, reg = pl.pallas_call(
        bpr_kernel,
        grid=(1,),
        in_specs=[pl.BlockSpec((B, D), lambda i: (0, 0))] * 3,
        out_specs=(pl.BlockSpec((1, 1), lambda i: (0, 0)),
                   pl.BlockSpec((1, 1), lambda i: (0, 0))),
        out_shape=(jax.ShapeDtypeStruct((1, 1), jnp.float32),
                   jax.ShapeDtypeStruct((1, 1), jnp.float32)),
    )(u_e, pos_e, neg_e)
    mf_loss = mf[0, 0]
    emb_loss = decay * reg[0, 0] / B
    return mf_loss + emb_loss, mf_loss, emb_loss


# ----------------------------- Full forward ---------------------------------
def recommender_forward(params, picture, text, edge_index, edge_type,
                        users, pos_items, neg_items, *, n_hops, decay):
    item_emb_last = attention_sum(picture, text,
                                  params["W_pf"], params["b_pf"],
                                  params["W_tf"], params["b_tf"],
                                  params["w_vec"])
    head = edge_index[0]
    tail = edge_index[1]
    rel_e = params["rel_weight"][edge_type - 1]          # hop-invariant gather

    entity_res = graph_conv(params["all_embed"], head, tail, rel_e,
                            n_hops=n_hops)

    u_e = entity_res[users]
    pos_e = item_emb_last[pos_items]
    neg_e = item_emb_last[neg_items]
    return bpr_loss(u_e, pos_e, neg_e, decay)


# ----------------------------- Pure-JAX reference ---------------------------
def reference_forward(params, picture, text, edge_index, edge_type,
                      users, pos_items, neg_items, *, n_hops, decay):
    out_x = picture @ params["W_pf"] + params["b_pf"]
    out_y = text @ params["W_tf"] + params["b_tf"]
    a = jnp.maximum(out_x @ params["w_vec"], 0.0)
    b = jnp.maximum(out_y @ params["w_vec"], 0.0)
    c = jnp.concatenate([a, b], axis=1)
    c = jnp.exp(c) / jnp.sum(jnp.exp(c), axis=1, keepdims=True)
    item_emb_last = c[:, 0:1] * out_x + c[:, 1:2] * out_y

    head, tail = edge_index[0], edge_index[1]
    rel_e = params["rel_weight"][edge_type - 1]
    NE = params["all_embed"].shape[0]
    entity_emb = params["all_embed"]
    entity_res = params["all_embed"]
    for _ in range(n_hops):
        neigh = entity_emb[tail] * rel_e
        sums = jax.ops.segment_sum(neigh, head, num_segments=NE)
        cnt = jax.ops.segment_sum(jnp.ones((neigh.shape[0],), jnp.float32),
                                  head, num_segments=NE)
        mean = sums / jnp.maximum(cnt, 1.0)[:, None]
        nrm = jnp.sqrt(jnp.sum(mean * mean, axis=1, keepdims=True))
        entity_emb = mean / jnp.maximum(nrm, 1e-12)
        entity_res = entity_res + entity_emb

    u_e = entity_res[users]
    pos_e = item_emb_last[pos_items]
    neg_e = item_emb_last[neg_items]
    pos_s = jnp.sum(u_e * pos_e, axis=1)
    neg_s = jnp.sum(u_e * neg_e, axis=1)
    mf = -jnp.mean(jax.nn.log_sigmoid(pos_s - neg_s))
    reg = 0.5 * (jnp.sum(u_e ** 2) + jnp.sum(pos_e ** 2) + jnp.sum(neg_e ** 2))
    emb = decay * reg / u_e.shape[0]
    return mf + emb, mf, emb


def xavier_uniform(key, shape):
    fan_in, fan_out = shape[0], shape[1]
    bound = float(np.sqrt(6.0 / (fan_in + fan_out)))
    return jax.random.uniform(key, shape, jnp.float32, -bound, bound)


if __name__ == "__main__":
    # Small, deterministic synthetic config (shapes chosen to exercise the
    # padding paths: NI, NE, E not multiples of the tile sizes).
    NE = 70        # n_entities
    NI = 50        # n_items
    D = 32         # args_config.dim (emb_size)
    NR = 4         # n_relations  -> relation weight has NR-1 rows
    E = 200        # n_edges
    HOPS = 2       # context_hops
    B = 8          # batch size
    DECAY = 1e-4   # l2

    key = jax.random.PRNGKey(0)
    ks = jax.random.split(key, 12)

    params = {
        "all_embed": xavier_uniform(ks[0], (NE, D)),
        "rel_weight": xavier_uniform(ks[1], (NR - 1, D)),
        "W_pf": xavier_uniform(ks[2], (2048, D)),
        "b_pf": 0.01 * jax.random.normal(ks[3], (1, D), jnp.float32),
        "W_tf": xavier_uniform(ks[4], (768, D)),
        "b_tf": 0.01 * jax.random.normal(ks[5], (1, D), jnp.float32),
        "w_vec": xavier_uniform(ks[6], (D, 1)),
    }

    picture = jax.random.normal(ks[7], (NI, 2048), jnp.float32)
    text = jax.random.normal(ks[8], (NI, 768), jnp.float32)

    head = jax.random.randint(ks[9], (E,), 0, NE, jnp.int32)
    tail = jax.random.randint(ks[10], (E,), 0, NE, jnp.int32)
    edge_index = jnp.stack([head, tail], axis=0)
    edge_type = jax.random.randint(ks[11], (E,), 1, NR, jnp.int32)

    bkeys = jax.random.split(jax.random.PRNGKey(1), 3)
    users = jax.random.randint(bkeys[0], (B,), 0, NE, jnp.int32)
    pos_items = jax.random.randint(bkeys[1], (B,), 0, NI, jnp.int32)
    neg_items = jax.random.randint(bkeys[2], (B,), 0, NI, jnp.int32)

    fwd = jax.jit(partial(recommender_forward, n_hops=HOPS, decay=DECAY))
    out = fwd(params, picture, text, edge_index, edge_type,
              users, pos_items, neg_items)
    out = jax.block_until_ready(out)

    ref = reference_forward(params, picture, text, edge_index, edge_type,
                            users, pos_items, neg_items,
                            n_hops=HOPS, decay=DECAY)
    ref = jax.block_until_ready(ref)

    np.testing.assert_allclose(np.array(out, dtype=np.float32),
                               np.array(ref, dtype=np.float32),
                               rtol=5e-2, atol=5e-2)
    print("KERNEL_OK")
</pallas_src>

<mosaic_0001>
module attributes {stable_mosaic.version = 11 : i64} {
  func.func @gcn_hop_kernel(%arg0: i32, %arg1: i32, %arg2: memref<256x32xbf16, #tpu.memory_space<vmem>>, %arg3: memref<1x256xi32, #tpu.memory_space<vmem>>, %arg4: memref<72x32xf32, #tpu.memory_space<vmem>>, %arg5: memref<72x32xbf16, #tpu.memory_space<vmem>>, %arg6: memref<72x32xf32, #tpu.memory_space<vmem>>, %arg7: memref<72x32xf32, #tpu.memory_space<vmem>>, %arg8: memref<72x1xf32, #tpu.memory_space<vmem>>) attributes {dimension_semantics = [#tpu.dimension_semantics<parallel>, #tpu.dimension_semantics<arbitrary>], iteration_bounds = array<i64: 1, 1>, scalar_prefetch = 0 : i64, scratch_operands = 2 : i64, tpu.core_type = #tpu.core_type<tc>, window_params = [{transform_indices = @transform_0, window_bounds = array<i64: 256, 32>}, {transform_indices = @transform_1, window_bounds = array<i64: 1, 256>}, {transform_indices = @transform_2, window_bounds = array<i64: 72, 32>}, {transform_indices = @transform_3, window_bounds = array<i64: 72, 32>}, {transform_indices = @transform_4, window_bounds = array<i64: 72, 32>}]} {
    %c0_i32 = arith.constant 0 : i32
    %0 = arith.cmpi eq, %arg1, %c0_i32 : i32
    %1 = arith.extui %0 : i1 to i32
    %c0_i32_0 = arith.constant 0 : i32
    %2 = arith.cmpi ne, %1, %c0_i32_0 : i32
    scf.if %2 {
      %cst_15 = arith.constant 0.000000e+00 : f32
      %28 = vector.broadcast %cst_15 : f32 to vector<72x32xf32>
      %c0_16 = arith.constant 0 : index
      %c0_17 = arith.constant 0 : index
      %29 = vector.load %arg7[%c0_16, %c0_17] : memref<72x32xf32, #tpu.memory_space<vmem>>, vector<72x32xf32>
      tpu.vector_store %arg7[%c0_16, %c0_17], %28 {strides = array<i32>} : memref<72x32xf32, #tpu.memory_space<vmem>>, vector<72x32xf32>,
      %cst_18 = arith.constant 0.000000e+00 : f32
      %30 = vector.broadcast %cst_18 : f32 to vector<72x1xf32>
      %c0_19 = arith.constant 0 : index
      %c0_20 = arith.constant 0 : index
      %31 = vector.load %arg8[%c0_19, %c0_20] : memref<72x1xf32, #tpu.memory_space<vmem>>, vector<72x1xf32>
      tpu.vector_store %arg8[%c0_19, %c0_20], %30 {strides = array<i32>} : memref<72x1xf32, #tpu.memory_space<vmem>>, vector<72x1xf32>,
    } else {
    }
    %c72_i32 = arith.constant 72 : i32
    %3 = arith.muli %arg0, %c72_i32 : i32
    %4 = tpu.iota {dimensions = array<i32: 0>} : vector<72x256xi32>
    %5 = vector.broadcast %3 : i32 to vector<72x256xi32>
    %6 = arith.addi %5, %4 : vector<72x256xi32>
    %c0 = arith.constant 0 : index
    %c0_1 = arith.constant 0 : index
    %7 = vector.load %arg3[%c0, %c0_1] : memref<1x256xi32, #tpu.memory_space<vmem>>, vector<1x256xi32>
    %8 = vector.broadcast %7 : vector<1x256xi32> to vector<72x256xi32>
    %9 = arith.cmpi eq, %6, %8 : vector<72x256xi32>
    %c0_2 = arith.constant 0 : index
    %c0_3 = arith.constant 0 : index
    %10 = vector.load %arg7[%c0_2, %c0_3] : memref<72x32xf32, #tpu.memory_space<vmem>>, vector<72x32xf32>
    %11 = arith.extui %9 : vector<72x256xi1> to vector<72x256xi32>
    %12 = arith.sitofp %11 : vector<72x256xi32> to vector<72x256xf32>
    %13 = arith.truncf %12 : vector<72x256xf32> to vector<72x256xbf16>
    %c0_4 = arith.constant 0 : index
    %c0_5 = arith.constant 0 : index
    %14 = vector.load %arg2[%c0_4, %c0_5] : memref<256x32xbf16, #tpu.memory_space<vmem>>, vector<256x32xbf16>
    %cst = arith.constant dense<0.000000e+00> : vector<72x32xf32>
    %15 = tpu.matmul %13, %14, %cst {dimension_numbers = #tpu.dot_dimension_numbers<[1], [0], [0], [1], [0, 0, 1, 1], [], []>} : vector<72x256xbf16>, vector<256x32xbf16>, vector<72x32xf32> -> vector<72x32xf32>
    %16 = arith.addf %10, %15 : vector<72x32xf32>
    %c0_6 = arith.constant 0 : index
    %c0_7 = arith.constant 0 : index
    %17 = vector.load %arg7[%c0_6, %c0_7] : memref<72x32xf32, #tpu.memory_space<vmem>>, vector<72x32xf32>
    tpu.vector_store %arg7[%c0_6, %c0_7], %16 {strides = array<i32>} : memref<72x32xf32, #tpu.memory_space<vmem>>, vector<72x32xf32>,
    %c0_8 = arith.constant 0 : index
    %c0_9 = arith.constant 0 : index
    %18 = vector.load %arg8[%c0_8, %c0_9] : memref<72x1xf32, #tpu.memory_space<vmem>>, vector<72x1xf32>
    %19 = arith.extui %9 : vector<72x256xi1> to vector<72x256xi32>
    %20 = arith.sitofp %19 : vector<72x256xi32> to vector<72x256xf32>
    %cst_10 = arith.constant dense<0.000000e+00> : vector<72xf32>
    %21 = vector.multi_reduction <add>, %20, %cst_10 [1] : vector<72x256xf32> to vector<72xf32>
    %22 = vector.shape_cast %21 : vector<72xf32> to vector<72x1xf32>
    %23 = arith.addf %18, %22 : vector<72x1xf32>
    %c0_11 = arith.constant 0 : index
    %c0_12 = arith.constant 0 : index
    %24 = vector.load %arg8[%c0_11, %c0_12] : memref<72x1xf32, #tpu.memory_space<vmem>>, vector<72x1xf32>
    tpu.vector_store %arg8[%c0_11, %c0_12], %23 {strides = array<i32>} : memref<72x1xf32, #tpu.memory_space<vmem>>, vector<72x1xf32>,
    %c0_i32_13 = arith.constant 0 : i32
    %25 = arith.cmpi eq, %arg1, %c0_i32_13 : i32
    %26 = arith.extui %25 : i1 to i32
    %c0_i32_14 = arith.constant 0 : i32
    %27 = arith.cmpi ne, %26, %c0_i32_14 : i32
    scf.if %27 {
      %c0_15 = arith.constant 0 : index
      %c0_16 = arith.constant 0 : index
      %28 = vector.load %arg7[%c0_15, %c0_16] : memref<72x32xf32, #tpu.memory_space<vmem>>, vector<72x32xf32>
      %c0_17 = arith.constant 0 : index
      %c0_18 = arith.constant 0 : index
      %29 = vector.load %arg8[%c0_17, %c0_18] : memref<72x1xf32, #tpu.memory_space<vmem>>, vector<72x1xf32>
      %cst_19 = arith.constant 1.000000e+00 : f32
      %30 = vector.broadcast %cst_19 : f32 to vector<72x1xf32>
      %31 = arith.maximumf %29, %30 : vector<72x1xf32>
      %32 = tpu.reciprocal %31 {approx = true} : vector<72x1xf32> -> vector<72x1xf32>
      %33 = vector.broadcast %32 : vector<72x1xf32> to vector<72x32xf32>
      %34 = arith.mulf %28, %33 : vector<72x32xf32>
      %35 = arith.mulf %34, %34 : vector<72x32xf32>
      %cst_20 = arith.constant dense<0.000000e+00> : vector<72xf32>
      %36 = vector.multi_reduction <add>, %35, %cst_20 [1] : vector<72x32xf32> to vector<72xf32>
      %37 = vector.shape_cast %36 : vector<72xf32> to vector<72x1xf32>
      %cst_21 = arith.constant 1.000000e-24 : f32
      %38 = vector.broadcast %cst_21 : f32 to vector<72x1xf32>
      %39 = arith.maximumf %37, %38 : vector<72x1xf32>
      %40 = math.rsqrt %39 : vector<72x1xf32>
      %41 = vector.broadcast %40 : vector<72x1xf32> to vector<72x32xf32>
      %42 = arith.mulf %34, %41 : vector<72x32xf32>
      %43 = arith.truncf %42 : vector<72x32xf32> to vector<72x32xbf16>
      %c0_22 = arith.constant 0 : index
      %c0_23 = arith.constant 0 : index
      %44 = vector.load %arg5[%c0_22, %c0_23] : memref<72x32xbf16, #tpu.memory_space<vmem>>, vector<72x32xbf16>
      tpu.vector_store %arg5[%c0_22, %c0_23], %43 {strides = array<i32>} : memref<72x32xbf16, #tpu.memory_space<vmem>>, vector<72x32xbf16>,
      %c0_24 = arith.constant 0 : index
      %c0_25 = arith.constant 0 : index
      %45 = vector.load %arg4[%c0_24, %c0_25] : memref<72x32xf32, #tpu.memory_space<vmem>>, vector<72x32xf32>
      %46 = arith.addf %45, %42 : vector<72x32xf32>
      %c0_26 = arith.constant 0 : index
      %c0_27 = arith.constant 0 : index
      %47 = vector.load %arg6[%c0_26, %c0_27] : memref<72x32xf32, #tpu.memory_space<vmem>>, vector<72x32xf32>
      tpu.vector_store %arg6[%c0_26, %c0_27], %46 {strides = array<i32>} : memref<72x32xf32, #tpu.memory_space<vmem>>, vector<72x32xf32>,
    } else {
    }
    return
  }
  func.func @transform_0(%arg0: i32, %arg1: i32) -> (i32, i32) {
    %c0_i32 = arith.constant 0 : i32
    %c0_i32_0 = arith.constant 0 : i32
    return %arg1, %c0_i32 : i32, i32
  }
  func.func @transform_1(%arg0: i32, %arg1: i32) -> (i32, i32) {
    %c0_i32 = arith.constant 0 : i32
    %c0_i32_0 = arith.constant 0 : i32
    return %c0_i32, %arg1 : i32, i32
  }
  func.func @transform_2(%arg0: i32, %arg1: i32) -> (i32, i32) {
    %c0_i32 = arith.constant 0 : i32
    %c0_i32_0 = arith.constant 0 : i32
    return %arg0, %c0_i32 : i32, i32
  }
  func.func @transform_3(%arg0: i32, %arg1: i32) -> (i32, i32) {
    %c0_i32 = arith.constant 0 : i32
    %c0_i32_0 = arith.constant 0 : i32
    return %arg0, %c0_i32 : i32, i32
  }
  func.func @transform_4(%arg0: i32, %arg1: i32) -> (i32, i32) {
    %c0_i32 = arith.constant 0 : i32
    %c0_i32_0 = arith.constant 0 : i32
    return %arg0, %c0_i32 : i32, i32
  }
}

module attributes {stable_mosaic.version = 11 : i64} {
  func.func @gcn_hop_kernel(%arg0: i32, %arg1: i32, %arg2: memref<256x32xbf16, #tpu.memory_space<vmem>>, %arg3: memref<1x256xi32, #tpu.memory_space<vmem>>, %arg4: memref<72x32xf32, #tpu.memory_space<vmem>>, %arg5: memref<72x32xbf16, #tpu.memory_space<vmem>>, %arg6: memref<72x32xf32, #tpu.memory_space<vmem>>, %arg7: memref<72x32xf32, #tpu.memory_space<vmem>>, %arg8: memref<72x1xf32, #tpu.memory_space<vmem>>) attributes {dimension_semantics = [#tpu.dimension_semantics<parallel>, #tpu.dimension_semantics<arbitrary>], iteration_bounds = array<i64: 1, 1>, scalar_prefetch = 0 : i64, scratch_operands = 2 : i64, tpu.core_type = #tpu.core_type<tc>, window_params = [{transform_indices = @transform_0, window_bounds = array<i64: 256, 32>}, {transform_indices = @transform_1, window_bounds = array<i64: 1, 256>}, {transform_indices = @transform_2, window_bounds = array<i64: 72, 32>}, {transform_indices = @transform_3, window_bounds = array<i64: 72, 32>}, {transform_indices = @transform_4, window_bounds = array<i64: 72, 32>}]} {
    %c0_i32 = arith.constant 0 : i32
    %0 = arith.cmpi eq, %arg1, %c0_i32 : i32
    %1 = arith.extui %0 : i1 to i32
    %c0_i32_0 = arith.constant 0 : i32
    %2 = arith.cmpi ne, %1, %c0_i32_0 : i32
    scf.if %2 {
      %cst_15 = arith.constant 0.000000e+00 : f32
      %28 = vector.broadcast %cst_15 : f32 to vector<72x32xf32>
      %c0_16 = arith.constant 0 : index
      %c0_17 = arith.constant 0 : index
      %29 = vector.load %arg7[%c0_16, %c0_17] : memref<72x32xf32, #tpu.memory_space<vmem>>, vector<72x32xf32>
      tpu.vector_store %arg7[%c0_16, %c0_17], %28 {strides = array<i32>} : memref<72x32xf32, #tpu.memory_space<vmem>>, vector<72x32xf32>,
      %cst_18 = arith.constant 0.000000e+00 : f32
      %30 = vector.broadcast %cst_18 : f32 to vector<72x1xf32>
      %c0_19 = arith.constant 0 : index
      %c0_20 = arith.constant 0 : index
      %31 = vector.load %arg8[%c0_19, %c0_20] : memref<72x1xf32, #tpu.memory_space<vmem>>, vector<72x1xf32>
      tpu.vector_store %arg8[%c0_19, %c0_20], %30 {strides = array<i32>} : memref<72x1xf32, #tpu.memory_space<vmem>>, vector<72x1xf32>,
    } else {
    }
    %c72_i32 = arith.constant 72 : i32
    %3 = arith.muli %arg0, %c72_i32 : i32
    %4 = tpu.iota {dimensions = array<i32: 0>} : vector<72x256xi32>
    %5 = vector.broadcast %3 : i32 to vector<72x256xi32>
    %6 = arith.addi %5, %4 : vector<72x256xi32>
    %c0 = arith.constant 0 : index
    %c0_1 = arith.constant 0 : index
    %7 = vector.load %arg3[%c0, %c0_1] : memref<1x256xi32, #tpu.memory_space<vmem>>, vector<1x256xi32>
    %8 = vector.broadcast %7 : vector<1x256xi32> to vector<72x256xi32>
    %9 = arith.cmpi eq, %6, %8 : vector<72x256xi32>
    %c0_2 = arith.constant 0 : index
    %c0_3 = arith.constant 0 : index
    %10 = vector.load %arg7[%c0_2, %c0_3] : memref<72x32xf32, #tpu.memory_space<vmem>>, vector<72x32xf32>
    %11 = arith.extui %9 : vector<72x256xi1> to vector<72x256xi32>
    %12 = arith.sitofp %11 : vector<72x256xi32> to vector<72x256xf32>
    %13 = arith.truncf %12 : vector<72x256xf32> to vector<72x256xbf16>
    %c0_4 = arith.constant 0 : index
    %c0_5 = arith.constant 0 : index
    %14 = vector.load %arg2[%c0_4, %c0_5] : memref<256x32xbf16, #tpu.memory_space<vmem>>, vector<256x32xbf16>
    %cst = arith.constant dense<0.000000e+00> : vector<72x32xf32>
    %15 = tpu.matmul %13, %14, %cst {dimension_numbers = #tpu.dot_dimension_numbers<[1], [0], [0], [1], [0, 0, 1, 1], [], []>} : vector<72x256xbf16>, vector<256x32xbf16>, vector<72x32xf32> -> vector<72x32xf32>
    %16 = arith.addf %10, %15 : vector<72x32xf32>
    %c0_6 = arith.constant 0 : index
    %c0_7 = arith.constant 0 : index
    %17 = vector.load %arg7[%c0_6, %c0_7] : memref<72x32xf32, #tpu.memory_space<vmem>>, vector<72x32xf32>
    tpu.vector_store %arg7[%c0_6, %c0_7], %16 {strides = array<i32>} : memref<72x32xf32, #tpu.memory_space<vmem>>, vector<72x32xf32>,
    %c0_8 = arith.constant 0 : index
    %c0_9 = arith.constant 0 : index
    %18 = vector.load %arg8[%c0_8, %c0_9] : memref<72x1xf32, #tpu.memory_space<vmem>>, vector<72x1xf32>
    %19 = arith.extui %9 : vector<72x256xi1> to vector<72x256xi32>
    %20 = arith.sitofp %19 : vector<72x256xi32> to vector<72x256xf32>
    %cst_10 = arith.constant dense<0.000000e+00> : vector<72xf32>
    %21 = vector.multi_reduction <add>, %20, %cst_10 [1] : vector<72x256xf32> to vector<72xf32>
    %22 = vector.shape_cast %21 : vector<72xf32> to vector<72x1xf32>
    %23 = arith.addf %18, %22 : vector<72x1xf32>
    %c0_11 = arith.constant 0 : index
    %c0_12 = arith.constant 0 : index
    %24 = vector.load %arg8[%c0_11, %c0_12] : memref<72x1xf32, #tpu.memory_space<vmem>>, vector<72x1xf32>
    tpu.vector_store %arg8[%c0_11, %c0_12], %23 {strides = array<i32>} : memref<72x1xf32, #tpu.memory_space<vmem>>, vector<72x1xf32>,
    %c0_i32_13 = arith.constant 0 : i32
    %25 = arith.cmpi eq, %arg1, %c0_i32_13 : i32
    %26 = arith.extui %25 : i1 to i32
    %c0_i32_14 = arith.constant 0 : i32
    %27 = arith.cmpi ne, %26, %c0_i32_14 : i32
    scf.if %27 {
      %c0_15 = arith.constant 0 : index
      %c0_16 = arith.constant 0 : index
      %28 = vector.load %arg7[%c0_15, %c0_16] : memref<72x32xf32, #tpu.memory_space<vmem>>, vector<72x32xf32>
      %c0_17 = arith.constant 0 : index
      %c0_18 = arith.constant 0 : index
      %29 = vector.load %arg8[%c0_17, %c0_18] : memref<72x1xf32, #tpu.memory_space<vmem>>, vector<72x1xf32>
      %cst_19 = arith.constant 1.000000e+00 : f32
      %30 = vector.broadcast %cst_19 : f32 to vector<72x1xf32>
      %31 = arith.maximumf %29, %30 : vector<72x1xf32>
      %32 = tpu.reciprocal %31 {approx = true} : vector<72x1xf32> -> vector<72x1xf32>
      %33 = vector.broadcast %32 : vector<72x1xf32> to vector<72x32xf32>
      %34 = arith.mulf %28, %33 : vector<72x32xf32>
      %35 = arith.mulf %34, %34 : vector<72x32xf32>
      %cst_20 = arith.constant dense<0.000000e+00> : vector<72xf32>
      %36 = vector.multi_reduction <add>, %35, %cst_20 [1] : vector<72x32xf32> to vector<72xf32>
      %37 = vector.shape_cast %36 : vector<72xf32> to vector<72x1xf32>
      %cst_21 = arith.constant 1.000000e-24 : f32
      %38 = vector.broadcast %cst_21 : f32 to vector<72x1xf32>
      %39 = arith.maximumf %37, %38 : vector<72x1xf32>
      %40 = math.rsqrt %39 : vector<72x1xf32>
      %41 = vector.broadcast %40 : vector<72x1xf32> to vector<72x32xf32>
      %42 = arith.mulf %34, %41 : vector<72x32xf32>
      %43 = arith.truncf %42 : vector<72x32xf32> to vector<72x32xbf16>
      %c0_22 = arith.constant 0 : index
      %c0_23 = arith.constant 0 : index
      %44 = vector.load %arg5[%c0_22, %c0_23] : memref<72x32xbf16, #tpu.memory_space<vmem>>, vector<72x32xbf16>
      tpu.vector_store %arg5[%c0_22, %c0_23], %43 {strides = array<i32>} : memref<72x32xbf16, #tpu.memory_space<vmem>>, vector<72x32xbf16>,
      %c0_24 = arith.constant 0 : index
      %c0_25 = arith.constant 0 : index
      %45 = vector.load %arg4[%c0_24, %c0_25] : memref<72x32xf32, #tpu.memory_space<vmem>>, vector<72x32xf32>
      %46 = arith.addf %45, %42 : vector<72x32xf32>
      %c0_26 = arith.constant 0 : index
      %c0_27 = arith.constant 0 : index
      %47 = vector.load %arg6[%c0_26, %c0_27] : memref<72x32xf32, #tpu.memory_space<vmem>>, vector<72x32xf32>
      tpu.vector_store %arg6[%c0_26, %c0_27], %46 {strides = array<i32>} : memref<72x32xf32, #tpu.memory_space<vmem>>, vector<72x32xf32>,
    } else {
    }
    return
  }
  func.func @transform_0(%arg0: i32, %arg1: i32) -> (i32, i32) {
    %c0_i32 = arith.constant 0 : i32
    %c0_i32_0 = arith.constant 0 : i32
    return %arg1, %c0_i32 : i32, i32
  }
  func.func @transform_1(%arg0: i32, %arg1: i32) -> (i32, i32) {
    %c0_i32 = arith.constant 0 : i32
    %c0_i32_0 = arith.constant 0 : i32
    return %c0_i32, %arg1 : i32, i32
  }
  func.func @transform_2(%arg0: i32, %arg1: i32) -> (i32, i32) {
    %c0_i32 = arith.constant 0 : i32
    %c0_i32_0 = arith.constant 0 : i32
    return %arg0, %c0_i32 : i32, i32
  }
  func.func @transform_3(%arg0: i32, %arg1: i32) -> (i32, i32) {
    %c0_i32 = arith.constant 0 : i32
    %c0_i32_0 = arith.constant 0 : i32
    return %arg0, %c0_i32 : i32, i32
  }
  func.func @transform_4(%arg0: i32, %arg1: i32) -> (i32, i32) {
    %c0_i32 = arith.constant 0 : i32
    %c0_i32_0 = arith.constant 0 : i32
    return %arg0, %c0_i32 : i32, i32
  }
}

module attributes {stable_mosaic.version = 11 : i64} {
  func.func @attn_sum_kernel(%arg0: i32, %arg1: memref<56x2048xf32, #tpu.memory_space<vmem>>, %arg2: memref<56x768xf32, #tpu.memory_space<vmem>>, %arg3: memref<2048x32xf32, #tpu.memory_space<vmem>>, %arg4: memref<1x32xf32, #tpu.memory_space<vmem>>, %arg5: memref<768x32xf32, #tpu.memory_space<vmem>>, %arg6: memref<1x32xf32, #tpu.memory_space<vmem>>, %arg7: memref<1x32xf32, #tpu.memory_space<vmem>>, %arg8: memref<56x32xf32, #tpu.memory_space<vmem>>) attributes {dimension_semantics = [#tpu.dimension_semantics<parallel>], iteration_bounds = array<i64: 1>, scalar_prefetch = 0 : i64, scratch_operands = 0 : i64, tpu.core_type = #tpu.core_type<tc>, window_params = [{transform_indices = @transform_0, window_bounds = array<i64: 56, 2048>}, {transform_indices = @transform_1, window_bounds = array<i64: 56, 768>}, {pipeline_mode = #tpu.pipeline_mode<synchronous>, transform_indices = @transform_2, window_bounds = array<i64: 2048, 32>}, {pipeline_mode = #tpu.pipeline_mode<synchronous>, transform_indices = @transform_3, window_bounds = array<i64: 1, 32>}, {pipeline_mode = #tpu.pipeline_mode<synchronous>, transform_indices = @transform_4, window_bounds = array<i64: 768, 32>}, {pipeline_mode = #tpu.pipeline_mode<synchronous>, transform_indices = @transform_5, window_bounds = array<i64: 1, 32>}, {pipeline_mode = #tpu.pipeline_mode<synchronous>, transform_indices = @transform_6, window_bounds = array<i64: 1, 32>}, {transform_indices = @transform_7, window_bounds = array<i64: 56, 32>}]} {
    %c0 = arith.constant 0 : index
    %c0_0 = arith.constant 0 : index
    %0 = vector.load %arg1[%c0, %c0_0] : memref<56x2048xf32, #tpu.memory_space<vmem>>, vector<56x2048xf32>
    %c0_1 = arith.constant 0 : index
    %c0_2 = arith.constant 0 : index
    %1 = vector.load %arg3[%c0_1, %c0_2] : memref<2048x32xf32, #tpu.memory_space<vmem>>, vector<2048x32xf32>
    %cst = arith.constant dense<0.000000e+00> : vector<56x32xf32>
    %2 = tpu.matmul %0, %1, %cst {dimension_numbers = #tpu.dot_dimension_numbers<[1], [0], [0], [1], [0, 0, 1, 1], [], []>} : vector<56x2048xf32>, vector<2048x32xf32>, vector<56x32xf32> -> vector<56x32xf32>
    %c0_3 = arith.constant 0 : index
    %c0_4 = arith.constant 0 : index
    %3 = vector.load %arg4[%c0_3, %c0_4] : memref<1x32xf32, #tpu.memory_space<vmem>>, vector<1x32xf32>
    %4 = vector.broadcast %3 : vector<1x32xf32> to vector<56x32xf32>
    %5 = arith.addf %2, %4 : vector<56x32xf32>
    %c0_5 = arith.constant 0 : index
    %c0_6 = arith.constant 0 : index
    %6 = vector.load %arg2[%c0_5, %c0_6] : memref<56x768xf32, #tpu.memory_space<vmem>>, vector<56x768xf32>
    %c0_7 = arith.constant 0 : index
    %c0_8 = arith.constant 0 : index
    %7 = vector.load %arg5[%c0_7, %c0_8] : memref<768x32xf32, #tpu.memory_space<vmem>>, vector<768x32xf32>
    %cst_9 = arith.constant dense<0.000000e+00> : vector<56x32xf32>
    %8 = tpu.matmul %6, %7, %cst_9 {dimension_numbers = #tpu.dot_dimension_numbers<[1], [0], [0], [1], [0, 0, 1, 1], [], []>} : vector<56x768xf32>, vector<768x32xf32>, vector<56x32xf32> -> vector<56x32xf32>
    %c0_10 = arith.constant 0 : index
    %c0_11 = arith.constant 0 : index
    %9 = vector.load %arg6[%c0_10, %c0_11] : memref<1x32xf32, #tpu.memory_space<vmem>>, vector<1x32xf32>
    %10 = vector.broadcast %9 : vector<1x32xf32> to vector<56x32xf32>
    %11 = arith.addf %8, %10 : vector<56x32xf32>
    %c0_12 = arith.constant 0 : index
    %c0_13 = arith.constant 0 : index
    %12 = vector.load %arg7[%c0_12, %c0_13] : memref<1x32xf32, #tpu.memory_space<vmem>>, vector<1x32xf32>
    %13 = vector.broadcast %12 : vector<1x32xf32> to vector<56x32xf32>
    %14 = arith.mulf %5, %13 : vector<56x32xf32>
    %cst_14 = arith.constant dense<0.000000e+00> : vector<56xf32>
    %15 = vector.multi_reduction <add>, %14, %cst_14 [1] : vector<56x32xf32> to vector<56xf32>
    %16 = vector.shape_cast %15 : vector<56xf32> to vector<56x1xf32>
    %cst_15 = arith.constant 0.000000e+00 : f32
    %17 = vector.broadcast %cst_15 : f32 to vector<56x1xf32>
    %18 = arith.maximumf %16, %17 : vector<56x1xf32>
    %19 = vector.broadcast %12 : vector<1x32xf32> to vector<56x32xf32>
    %20 = arith.mulf %11, %19 : vector<56x32xf32>
    %cst_16 = arith.constant dense<0.000000e+00> : vector<56xf32>
    %21 = vector.multi_reduction <add>, %20, %cst_16 [1] : vector<56x32xf32> to vector<56xf32>
    %22 = vector.shape_cast %21 : vector<56xf32> to vector<56x1xf32>
    %cst_17 = arith.constant 0.000000e+00 : f32
    %23 = vector.broadcast %cst_17 : f32 to vector<56x1xf32>
    %24 = arith.maximumf %22, %23 : vector<56x1xf32>
    %25 = arith.subf %24, %18 : vector<56x1xf32>
    %26 = math.exp %25 : vector<56x1xf32>
    %cst_18 = arith.constant 1.000000e+00 : f32
    %27 = vector.broadcast %cst_18 : f32 to vector<56x1xf32>
    %28 = arith.addf %27, %26 : vector<56x1xf32>
    %29 = tpu.reciprocal %28 {approx = true} : vector<56x1xf32> -> vector<56x1xf32>
    %30 = vector.broadcast %29 : vector<56x1xf32> to vector<56x32xf32>
    %31 = arith.mulf %30, %5 : vector<56x32xf32>
    %cst_19 = arith.constant 1.000000e+00 : f32
    %32 = vector.broadcast %cst_19 : f32 to vector<56x1xf32>
    %33 = arith.subf %32, %29 : vector<56x1xf32>
    %34 = vector.broadcast %33 : vector<56x1xf32> to vector<56x32xf32>
    %35 = arith.mulf %34, %11 : vector<56x32xf32>
    %36 = arith.addf %31, %35 : vector<56x32xf32>
    %c0_20 = arith.constant 0 : index
    %c0_21 = arith.constant 0 : index
    %37 = vector.load %arg8[%c0_20, %c0_21] : memref<56x32xf32, #tpu.memory_space<vmem>>, vector<56x32xf32>
    tpu.vector_store %arg8[%c0_20, %c0_21], %36 {strides = array<i32>} : memref<56x32xf32, #tpu.memory_space<vmem>>, vector<56x32xf32>,
    return
  }
  func.func @transform_0(%arg0: i32) -> (i32, i32) {
    %c0_i32 = arith.constant 0 : i32
    %c0_i32_0 = arith.constant 0 : i32
    return %arg0, %c0_i32 : i32, i32
  }
  func.func @transform_1(%arg0: i32) -> (i32, i32) {
    %c0_i32 = arith.constant 0 : i32
    %c0_i32_0 = arith.constant 0 : i32
    return %arg0, %c0_i32 : i32, i32
  }
  func.func @transform_2(%arg0: i32) -> (i32, i32) {
    %c0_i32 = arith.constant 0 : i32
    %c0_i32_0 = arith.constant 0 : i32
    %c0_i32_1 = arith.constant 0 : i32
    return %c0_i32, %c0_i32_0 : i32, i32
  }
  func.func @transform_3(%arg0: i32) -> (i32, i32) {
    %c0_i32 = arith.constant 0 : i32
    %c0_i32_0 = arith.constant 0 : i32
    %c0_i32_1 = arith.constant 0 : i32
    return %c0_i32, %c0_i32_0 : i32, i32
  }
  func.func @transform_4(%arg0: i32) -> (i32, i32) {
    %c0_i32 = arith.constant 0 : i32
    %c0_i32_0 = arith.constant 0 : i32
    %c0_i32_1 = arith.constant 0 : i32
    return %c0_i32, %c0_i32_0 : i32, i32
  }
  func.func @transform_5(%arg0: i32) -> (i32, i32) {
    %c0_i32 = arith.constant 0 : i32
    %c0_i32_0 = arith.constant 0 : i32
    %c0_i32_1 = arith.constant 0 : i32
    return %c0_i32, %c0_i32_0 : i32, i32
  }
  func.func @transform_6(%arg0: i32) -> (i32, i32) {
    %c0_i32 = arith.constant 0 : i32
    %c0_i32_0 = arith.constant 0 : i32
    %c0_i32_1 = arith.constant 0 : i32
    return %c0_i32, %c0_i32_0 : i32, i32
  }
  func.func @transform_7(%arg0: i32) -> (i32, i32) {
    %c0_i32 = arith.constant 0 : i32
    %c0_i32_0 = arith.constant 0 : i32
    return %arg0, %c0_i32 : i32, i32
  }
}

module attributes {stable_mosaic.version = 11 : i64} {
  func.func @bpr_kernel(%arg0: i32, %arg1: memref<8x32xf32, #tpu.memory_space<vmem>>, %arg2: memref<8x32xf32, #tpu.memory_space<vmem>>, %arg3: memref<8x32xf32, #tpu.memory_space<vmem>>, %arg4: memref<1x1xf32, #tpu.memory_space<vmem>>, %arg5: memref<1x1xf32, #tpu.memory_space<vmem>>) attributes {dimension_semantics = [#tpu.dimension_semantics<arbitrary>], iteration_bounds = array<i64: 1>, scalar_prefetch = 0 : i64, scratch_operands = 0 : i64, tpu.core_type = #tpu.core_type<tc>, window_params = [{pipeline_mode = #tpu.pipeline_mode<synchronous>, transform_indices = @transform_0, window_bounds = array<i64: 8, 32>}, {pipeline_mode = #tpu.pipeline_mode<synchronous>, transform_indices = @transform_1, window_bounds = array<i64: 8, 32>}, {pipeline_mode = #tpu.pipeline_mode<synchronous>, transform_indices = @transform_2, window_bounds = array<i64: 8, 32>}, {pipeline_mode = #tpu.pipeline_mode<synchronous>, transform_indices = @transform_3, window_bounds = array<i64: 1, 1>}, {pipeline_mode = #tpu.pipeline_mode<synchronous>, transform_indices = @transform_4, window_bounds = array<i64: 1, 1>}]} {
    %c0 = arith.constant 0 : index
    %c0_0 = arith.constant 0 : index
    %0 = vector.load %arg1[%c0, %c0_0] : memref<8x32xf32, #tpu.memory_space<vmem>>, vector<8x32xf32>
    %c0_1 = arith.constant 0 : index
    %c0_2 = arith.constant 0 : index
    %1 = vector.load %arg2[%c0_1, %c0_2] : memref<8x32xf32, #tpu.memory_space<vmem>>, vector<8x32xf32>
    %c0_3 = arith.constant 0 : index
    %c0_4 = arith.constant 0 : index
    %2 = vector.load %arg3[%c0_3, %c0_4] : memref<8x32xf32, #tpu.memory_space<vmem>>, vector<8x32xf32>
    %3 = arith.mulf %0, %1 : vector<8x32xf32>
    %cst = arith.constant dense<0.000000e+00> : vector<8xf32>
    %4 = vector.multi_reduction <add>, %3, %cst [1] : vector<8x32xf32> to vector<8xf32>
    %5 = vector.shape_cast %4 : vector<8xf32> to vector<8x1xf32>
    %6 = arith.mulf %0, %2 : vector<8x32xf32>
    %cst_5 = arith.constant dense<0.000000e+00> : vector<8xf32>
    %7 = vector.multi_reduction <add>, %6, %cst_5 [1] : vector<8x32xf32> to vector<8xf32>
    %8 = vector.shape_cast %7 : vector<8xf32> to vector<8x1xf32>
    %9 = arith.subf %5, %8 : vector<8x1xf32>
    %cst_6 = arith.constant 0.000000e+00 : f32
    %10 = vector.broadcast %cst_6 : f32 to vector<8x1xf32>
    %11 = arith.minimumf %9, %10 : vector<8x1xf32>
    %12 = math.absf %9 : vector<8x1xf32>
    %cst_7 = arith.constant 0.000000e+00 : f32
    %13 = vector.broadcast %cst_7 : f32 to vector<8x1xf32>
    %14 = arith.subf %13, %12 : vector<8x1xf32>
    %15 = math.exp %14 : vector<8x1xf32>
    %16 = math.log1p %15 : vector<8x1xf32>
    %17 = arith.subf %11, %16 : vector<8x1xf32>
    %cst_8 = arith.constant dense<0.000000e+00> : vector<1xf32>
    %18 = vector.multi_reduction <add>, %17, %cst_8 [0] : vector<8x1xf32> to vector<1xf32>
    %19 = vector.shape_cast %18 : vector<1xf32> to vector<1x1xf32>
    %cst_9 = arith.constant 8.000000e+00 : f32
    %20 = vector.broadcast %cst_9 : f32 to vector<1x1xf32>
    %21 = arith.divf %19, %20 : vector<1x1xf32>
    %cst_10 = arith.constant 0.000000e+00 : f32
    %22 = vector.broadcast %cst_10 : f32 to vector<1x1xf32>
    %23 = arith.subf %22, %21 : vector<1x1xf32>
    %c0_11 = arith.constant 0 : index
    %c0_12 = arith.constant 0 : index
    %24 = vector.load %arg4[%c0_11, %c0_12] : memref<1x1xf32, #tpu.memory_space<vmem>>, vector<1x1xf32>
    tpu.vector_store %arg4[%c0_11, %c0_12], %23 {strides = array<i32>} : memref<1x1xf32, #tpu.memory_space<vmem>>, vector<1x1xf32>,
    %25 = arith.mulf %0, %0 : vector<8x32xf32>
    %26 = vector.shape_cast %25 : vector<8x32xf32> to vector<1x8x32xf32>
    %cst_13 = arith.constant dense<0.000000e+00> : vector<1xf32>
    %27 = vector.multi_reduction <add>, %26, %cst_13 [1, 2] : vector<1x8x32xf32> to vector<1xf32>
    %28 = vector.shape_cast %27 : vector<1xf32> to vector<1x1x1xf32>
    %29 = vector.extract %28[0, 0, 0] : f32 from vector<1x1x1xf32>
    %30 = vector.broadcast %29 : f32 to vector<1x1xf32>
    %31 = arith.mulf %1, %1 : vector<8x32xf32>
    %32 = vector.shape_cast %31 : vector<8x32xf32> to vector<1x8x32xf32>
    %cst_14 = arith.constant dense<0.000000e+00> : vector<1xf32>
    %33 = vector.multi_reduction <add>, %32, %cst_14 [1, 2] : vector<1x8x32xf32> to vector<1xf32>
    %34 = vector.shape_cast %33 : vector<1xf32> to vector<1x1x1xf32>
    %35 = vector.extract %34[0, 0, 0] : f32 from vector<1x1x1xf32>
    %36 = vector.broadcast %35 : f32 to vector<1x1xf32>
    %37 = arith.addf %30, %36 : vector<1x1xf32>
    %38 = arith.mulf %2, %2 : vector<8x32xf32>
    %39 = vector.shape_cast %38 : vector<8x32xf32> to vector<1x8x32xf32>
    %cst_15 = arith.constant dense<0.000000e+00> : vector<1xf32>
    %40 = vector.multi_reduction <add>, %39, %cst_15 [1, 2] : vector<1x8x32xf32> to vector<1xf32>
    %41 = vector.shape_cast %40 : vector<1xf32> to vector<1x1x1xf32>
    %42 = vector.extract %41[0, 0, 0] : f32 from vector<1x1x1xf32>
    %43 = vector.broadcast %42 : f32 to vector<1x1xf32>
    %44 = arith.addf %37, %43 : vector<1x1xf32>
    %cst_16 = arith.constant 5.000000e-01 : f32
    %45 = vector.broadcast %cst_16 : f32 to vector<1x1xf32>
    %46 = arith.mulf %45, %44 : vector<1x1xf32>
    %c0_17 = arith.constant 0 : index
    %c0_18 = arith.constant 0 : index
    %47 = vector.load %arg5[%c0_17, %c0_18] : memref<1x1xf32, #tpu.memory_space<vmem>>, vector<1x1xf32>
    tpu.vector_store %arg5[%c0_17, %c0_18], %46 {strides = array<i32>} : memref<1x1xf32, #tpu.memory_space<vmem>>, vector<1x1xf32>,
    return
  }
  func.func @transform_0(%arg0: i32) -> (i32, i32) {
    %c0_i32 = arith.constant 0 : i32
    %c0_i32_0 = arith.constant 0 : i32
    %c0_i32_1 = arith.constant 0 : i32
    return %c0_i32, %c0_i32_0 : i32, i32
  }
  func.func @transform_1(%arg0: i32) -> (i32, i32) {
    %c0_i32 = arith.constant 0 : i32
    %c0_i32_0 = arith.constant 0 : i32
    %c0_i32_1 = arith.constant 0 : i32
    return %c0_i32, %c0_i32_0 : i32, i32
  }
  func.func @transform_2(%arg0: i32) -> (i32, i32) {
    %c0_i32 = arith.constant 0 : i32
    %c0_i32_0 = arith.constant 0 : i32
    %c0_i32_1 = arith.constant 0 : i32
    return %c0_i32, %c0_i32_0 : i32, i32
  }
  func.func @transform_3(%arg0: i32) -> (i32, i32) {
    %c0_i32 = arith.constant 0 : i32
    %c0_i32_0 = arith.constant 0 : i32
    %c0_i32_1 = arith.constant 0 : i32
    return %c0_i32, %c0_i32_0 : i32, i32
  }
  func.func @transform_4(%arg0: i32) -> (i32, i32) {
    %c0_i32 = arith.constant 0 : i32
    %c0_i32_0 = arith.constant 0 : i32
    %c0_i32_1 = arith.constant 0 : i32
    return %c0_i32, %c0_i32_0 : i32, i32
  }
}

</mosaic_0001>

<bundles_post_ra>
// kernel: recommender_forward.6
= control target key start
LH: loop header
LB: loop body
LE: loop exit
PB: predicated region body
PF: predicated region fallthrough
CT: control target
= control target key end

     0   :  { %v43_v0 = vlaneseq  ;;  %vm1351_vm0 = vcmask 7168   ;;  %v885_v11 = vmov 0.0   ;;  %v886_v55 = vmov 1.0|1.0   ;;  %s1346_s0 = inlined_call_operand.vmem [shape: bf16[256,32], index: 0, kind: input, shape index: {}]   ;;  %s1347_s1 = inlined_call_operand.vmem [shape: s32[1,256], index: 1, kind: input, shape index: {}]   ;;  %s1348_s2 = inlined_call_operand.vmem [shape: f32[72,32], index: 2, kind: input, shape index: {}, may-alias: {2,4}]   ;;  %s1349_s3 = inlined_call_operand.hbm [shape: bf16[72,32], index: 3, kind: output, shape index: {0}]   ;;  %s1350_s4 = inlined_call_operand.vmem [shape: f32[72,32], index: 4, kind: output, shape index: {1}, may-alias: {2,4}]  }
   0x1   :  { %v811_v1 = vld [vmem:[%s1346_s0 + $0x78] sm:$0xff]   ;;  %v63_v2 = vld [vmem:[%s1347_s1] sm:$0x3]  ;;  %v813_v5 = vld [vmem:[%s1346_s0 + $0x70] sm:$0xff]   ;;  %33 = vst.msk [vmem:[#allocation3] sm:$0xff] %vm1351_vm0, %v885_v11 }
   0x2   :  { %v922_v3 = vshrl.u32 %v43_v0, 7  ;;  %741 = vmatprep.subr.bf16.mxu0 %v811_v1  ;;  %v812_v4 = vld [vmem:[%s1346_s0 + $0x38] sm:$0xff]   ;;  %787 = vmatprep.subr.bf16.mxu1 %v811_v1  ;;  %v814_v10 = vld [vmem:[%s1346_s0 + $0x30] sm:$0xff]   ;;  %34 = vst.msk [vmem:[#allocation3 + $0x8] sm:$0xff] %vm1351_vm0, %v885_v11  ;;  %35 = vst.msk [vmem:[#allocation3 + $0x10] sm:$0xff] %vm1351_vm0, %v885_v11 }
   0x3   :  { %742 = vmatpush3.bf16.msra.mxu0 %v812_v4  ;;  %795 = vmatpush3.bf16.msra.mxu1 %v812_v4  ;;  %36 = vst.msk [vmem:[#allocation3 + $0x18] sm:$0xff] %vm1351_vm0, %v885_v11  ;;  %37 = vst.msk [vmem:[#allocation3 + $0x20] sm:$0xff] %vm1351_vm0, %v885_v11  ;;  %v815_v13 = vld [vmem:[%s1346_s0 + $0x68] sm:$0xff]   ;;  %v817_v23 = vld [vmem:[%s1346_s0 + $0x60] sm:$0xff]  }
   0x4   :  { %v931_v6 = vadd.s32 8, %v922_v3  ;;  %v66_v7 = vsub.s32 0, %v922_v3  ;;  %v70_v8 = vsub.s32 1, %v922_v3  ;;  %v936_v9 = vadd.s32 16, %v922_v3  ;;  %38 = vst.msk [vmem:[#allocation3 + $0x28] sm:$0xff] %vm1351_vm0, %v885_v11  ;;  %39 = vst.msk [vmem:[#allocation3 + $0x30] sm:$0xff] %vm1351_vm0, %v885_v11  ;;  %743 = vmatprep.subr.bf16.mxu0 %v813_v5  ;;  %788 = vmatprep.subr.bf16.mxu1 %v813_v5 }
   0x5   :  { %40 = vst.msk [vmem:[#allocation3 + $0x38] sm:$0xff] %vm1351_vm0, %v885_v11  ;;  %41 = vst.msk [vmem:[#allocation3 + $0x40] sm:$0xff] %vm1351_vm0, %v885_v11  ;;  %v960_v12 = vadd.s32 24, %v922_v3  ;;  %v970_v16 = vadd.s32 32, %v922_v3  ;;  %v973_v17 = vadd.s32 40, %v922_v3  ;;  %v976_v18 = vadd.s32 48, %v922_v3 }
   0x6   :  { %v965_v14 = vrot.slane %v63_v2, %v66_v7  ;;  %v967_v15 = vrot.slane %v63_v2, %v70_v8  ;;  %v979_v19 = vadd.s32 56, %v922_v3  ;;  %v816_v20 = vld [vmem:[%s1346_s0 + $0x28] sm:$0xff]   ;;  %v818_v32 = vld [vmem:[%s1346_s0 + $0x20] sm:$0xff]   ;;  %v819_v33 = vld [vmem:[%s1346_s0 + $0x58] sm:$0xff]   ;;  %v1060_v38 = vadd.s32 64, %v922_v3 }
   0x7   :  { %744 = vmatpush3.bf16.msra.mxu0 %v814_v10  ;;  %796 = vmatpush3.bf16.msra.mxu1 %v814_v10  ;;  %v820_v41 = vld [vmem:[%s1346_s0 + $0x18] sm:$0xff]   ;;  %v821_v43 = vld [vmem:[%s1346_s0 + $0x50] sm:$0xff]   ;;  %v823_v54 = vld [vmem:[%s1346_s0 + $0x48] sm:$0xff]  }
   0x8   :  { %vm72_vm1 = vcmp.eq.s32.totalorder %v922_v3, %v965_v14  ;;  %vm73_vm2 = vcmp.eq.s32.totalorder %v922_v3, %v967_v15  ;;  %vm74_vm3 = vcmp.eq.s32.totalorder %v931_v6, %v965_v14  ;;  %vm76_vm4 = vcmp.eq.s32.totalorder %v936_v9, %v965_v14  ;;  %745 = vmatprep.subr.bf16.mxu0 %v815_v13  ;;  %v822_v50 = vld [vmem:[%s1346_s0 + $0x10] sm:$0xff]  }
   0x9   :  { %v669_v21 = vsel %vm72_vm1, 1.0, %v885_v11  ;;  %v670_v22 = vsel %vm73_vm2, 1.0, %v885_v11  ;;  %vm77_vm5 = vcmp.eq.s32.totalorder %v936_v9, %v967_v15  ;;  %vm78_vm6 = vcmp.eq.s32.totalorder %v960_v12, %v965_v14  ;;  %789 = vmatprep.subr.bf16.mxu1 %v815_v13 }
   0xa   :  { %v373_v24 = vadd.f32 %v670_v22, %v669_v21  ;;  %vm79_vm7 = vcmp.eq.s32.totalorder %v960_v12, %v967_v15  ;;  %v673_v25 = vsel %vm76_vm4, 1.0, %v885_v11  ;;  %v674_v26 = vsel %vm77_vm5, 1.0, %v885_v11 }
   0xb   :  { %v379_v27 = vadd.f32 %v674_v26, %v673_v25  ;;  %vm75_vm8 = vcmp.eq.s32.totalorder %v931_v6, %v967_v15  ;;  %v671_v28 = vsel %vm74_vm3, 1.0, %v885_v11  ;;  %v675_v29 = vsel %vm78_vm6, 1.0, %v885_v11  ;;  %746 = vmatpush3.bf16.msra.mxu0 %v816_v20  ;;  %797 = vmatpush3.bf16.msra.mxu1 %v816_v20 }
   0xc   :  { %374 = vadd.xlane.f32.xlu0 %v373_v24  ;;  %v672_v30 = vsel %vm75_vm8, 1.0, %v885_v11  ;;  %v676_v31 = vsel %vm79_vm7, 1.0, %v885_v11  ;;  %vm1353_vm9 = vcmp.eq.s32.totalorder %v970_v16, %v965_v14  ;;  %vm1355_vm10 = vcmp.eq.s32.totalorder %v970_v16, %v967_v15  ;;  %747 = vmatprep.subr.bf16.mxu0 %v817_v23 }
   0xd   :  { %380 = vadd.xlane.f32.xlu1 %v379_v27  ;;  %v376_v34 = vadd.f32 %v672_v30, %v671_v28  ;;  %v382_v35 = vadd.f32 %v676_v31, %v675_v29  ;;  %v677_v36 = vsel %vm1353_vm9, 1.0, %v885_v11  ;;  %v678_v37 = vsel %vm1355_vm10, 1.0, %v885_v11  ;;  %790 = vmatprep.subr.bf16.mxu1 %v817_v23 }
   0xe   :  { %vm1352_vm11 = vcmp.eq.s32.totalorder %v973_v17, %v965_v14  ;;  %vm1354_vm12 = vcmp.eq.s32.totalorder %v973_v17, %v967_v15  ;;  %vm84_vm13 = vcmp.eq.s32.totalorder %v976_v18, %v965_v14  ;;  %vm85_vm14 = vcmp.eq.s32.totalorder %v976_v18, %v967_v15 }
   0xf   :  { %v679_v39 = vsel %vm1352_vm11, 1.0, %v885_v11  ;;  %v680_v40 = vsel %vm1354_vm12, 1.0, %v885_v11  ;;  %v385_v42 = vadd.f32 %v678_v37, %v677_v36  ;;  %vm86_vm15 = vcmp.eq.s32.totalorder %v979_v19, %v965_v14  ;;  %748 = vmatpush3.bf16.msra.mxu0 %v818_v32  ;;  %798 = vmatpush3.bf16.msra.mxu1 %v818_v32  ;;  %vm703_vm12 = vmpackc.low %vm75_vm8, %vm73_vm2 }
  0x10   :  { %377 = vadd.xlane.f32.xlu0 %v376_v34  ;;  %vm87_vm0 = vcmp.eq.s32.totalorder %v979_v19, %v967_v15  ;;  %v388_v44 = vadd.f32 %v680_v40, %v679_v39  ;;  %v681_v45 = vsel %vm84_vm13, 1.0, %v885_v11  ;;  %v682_v46 = vsel %vm85_vm14, 1.0, %v885_v11  ;;  %749 = vmatprep.subr.bf16.mxu0 %v819_v33 }
  0x11   :  { %383 = vadd.xlane.f32.xlu1 %v382_v35  ;;  %v683_v47 = vsel %vm86_vm15, 1.0, %v885_v11  ;;  %v684_v48 = vsel %vm87_vm0, 1.0, %v885_v11  ;;  %vm88_vm11 = vcmp.eq.s32.totalorder %v1060_v38, %v965_v14  ;;  %vm89_vm9 = vcmp.eq.s32.totalorder %v1060_v38, %v967_v15  ;;  %791 = vmatprep.subr.bf16.mxu1 %v819_v33  ;;  %vm715_vm10 = vmpackc.low %vm87_vm0, %vm85_vm14 }
  0x12   :  { %v391_v49 = vadd.f32 %v682_v46, %v681_v45  ;;  %v394_v51 = vadd.f32 %v684_v48, %v683_v47  ;;  %v685_v52 = vsel %vm88_vm11, 1.0, %v885_v11  ;;  %v686_v53 = vsel %vm89_vm9, 1.0, %v885_v11  ;;  %704 = vmatprep.mubr.msk.bf16.mxu0 %vm703_vm12, %v886_v55  ;;  %716 = vmatprep.mubr.msk.bf16.mxu1 %vm715_vm10, %v886_v55 }
  0x13   :  { %750 = vmatpush3.bf16.msra.mxu0 %v820_v41  ;;  %799 = vmatpush3.bf16.msra.mxu1 %v820_v41 }
  0x14   :  { %386 = vadd.xlane.f32.xlu0 %v385_v42  ;;  %751 = vmatprep.subr.bf16.mxu0 %v821_v43 }
  0x15   :  { %389 = vadd.xlane.f32.xlu1 %v388_v44  ;;  %792 = vmatprep.subr.bf16.mxu1 %v821_v43 }
  0x16   :  { %10 = vsyncpa [#allocation5], 0  ;;  %v397_v56 = vadd.f32 %v686_v53, %v685_v52  ;;  %v824_v57 = vld [vmem:[%s1346_s0 + $0x8] sm:$0xff]   ;;  %v825_v58 = vld [vmem:[%s1346_s0 + $0x40] sm:$0xff]   ;;  %v887_v60 = vmov 0   ;;  %vm1358_vm12 = vcmp.eq.s32.totalorder %v970_v16, %v965_v14  ;;  %s888_s24 = smov [#allocation4]  }
  0x17   :  { %752 = vmatpush3.bf16.msra.mxu0 %v822_v50  ;;  %800 = vmatpush3.bf16.msra.mxu1 %v822_v50  ;;  %v826_v59 = vld [vmem:[%s1346_s0] sm:$0xff]   ;;  %vm705_vm0 = vmpackc.low %vm74_vm3, %vm72_vm1  ;;  %v364_v61 = vld [vmem:[#allocation3] sm:$0xff]  ;;  %s654_s25 = sshll.u32 %s888_s24, 4  ;;  %s655_s25 = int_to_ptr.vmem [resolvable:$true] %s654_s25 }
  0x18   :  { %392 = vadd.xlane.f32.xlu0 %v391_v49  ;;  %753 = vmatprep.subr.bf16.mxu0 %v823_v54  ;;  %vm707_vm2 = vmpackc.low %vm79_vm7, %vm77_vm5  ;;  %vm1356_vm5 = vcmp.eq.s32.totalorder %v970_v16, %v967_v15  ;;  %vm1357_vm7 = vcmp.eq.s32.totalorder %v973_v17, %v967_v15  ;;  %v366_v62 = vld [vmem:[#allocation3 + $0x10] sm:$0xff]  ;;  %v365_v3 = vld [vmem:[#allocation3 + $0x8] sm:$0xff]  ;;  %p868_p1 = scmp.lt.s32.totalorder %s655_s25, %s655_s25 }
  0x19   :  { %395 = vadd.xlane.f32.xlu1 %v394_v51  ;;  %793 = vmatprep.subr.bf16.mxu1 %v823_v54  ;;  %vm717_vm8 = vmpackc.low %vm86_vm15, %vm84_vm13  ;;  %vm22_vm13 = vcmask 261120   ;;  %v367_v4 = vld [vmem:[#allocation3 + $0x18] sm:$0xff]  ;;  %v368_v9 = vld [vmem:[#allocation3 + $0x20] sm:$0xff] }
  0x1a   :  { %vm719_vm1 = vmpackc.low %vm89_vm9, %vm89_vm9  ;;  %809 = vset.pattern.permute.xlu1 %v887_v60  ;;  %810 = vset.pattern.permute.xlu0 %v887_v60  ;;  %23 = vst.msk [vmem:[#allocation2] sm:$0xff] %vm22_vm13, %v885_v11  ;;  %v369_v10 = vld [vmem:[#allocation3 + $0x28] sm:$0xff]  ;;  %v370_v15 = vld [vmem:[#allocation3 + $0x30] sm:$0xff] }
  0x1b   :  { %754 = vmatpush3.bf16.msra.mxu0 %v824_v57  ;;  %801 = vmatpush3.bf16.msra.mxu1 %v824_v57  ;;  %vm709_vm3 = vmpackc.low %vm78_vm6, %vm76_vm4  ;;  %vm1359_vm4 = vcmp.eq.s32.totalorder %v973_v17, %v965_v14  ;;  %24 = vst.msk [vmem:[#allocation2 + $0x8] sm:$0xff] %vm22_vm13, %v885_v11  ;;  %v371_v17 = vld [vmem:[#allocation3 + $0x38] sm:$0xff]  ;;  %v372_v25 = vld [vmem:[#allocation3 + $0x40] sm:$0xff] }
  0x1c   :  { %398 = vadd.xlane.f32.xlu0 %v397_v56  ;;  %755 = vmatprep.subr.bf16.mxu0 %v825_v58  ;;  %vm711_vm9 = vmpackc.low %vm1357_vm7, %vm1356_vm5  ;;  %25 = vst.msk [vmem:[#allocation2 + $0x10] sm:$0xff] %vm22_vm13, %v885_v11  ;;  %vm612_vm7 = vcmask 257024  }
  0x1d   :  { %794 = vmatprep.subr.bf16.mxu1 %v825_v58  ;;  %vm721_vm10 = vmpackc.low %vm88_vm11, %vm88_vm11  ;;  %26 = vst.msk [vmem:[#allocation2 + $0x18] sm:$0xff] %vm22_vm13, %v885_v11  ;;  %vm1360_vm11 = vcmask 7168  }
  0x1e   :  { %vm713_vm6 = vmpackc.low %vm1359_vm4, %vm1358_vm12  ;;  %27 = vst.msk [vmem:[#allocation2 + $0x20] sm:$0xff] %vm22_vm13, %v885_v11 }
  0x1f   :  { %756 = vmatpush3.bf16.msra.mxu0 %v826_v59  ;;  %802 = vmatpush3.bf16.msra.mxu1 %v826_v59  ;;  %28 = vst.msk [vmem:[#allocation2 + $0x28] sm:$0xff] %vm22_vm13, %v885_v11  ;;  %29 = vst.msk [vmem:[#allocation2 + $0x30] sm:$0xff] %vm22_vm13, %v885_v11 }
  0x20   :  { %30 = vst.msk [vmem:[#allocation2 + $0x38] sm:$0xff] %vm22_vm13, %v885_v11  ;;  %31 = vst.msk [vmem:[#allocation2 + $0x40] sm:$0xff] %vm22_vm13, %v885_v11 }
  0x21   :  { %vm1361_vm14 = vmmov %vm1360_vm11  ;;  %v90_v52 = vld [vmem:[#allocation2] sm:$0xff] }
  0x22   :  { %706 = vmatmul.mubr.msk.bf16.vlgmr.msra.gmra.mxu0 %vm705_vm0, %v886_v55  ;;  %718 = vmatmul.mubr.msk.bf16.vlgmr.msra.gmra.mxu1 %vm717_vm8, %v886_v55  ;;  %vm1362_vm15 = vmmov %vm1360_vm11 }
  0x23   :  { %708 = vmatprep.mubr.msk.bf16.mxu0 %vm707_vm2, %v886_v55  ;;  %720 = vmatprep.mubr.msk.bf16.mxu1 %vm719_vm1, %v886_v55  ;;  %vm1363_vm0 = vmmov %vm1360_vm11 }
  0x24   :  { %vm1364_vm2 = vmmov %vm1363_vm0 }
  0x25   :  { %vm1365_vm8 = vmmov %vm1363_vm0 }
  0x26   :  { %vm1366_vm1 = vmmov %vm1363_vm0  ;;  %v96_v57 = vld [vmem:[#allocation2 + $0x30] sm:$0xff] }
  0x27   :  { %vm1368_vm5 = vmmov %vm1363_vm0 }
  0x2a   :  { %710 = vmatmul.mubr.msk.bf16.gmra.mxu0 %vm709_vm3, %v886_v55  ;;  %722 = vmatmul.mubr.msk.bf16.gmra.mxu1 %vm721_vm10, %v886_v55  ;;  %vm1367_vm3 = vmmov %vm1363_vm0 }
  0x2b   :  { %712 = vmatprep.mubr.msk.bf16.mxu0 %vm711_vm9, %v886_v55 }
  0x32   :  { %714 = vmatmul.mubr.msk.bf16.gmra.mxu0 %vm713_vm6, %v886_v55 }
  0x95   :  { %v375_v63 = vpop.xlane.xlu0 %374 }
  0x96   :  { %v400_v0 = vadd.f32 %v375_v63, %v364_v61  ;;  %v381_v1 = vpop.xlane.xlu1 %380  ;;  %v91_v61 = vld [vmem:[#allocation2 + $0x8] sm:$0xff] }
  0x97   :  { %v402_v2 = vadd.f32 %v381_v1, %v366_v62 }
  0x98   :  { %410 = vst.msk [vmem:[#allocation3] sm:$0xff] %vm1360_vm11, %v400_v0 }
  0x99   :  { %412 = vst.msk [vmem:[#allocation3 + $0x10] sm:$0xff] %vm1361_vm14, %v402_v2  ;;  %v378_v5 = vpop.xlane.xlu0 %377 }
  0x9a   :  { %v401_v6 = vadd.f32 %v378_v5, %v365_v3  ;;  %v384_v7 = vpop.xlane.xlu1 %383  ;;  %v97_v3 = vld [vmem:[#allocation2 + $0x38] sm:$0xff] }
  0x9b   :  { %v403_v8 = vadd.f32 %v384_v7, %v367_v4  ;;  %v92_v7 = vld [vmem:[#allocation2 + $0x10] sm:$0xff] }
  0x9c   :  { %411 = vst.msk [vmem:[#allocation3 + $0x8] sm:$0xff] %vm1362_vm15, %v401_v6 }
  0x9d   :  { %413 = vst.msk [vmem:[#allocation3 + $0x18] sm:$0xff] %vm1363_vm0, %v403_v8  ;;  %v387_v11 = vpop.xlane.xlu0 %386 }
  0x9e   :  { %v404_v12 = vadd.f32 %v387_v11, %v368_v9  ;;  %v390_v13 = vpop.xlane.xlu1 %389 }
  0x9f   :  { %v405_v14 = vadd.f32 %v390_v13, %v369_v10  ;;  %v431_v16 = vld [vmem:[#allocation3] sm:$0xff]  ;;  %v98_v13 = vld [vmem:[#allocation2 + $0x40] sm:$0xff] }
  0xa0   :  { %414 = vst.msk [vmem:[#allocation3 + $0x20] sm:$0xff] %vm1364_vm2, %v404_v12  ;;  %v440_v18 = vmax.f32 %v431_v16, 1.0  ;;  %v433_v19 = vld [vmem:[#allocation3 + $0x10] sm:$0xff] }
  0xa1   :  { %415 = vst.msk [vmem:[#allocation3 + $0x28] sm:$0xff] %vm1365_vm8, %v405_v14  ;;  %v393_v20 = vpop.xlane.xlu0 %392  ;;  %v442_v21 = vmax.f32 %v433_v19, 1.0 }
  0xa2   :  { %v406_v22 = vadd.f32 %v393_v20, %v370_v15  ;;  %v396_v23 = vpop.xlane.xlu1 %395  ;;  %827 = vrcp.f32 %v440_v18 }
  0xa3   :  { %v407_v24 = vadd.f32 %v396_v23, %v371_v17  ;;  %v432_v26 = vld [vmem:[#allocation3 + $0x8] sm:$0xff]  ;;  %829 = vrcp.f32 %v442_v21  ;;  %v93_v17 = vld [vmem:[#allocation2 + $0x18] sm:$0xff] }
  0xa4   :  { %416 = vst.msk [vmem:[#allocation3 + $0x30] sm:$0xff] %vm1366_vm1, %v406_v22  ;;  %v441_v27 = vmax.f32 %v432_v26, 1.0  ;;  %v434_v28 = vld [vmem:[#allocation3 + $0x18] sm:$0xff] }
  0xa5   :  { %417 = vst.msk [vmem:[#allocation3 + $0x38] sm:$0xff] %vm1367_vm3, %v407_v24  ;;  %v399_v29 = vpop.xlane.xlu0 %398  ;;  %v443_v30 = vmax.f32 %v434_v28, 1.0 }
  0xa6   :  { %v408_v31 = vadd.f32 %v399_v29, %v372_v25  ;;  %831 = vrcp.f32 %v441_v27  ;;  %v94_v25 = vld [vmem:[#allocation2 + $0x20] sm:$0xff] }
  0xa7   :  { %v435_v32 = vld [vmem:[#allocation3 + $0x20] sm:$0xff]  ;;  %833 = vrcp.f32 %v443_v30 }
  0xa8   :  { %418 = vst.msk [vmem:[#allocation3 + $0x40] sm:$0xff] %vm1368_vm5, %v408_v31  ;;  %v444_v33 = vmax.f32 %v435_v32, 1.0  ;;  %v436_v34 = vld [vmem:[#allocation3 + $0x28] sm:$0xff]  ;;  %v95_v30 = vld [vmem:[#allocation2 + $0x28] sm:$0xff] }
  0xa9   :  { %v445_v35 = vmax.f32 %v436_v34, 1.0 }
  0xaa   :  { %835 = vrcp.f32 %v444_v33 }
  0xab   :  { %v437_v36 = vld [vmem:[#allocation3 + $0x30] sm:$0xff]  ;;  %837 = vrcp.f32 %v445_v35 }
  0xac   :  { %v446_v38 = vmax.f32 %v437_v36, 1.0  ;;  %v438_v40 = vld [vmem:[#allocation3 + $0x38] sm:$0xff] }
  0xad   :  { %v447_v42 = vmax.f32 %v438_v40, 1.0 }
  0xae   :  { %839 = vrcp.f32 %v446_v38 }
  0xaf   :  { %v828_v37 = vpop.eup %827  ;;  %v439_v44 = vld [vmem:[#allocation3 + $0x40] sm:$0xff]  ;;  %841 = vrcp.f32 %v447_v42 }
  0xb0   :  { %460 = vperm.xlu1 %809, %v828_v37   ;;  %v830_v39 = vpop.eup %829  ;;  %v448_v45 = vmax.f32 %v439_v44, 1.0 }
  0xb2   :  { %843 = vrcp.f32 %v448_v45 }
  0xb3   :  { %v832_v41 = vpop.eup %831 }
  0xb4   :  { %465 = vperm.xlu0 %810, %v832_v41   ;;  %470 = vperm.xlu1 %809, %v830_v39   ;;  %v834_v43 = vpop.eup %833 }
  0xb7   :  { %v836_v46 = vpop.eup %835 }
  0xb8   :  { %475 = vperm.xlu1 %809, %v834_v43   ;;  %v838_v47 = vpop.eup %837 }
  0xbb   :  { %v840_v48 = vpop.eup %839 }
  0xbc   :  { %480 = vperm.xlu1 %809, %v836_v46   ;;  %v842_v49 = vpop.eup %841 }
  0xbf   :  { %v844_v50 = vpop.eup %843 }
  0xc0   :  { %485 = vperm.xlu1 %809, %v838_v47  }
  0xc4   :  { %490 = vperm.xlu1 %809, %v840_v48  }
  0xc8   :  { %495 = vperm.xlu1 %809, %v842_v49  }
  0xcc   :  { %500 = vperm.xlu1 %809, %v844_v50  }
  0xe2   :  { %v757_v51 = vpop.f32.mrf.mxu0  ;;  %v775_v54 = vpop.f32.mrf.mxu1 }
  0xe4   :  { %v758_v53 = vpop.f32.mrf.mxu0  ;;  %v776_v58 = vpop.f32.mrf.mxu1 }
  0xe5   :  { %v759_v55 = vadd.f32 %v758_v53, %v757_v51  ;;  %v777_v60 = vadd.f32 %v776_v58, %v775_v54 }
  0xe6   :  { %v760_v56 = vpop.f32.mrf.mxu0  ;;  %v778_v63 = vpop.f32.mrf.mxu1 }
  0xe7   :  { %v345_v59 = vadd.f32 %v759_v55, %v90_v52  ;;  %v351_v1 = vadd.f32 %v777_v60, %v96_v57 }
  0xe8   :  { %v761_v62 = vpop.f32.mrf.mxu0  ;;  %v779_v4 = vpop.f32.mrf.mxu1 }
  0xe9   :  { %355 = vst.msk [vmem:[#allocation2] sm:$0xff] %vm22_vm13, %v345_v59  ;;  %v762_v0 = vadd.f32 %v761_v62, %v760_v56  ;;  %361 = vst.msk [vmem:[#allocation2 + $0x30] sm:$0xff] %vm22_vm13, %v351_v1  ;;  %v780_v6 = vadd.f32 %v779_v4, %v778_v63 }
  0xea   :  { %v763_v2 = vpop.f32.mrf.mxu0  ;;  %v781_v9 = vpop.f32.mrf.mxu1 }
  0xeb   :  { %v346_v5 = vadd.f32 %v762_v0, %v91_v61  ;;  %v352_v11 = vadd.f32 %v780_v6, %v97_v3 }
  0xec   :  { %v764_v8 = vpop.f32.mrf.mxu0  ;;  %v782_v14 = vpop.f32.mrf.mxu1 }
  0xed   :  { %356 = vst.msk [vmem:[#allocation2 + $0x8] sm:$0xff] %vm22_vm13, %v346_v5  ;;  %v765_v10 = vadd.f32 %v764_v8, %v763_v2  ;;  %362 = vst.msk [vmem:[#allocation2 + $0x38] sm:$0xff] %vm22_vm13, %v352_v11  ;;  %v783_v16 = vadd.f32 %v782_v14, %v781_v9 }
  0xee   :  { %v766_v12 = vpop.f32.mrf.mxu0  ;;  %v784_v19 = vpop.f32.mrf.mxu1 }
  0xef   :  { %v347_v15 = vadd.f32 %v765_v10, %v92_v7  ;;  %v353_v21 = vadd.f32 %v783_v16, %v98_v13 }
  0xf0   :  { %v767_v18 = vpop.f32.mrf.mxu0  ;;  %v785_v23 = vpop.f32.mrf.mxu1  ;;  %v422_v34 = vld [vmem:[#allocation2] sm:$0xff]  ;;  %v428_v0 = vld [vmem:[#allocation2 + $0x30] sm:$0xff] }
  0xf1   :  { %357 = vst.msk [vmem:[#allocation2 + $0x10] sm:$0xff] %vm22_vm13, %v347_v15  ;;  %v768_v20 = vadd.f32 %v767_v18, %v766_v12  ;;  %363 = vst.msk [vmem:[#allocation2 + $0x40] sm:$0xff] %vm22_vm13, %v353_v21 }
  0xf2   :  { %v769_v22 = vpop.f32.mrf.mxu0 }
  0xf3   :  { %v348_v24 = vadd.f32 %v768_v20, %v93_v17 }
  0xf4   :  { %v770_v26 = vpop.f32.mrf.mxu0  ;;  %v423_v40 = vld [vmem:[#allocation2 + $0x8] sm:$0xff]  ;;  %v429_v5 = vld [vmem:[#allocation2 + $0x38] sm:$0xff] }
  0xf5   :  { %358 = vst.msk [vmem:[#allocation2 + $0x18] sm:$0xff] %vm22_vm13, %v348_v24  ;;  %v771_v27 = vadd.f32 %v770_v26, %v769_v22  ;;  %v622_v26 = vld [vmem:[%s1348_s2] sm:$0xff] }
  0xf6   :  { %v772_v28 = vpop.f32.mrf.mxu0 }
  0xf7   :  { %v349_v29 = vadd.f32 %v771_v27, %v94_v25 }
  0xf8   :  { %v773_v31 = vpop.f32.mrf.mxu0  ;;  %v424_v37 = vld [vmem:[#allocation2 + $0x10] sm:$0xff]  ;;  %v430_v10 = vld [vmem:[#allocation2 + $0x40] sm:$0xff] }
  0xf9   :  { %359 = vst.msk [vmem:[#allocation2 + $0x20] sm:$0xff] %vm22_vm13, %v349_v29  ;;  %v774_v32 = vadd.f32 %v773_v31, %v772_v28 }
  0xfb   :  { %v350_v33 = vadd.f32 %v774_v32, %v95_v30 }
  0xfc   :  { %v425_v45 = vld [vmem:[#allocation2 + $0x18] sm:$0xff] }
  0xfd   :  { %360 = vst.msk [vmem:[#allocation2 + $0x28] sm:$0xff] %vm22_vm13, %v350_v33  ;;  %v623_v33 = vld [vmem:[%s1348_s2 + $0x8] sm:$0xff] }
 0x100   :  { %v426_v51 = vld [vmem:[#allocation2 + $0x20] sm:$0xff] }
 0x104   :  { %v427_v57 = vld [vmem:[#allocation2 + $0x28] sm:$0xff] }
 0x12b   :  { %v461_v35 = vpop.permute.xlu1 %460 }
 0x12c   :  { %v1217_v36 = vmul.f32 %v461_v35, %v422_v34 }
 0x12e   :  { %v512_v38 = vmul.f32 %v1217_v36, %v1217_v36 }
 0x12f   :  { %v466_v39 = vpop.permute.xlu0 %465  ;;  %v471_v41 = vpop.permute.xlu1 %470 }
 0x130   :  { %v1221_v42 = vmul.f32 %v466_v39, %v423_v40  ;;  %v1223_v43 = vmul.f32 %v471_v41, %v424_v37  ;;  %v521_v44 = vsel %vm22_vm13, %v512_v38, 0.0 }
 0x131   :  { %522 = vadd.xlane.f32.xlu1 %v521_v44 }
 0x132   :  { %v513_v46 = vmul.f32 %v1221_v42, %v1221_v42  ;;  %v514_v50 = vmul.f32 %v1223_v43, %v1223_v43 }
 0x133   :  { %v476_v47 = vpop.permute.xlu1 %475 }
 0x134   :  { %v1228_v48 = vmul.f32 %v476_v47, %v425_v45  ;;  %v524_v49 = vsel %vm22_vm13, %v513_v46, 0.0  ;;  %v527_v55 = vsel %vm22_vm13, %v514_v50, 0.0 }
 0x135   :  { %525 = vadd.xlane.f32.xlu0 %v524_v49 }
 0x136   :  { %v515_v52 = vmul.f32 %v1228_v48, %v1228_v48 }
 0x137   :  { %v481_v53 = vpop.permute.xlu1 %480 }
 0x138   :  { %v1235_v54 = vmul.f32 %v481_v53, %v426_v51  ;;  %v530_v56 = vsel %vm22_vm13, %v515_v52, 0.0 }
 0x139   :  { %528 = vadd.xlane.f32.xlu0 %v527_v55  ;;  %531 = vadd.xlane.f32.xlu1 %v530_v56 }
 0x13a   :  { %v516_v58 = vmul.f32 %v1235_v54, %v1235_v54 }
 0x13b   :  { %v486_v59 = vpop.permute.xlu1 %485 }
 0x13c   :  { %v1241_v60 = vmul.f32 %v486_v59, %v427_v57  ;;  %v533_v61 = vsel %vm22_vm13, %v516_v58, 0.0 }
 0x13d   :  { %534 = vadd.xlane.f32.xlu0 %v533_v61 }
 0x13e   :  { %v517_v62 = vmul.f32 %v1241_v60, %v1241_v60 }
 0x13f   :  { %v491_v63 = vpop.permute.xlu1 %490 }
 0x140   :  { %v1246_v1 = vmul.f32 %v491_v63, %v428_v0  ;;  %v536_v2 = vsel %vm22_vm13, %v517_v62, 0.0 }
 0x141   :  { %537 = vadd.xlane.f32.xlu1 %v536_v2 }
 0x142   :  { %v518_v3 = vmul.f32 %v1246_v1, %v1246_v1 }
 0x143   :  { %v496_v4 = vpop.permute.xlu1 %495 }
 0x144   :  { %v1251_v6 = vmul.f32 %v496_v4, %v429_v5  ;;  %v539_v7 = vsel %vm22_vm13, %v518_v3, 0.0 }
 0x145   :  { %540 = vadd.xlane.f32.xlu0 %v539_v7 }
 0x146   :  { %v519_v8 = vmul.f32 %v1251_v6, %v1251_v6 }
 0x147   :  { %v501_v9 = vpop.permute.xlu1 %500 }
 0x148   :  { %v1256_v11 = vmul.f32 %v501_v9, %v430_v10  ;;  %v542_v12 = vsel %vm22_vm13, %v519_v8, 0.0 }
 0x149   :  { %543 = vadd.xlane.f32.xlu1 %v542_v12 }
 0x14a   :  { %v520_v13 = vmul.f32 %v1256_v11, %v1256_v11 }
 0x14c   :  { %v545_v14 = vsel %vm22_vm13, %v520_v13, 0.0 }
 0x14d   :  { %546 = vadd.xlane.f32.xlu0 %v545_v14 }
 0x1ba   :  { %v523_v15 = vpop.xlane.xlu1 %522 }
 0x1bb   :  { %v548_v16 = vmax.f32 %v523_v15, 1e-24 }
 0x1bd   :  { %845 = vrsqrt.f32 %v548_v16 }
 0x1be   :  { %v526_v17 = vpop.xlane.xlu0 %525 }
 0x1bf   :  { %v549_v18 = vmax.f32 %v526_v17, 1e-24 }
 0x1c1   :  { %847 = vrsqrt.f32 %v549_v18 }
 0x1c2   :  { %v529_v19 = vpop.xlane.xlu0 %528  ;;  %v532_v20 = vpop.xlane.xlu1 %531 }
 0x1c3   :  { %v550_v21 = vmax.f32 %v529_v19, 1e-24  ;;  %v551_v22 = vmax.f32 %v532_v20, 1e-24 }
 0x1c5   :  { %849 = vrsqrt.f32 %v550_v21 }
 0x1c6   :  { %851 = vrsqrt.f32 %v551_v22  ;;  %v535_v23 = vpop.xlane.xlu0 %534 }
 0x1c7   :  { %v552_v24 = vmax.f32 %v535_v23, 1e-24 }
 0x1c9   :  { %853 = vrsqrt.f32 %v552_v24 }
 0x1ca   :  { %v846_v25 = vpop.eup %845  ;;  %v538_v27 = vpop.xlane.xlu1 %537 }
 0x1cb   :  { %v566_v28 = vmul.f32 %v846_v25, %v1217_v36  ;;  %v553_v29 = vmax.f32 %v538_v27, 1e-24 }
 0x1cd   :  { %v732_v30 = vpack.c.bf16 %v566_v28, %v566_v28  ;;  %v631_v31 = vadd.f32 %v622_v26, %v566_v28  ;;  %855 = vrsqrt.f32 %v553_v29 }
 0x1ce   :  { %v848_v32 = vpop.eup %847  ;;  %v541_v34 = vpop.xlane.xlu0 %540 }
 0x1cf   :  { %613 = vst.msk [vmem:[#allocation4] sm:$0xf] %vm612_vm7, %v732_v30  ;;  %v567_v35 = vmul.f32 %v848_v32, %v1221_v42  ;;  %v554_v36 = vmax.f32 %v541_v34, 1e-24 }
 0x1d0   :  { %640 = vst.msk [vmem:[%s1350_s4] sm:$0xff] %vm22_vm13, %v631_v31 }
 0x1d1   :  { %v733_v37 = vpack.c.bf16 %v567_v35, %v567_v35  ;;  %v632_v38 = vadd.f32 %v623_v33, %v567_v35  ;;  %857 = vrsqrt.f32 %v554_v36 }
 0x1d2   :  { %v850_v39 = vpop.eup %849  ;;  %v544_v41 = vpop.xlane.xlu1 %543 }
 0x1d3   :  { %v852_v44 = vpop.eup %851  ;;  %614 = vst.msk [vmem:[#allocation4 + $0x4] sm:$0xf] %vm612_vm7, %v733_v37  ;;  %v568_v42 = vmul.f32 %v850_v39, %v1223_v43  ;;  %v555_v46 = vmax.f32 %v544_v41, 1e-24 }
 0x1d4   :  { %v569_v47 = vmul.f32 %v852_v44, %v1228_v48 }
 0x1d5   :  { %v734_v49 = vpack.c.bf16 %v568_v42, %v568_v42  ;;  %859 = vrsqrt.f32 %v555_v46 }
 0x1d6   :  { %v854_v51 = vpop.eup %853  ;;  %v735_v52 = vpack.c.bf16 %v569_v47, %v569_v47  ;;  %v547_v56 = vpop.xlane.xlu0 %546 }
 0x1d7   :  { %v624_v40 = vld [vmem:[%s1348_s2 + $0x10] sm:$0xff]  ;;  %615 = vst.msk [vmem:[#allocation4 + $0x8] sm:$0xf] %vm612_vm7, %v734_v49  ;;  %v570_v43 = vmul.f32 %v854_v51, %v1235_v54  ;;  %v556_v48 = vmax.f32 %v547_v56, 1e-24 }
 0x1d8   :  { %641 = vst.msk [vmem:[%s1350_s4 + $0x8] sm:$0xff] %vm22_vm13, %v632_v38  ;;  %v633_v50 = vadd.f32 %v624_v40, %v568_v42 }
 0x1d9   :  { %616 = vst.msk [vmem:[#allocation4 + $0xc] sm:$0xf] %vm612_vm7, %v735_v52  ;;  %v736_v57 = vpack.c.bf16 %v570_v43, %v570_v43  ;;  %861 = vrsqrt.f32 %v556_v48 }
 0x1da   :  { %v856_v59 = vpop.eup %855 }
 0x1db   :  { %617 = vst.msk [vmem:[#allocation4 + $0x10] sm:$0xf] %vm612_vm7, %v736_v57  ;;  %v571_v54 = vmul.f32 %v856_v59, %v1241_v60 }
 0x1dd   :  { %v737_v62 = vpack.c.bf16 %v571_v54, %v571_v54 }
 0x1de   :  { %v858_v0 = vpop.eup %857 }
 0x1df   :  { %v625_v45 = vld [vmem:[%s1348_s2 + $0x18] sm:$0xff]  ;;  %v626_v55 = vld [vmem:[%s1348_s2 + $0x20] sm:$0xff]  ;;  %618 = vst.msk [vmem:[#allocation4 + $0x14] sm:$0xf] %vm612_vm7, %v737_v62  ;;  %v572_v3 = vmul.f32 %v858_v0, %v1246_v1 }
 0x1e0   :  { %v634_v53 = vadd.f32 %v625_v45, %v569_v47  ;;  %642 = vst.msk [vmem:[%s1350_s4 + $0x10] sm:$0xff] %vm22_vm13, %v633_v50  ;;  %v635_v58 = vadd.f32 %v626_v55, %v570_v43 }
 0x1e1   :  { %v738_v4 = vpack.c.bf16 %v572_v3, %v572_v3 }
 0x1e2   :  { %643 = vst.msk [vmem:[%s1350_s4 + $0x18] sm:$0xff] %vm22_vm13, %v634_v53  ;;  %v860_v7 = vpop.eup %859 }
 0x1e3   :  { %619 = vst.msk [vmem:[#allocation4 + $0x18] sm:$0xf] %vm612_vm7, %v738_v4  ;;  %v573_v8 = vmul.f32 %v860_v7, %v1251_v6 }
 0x1e5   :  { %v739_v9 = vpack.c.bf16 %v573_v8, %v573_v8 }
 0x1e6   :  { %v862_v12 = vpop.eup %861 }
 0x1e7   :  { %620 = vst.msk [vmem:[#allocation4 + $0x1c] sm:$0xf] %vm612_vm7, %v739_v9  ;;  %v574_v13 = vmul.f32 %v862_v12, %v1256_v11 }
 0x1e9   :  { %v627_v61 = vld [vmem:[%s1348_s2 + $0x28] sm:$0xff]  ;;  %v740_v14 = vpack.c.bf16 %v574_v13, %v574_v13 }
 0x1ea   :  { %644 = vst.msk [vmem:[%s1350_s4 + $0x20] sm:$0xff] %vm22_vm13, %v635_v58  ;;  %v636_v63 = vadd.f32 %v627_v61, %v571_v54 }
 0x1eb   :  { %621 = vst.msk [vmem:[#allocation4 + $0x20] sm:$0xf] %vm612_vm7, %v740_v14 }
 0x1f1   :  { %v628_v2 = vld [vmem:[%s1348_s2 + $0x30] sm:$0xff] }
 0x1f2   :  { %645 = vst.msk [vmem:[%s1350_s4 + $0x28] sm:$0xff] %vm22_vm13, %v636_v63  ;;  %v637_v5 = vadd.f32 %v628_v2, %v572_v3 }
 0x1f9   :  { %v629_v60 = vld [vmem:[%s1348_s2 + $0x38] sm:$0xff] }
 0x1fa   :  { %646 = vst.msk [vmem:[%s1350_s4 + $0x30] sm:$0xff] %vm22_vm13, %v637_v5  ;;  %v638_v10 = vadd.f32 %v629_v60, %v573_v8 }
 0x201   :  { %v630_v1 = vld [vmem:[%s1348_s2 + $0x40] sm:$0xff]  ;;  %s863_s2 = scalar_lea.vmem %s655_s25, 576 }
 0x202   :  { %647 = vst.msk [vmem:[%s1350_s4 + $0x38] sm:$0xff] %vm22_vm13, %v638_v10  ;;  %v639_v6 = vadd.f32 %v630_v1, %v574_v13  ;;  %p864_p0 = scmp.ne.s32.totalorder %s655_s25, %s863_s2  ;;  %p869_p2 = scmp.lt.s32.totalorder %s863_s2, %s863_s2 }
 0x204   :  { %648 = vst.msk [vmem:[%s1350_s4 + $0x40] sm:$0xff] %vm22_vm13, %v639_v6  ;;  %p870_p3 = por %p869_p2, %p868_p1 }
 0x206   :  { %p871_p4 = pnand %p870_p3, %p864_p0 }
 0x208   :  { %874 = shalt.err (!%p871_p4)
}
 0x209   :  { %s889_s30 = smov 64   ;;  %s890_s5 = smov 4  }
 0x20a   :  { %660 = dma.vmem_to_hbm [thread:$0]  %s655_s25, 576, %s1349_s3, [#allocation5], %s889_s30, %s889_s30, %s890_s5  }
 0x20b   :  { %883 = dma.done.wait [#allocation5], 576  }
 0x20c   :  { %884 = vsyncadd [#allocation5], 4294966720 }
 0x20d   :  { %668 = vsyncpa [#allocation5], 1 }

// kernel: recommender_forward.5
= control target key start
LH: loop header
LB: loop body
LE: loop exit
PB: predicated region body
PF: predicated region fallthrough
CT: control target
= control target key end

     0   :  { %v42_v0 = vlaneseq  ;;  %vm1344_vm0 = vcmask 7168   ;;  %v847_v2 = vmov 0.0   ;;  %v848_v42 = vmov 1.0|1.0   ;;  %s1339_s1 = inlined_call_operand.vmem [shape: s32[1,256], index: 1, kind: input, shape index: {}]   ;;  %s1340_s0 = inlined_call_operand.vmem [shape: bf16[256,32], index: 0, kind: input, shape index: {}]   ;;  %s1341_s2 = inlined_call_operand.vmem [shape: f32[72,32], index: 2, kind: input, shape index: {}, may-alias: {2,4}]   ;;  %s1342_s3 = inlined_call_operand.vmem [shape: bf16[72,32], index: 3, kind: output, shape index: {0}]   ;;  %s1343_s4 = inlined_call_operand.vmem [shape: f32[72,32], index: 4, kind: output, shape index: {1}, may-alias: {2,4}]  }
   0x1   :  { %v62_v1 = vld [vmem:[%s1339_s1] sm:$0x3]  ;;  %32 = vst.msk [vmem:[#allocation3] sm:$0xff] %vm1344_vm0, %v847_v2  ;;  %33 = vst.msk [vmem:[#allocation3 + $0x8] sm:$0xff] %vm1344_vm0, %v847_v2  ;;  %v795_v4 = vld [vmem:[%s1340_s0 + $0x78] sm:$0xff]   ;;  %v849_v60 = vmov 0  }
   0x2   :  { %34 = vst.msk [vmem:[#allocation3 + $0x10] sm:$0xff] %vm1344_vm0, %v847_v2  ;;  %35 = vst.msk [vmem:[#allocation3 + $0x18] sm:$0xff] %vm1344_vm0, %v847_v2  ;;  %v896_v3 = vshrl.u32 %v42_v0, 7  ;;  %v796_v5 = vld [vmem:[%s1340_s0 + $0x38] sm:$0xff]   ;;  %728 = vmatprep.subr.bf16.mxu0 %v795_v4  ;;  %v797_v10 = vld [vmem:[%s1340_s0 + $0x70] sm:$0xff]   ;;  %774 = vmatprep.subr.bf16.mxu1 %v795_v4 }
   0x3   :  { %36 = vst.msk [vmem:[#allocation3 + $0x20] sm:$0xff] %vm1344_vm0, %v847_v2  ;;  %37 = vst.msk [vmem:[#allocation3 + $0x28] sm:$0xff] %vm1344_vm0, %v847_v2  ;;  %729 = vmatpush3.bf16.msra.mxu0 %v796_v5  ;;  %v798_v13 = vld [vmem:[%s1340_s0 + $0x30] sm:$0xff]   ;;  %782 = vmatpush3.bf16.msra.mxu1 %v796_v5  ;;  %v799_v19 = vld [vmem:[%s1340_s0 + $0x68] sm:$0xff]  }
   0x4   :  { %38 = vst.msk [vmem:[#allocation3 + $0x30] sm:$0xff] %vm1344_vm0, %v847_v2  ;;  %39 = vst.msk [vmem:[#allocation3 + $0x38] sm:$0xff] %vm1344_vm0, %v847_v2  ;;  %v905_v6 = vadd.s32 8, %v896_v3  ;;  %v65_v7 = vsub.s32 0, %v896_v3  ;;  %v69_v8 = vsub.s32 1, %v896_v3  ;;  %v910_v9 = vadd.s32 16, %v896_v3  ;;  %730 = vmatprep.subr.bf16.mxu0 %v797_v10  ;;  %775 = vmatprep.subr.bf16.mxu1 %v797_v10 }
   0x5   :  { %40 = vst.msk [vmem:[#allocation3 + $0x40] sm:$0xff] %vm1344_vm0, %v847_v2  ;;  %v916_v11 = vadd.s32 24, %v896_v3  ;;  %v919_v12 = vadd.s32 32, %v896_v3  ;;  %v929_v16 = vadd.s32 40, %v896_v3  ;;  %v932_v17 = vadd.s32 48, %v896_v3  ;;  %v800_v22 = vld [vmem:[%s1340_s0 + $0x28] sm:$0xff]   ;;  %793 = vset.pattern.permute.xlu1 %v849_v60  ;;  %794 = vset.pattern.permute.xlu0 %v849_v60 }
   0x6   :  { %v924_v14 = vrot.slane %v62_v1, %v65_v7  ;;  %v926_v15 = vrot.slane %v62_v1, %v69_v8  ;;  %v935_v18 = vadd.s32 56, %v896_v3  ;;  %v801_v23 = vld [vmem:[%s1340_s0 + $0x60] sm:$0xff]   ;;  %v1022_v37 = vadd.s32 64, %v896_v3  ;;  %v803_v38 = vld [vmem:[%s1340_s0 + $0x58] sm:$0xff]   ;;  %v805_v44 = vld [vmem:[%s1340_s0 + $0x50] sm:$0xff]  }
   0x7   :  { %731 = vmatpush3.bf16.msra.mxu0 %v798_v13  ;;  %783 = vmatpush3.bf16.msra.mxu1 %v798_v13  ;;  %v802_v32 = vld [vmem:[%s1340_s0 + $0x20] sm:$0xff]   ;;  %v804_v41 = vld [vmem:[%s1340_s0 + $0x18] sm:$0xff]   ;;  %v806_v54 = vld [vmem:[%s1340_s0 + $0x10] sm:$0xff]  }
   0x8   :  { %vm71_vm1 = vcmp.eq.s32.totalorder %v896_v3, %v924_v14  ;;  %vm72_vm2 = vcmp.eq.s32.totalorder %v896_v3, %v926_v15  ;;  %vm73_vm3 = vcmp.eq.s32.totalorder %v905_v6, %v924_v14  ;;  %vm75_vm4 = vcmp.eq.s32.totalorder %v910_v9, %v924_v14  ;;  %732 = vmatprep.subr.bf16.mxu0 %v799_v19  ;;  %v807_v55 = vld [vmem:[%s1340_s0 + $0x48] sm:$0xff]   ;;  %v809_v58 = vld [vmem:[%s1340_s0 + $0x40] sm:$0xff]   ;;  %v364_v4 = vld [vmem:[#allocation3 + $0x8] sm:$0xff] }
   0x9   :  { %v656_v20 = vsel %vm71_vm1, 1.0, %v847_v2  ;;  %v657_v21 = vsel %vm72_vm2, 1.0, %v847_v2  ;;  %vm76_vm5 = vcmp.eq.s32.totalorder %v910_v9, %v926_v15  ;;  %vm77_vm6 = vcmp.eq.s32.totalorder %v916_v11, %v924_v14  ;;  %776 = vmatprep.subr.bf16.mxu1 %v799_v19  ;;  %v808_v57 = vld [vmem:[%s1340_s0 + $0x8] sm:$0xff]   ;;  %v810_v59 = vld [vmem:[%s1340_s0] sm:$0xff]   ;;  %v365_v62 = vld [vmem:[#allocation3 + $0x10] sm:$0xff] }
   0xa   :  { %v372_v24 = vadd.f32 %v657_v21, %v656_v20  ;;  %vm78_vm7 = vcmp.eq.s32.totalorder %v916_v11, %v926_v15  ;;  %v660_v25 = vsel %vm75_vm4, 1.0, %v847_v2  ;;  %v661_v26 = vsel %vm76_vm5, 1.0, %v847_v2  ;;  %v363_v61 = vld [vmem:[#allocation3] sm:$0xff]  ;;  %v366_v5 = vld [vmem:[#allocation3 + $0x18] sm:$0xff] }
   0xb   :  { %v378_v27 = vadd.f32 %v661_v26, %v660_v25  ;;  %vm74_vm8 = vcmp.eq.s32.totalorder %v905_v6, %v926_v15  ;;  %v658_v28 = vsel %vm73_vm3, 1.0, %v847_v2  ;;  %v662_v29 = vsel %vm77_vm6, 1.0, %v847_v2  ;;  %733 = vmatpush3.bf16.msra.mxu0 %v800_v22  ;;  %784 = vmatpush3.bf16.msra.mxu1 %v800_v22  ;;  %v367_v10 = vld [vmem:[#allocation3 + $0x20] sm:$0xff] }
   0xc   :  { %373 = vadd.xlane.f32.xlu0 %v372_v24  ;;  %v659_v30 = vsel %vm74_vm8, 1.0, %v847_v2  ;;  %v663_v31 = vsel %vm78_vm7, 1.0, %v847_v2  ;;  %vm79_vm9 = vcmp.eq.s32.totalorder %v919_v12, %v924_v14  ;;  %vm80_vm10 = vcmp.eq.s32.totalorder %v919_v12, %v926_v15  ;;  %vm690_vm11 = vmpackc.low %vm74_vm8, %vm72_vm2  ;;  %734 = vmatprep.subr.bf16.mxu0 %v801_v23  ;;  %v371_v25 = vld [vmem:[#allocation3 + $0x40] sm:$0xff] }
   0xd   :  { %379 = vadd.xlane.f32.xlu1 %v378_v27  ;;  %v375_v33 = vadd.f32 %v659_v30, %v658_v28  ;;  %v381_v34 = vadd.f32 %v663_v31, %v662_v29  ;;  %v664_v35 = vsel %vm79_vm9, 1.0, %v847_v2  ;;  %v665_v36 = vsel %vm80_vm10, 1.0, %v847_v2  ;;  %691 = vmatprep.mubr.msk.bf16.mxu0 %vm690_vm11, %v848_v42 }
   0xe   :  { %vm1345_vm12 = vcmp.eq.s32.totalorder %v929_v16, %v924_v14  ;;  %vm82_vm13 = vcmp.eq.s32.totalorder %v929_v16, %v926_v15  ;;  %vm83_vm14 = vcmp.eq.s32.totalorder %v932_v17, %v924_v14  ;;  %vm84_vm15 = vcmp.eq.s32.totalorder %v932_v17, %v926_v15  ;;  %777 = vmatprep.subr.bf16.mxu1 %v801_v23  ;;  %v370_v17 = vld [vmem:[#allocation3 + $0x38] sm:$0xff] }
   0xf   :  { %v666_v39 = vsel %vm1345_vm12, 1.0, %v847_v2  ;;  %v667_v40 = vsel %vm82_vm13, 1.0, %v847_v2  ;;  %v384_v43 = vadd.f32 %v665_v36, %v664_v35  ;;  %vm85_vm2 = vcmp.eq.s32.totalorder %v935_v18, %v924_v14  ;;  %735 = vmatpush3.bf16.msra.mxu0 %v802_v32  ;;  %785 = vmatpush3.bf16.msra.mxu1 %v802_v32 }
  0x10   :  { %376 = vadd.xlane.f32.xlu0 %v375_v33  ;;  %vm86_vm8 = vcmp.eq.s32.totalorder %v935_v18, %v926_v15  ;;  %v387_v45 = vadd.f32 %v667_v40, %v666_v39  ;;  %v668_v46 = vsel %vm83_vm14, 1.0, %v847_v2  ;;  %v669_v47 = vsel %vm84_vm15, 1.0, %v847_v2  ;;  %736 = vmatprep.subr.bf16.mxu0 %v803_v38 }
  0x11   :  { %382 = vadd.xlane.f32.xlu1 %v381_v34  ;;  %v670_v48 = vsel %vm85_vm2, 1.0, %v847_v2  ;;  %v671_v49 = vsel %vm86_vm8, 1.0, %v847_v2  ;;  %vm87_vm11 = vcmp.eq.s32.totalorder %v1022_v37, %v924_v14  ;;  %vm88_vm0 = vcmp.eq.s32.totalorder %v1022_v37, %v926_v15  ;;  %778 = vmatprep.subr.bf16.mxu1 %v803_v38  ;;  %vm702_vm12 = vmpackc.low %vm86_vm8, %vm84_vm15  ;;  %v369_v15 = vld [vmem:[#allocation3 + $0x30] sm:$0xff] }
  0x12   :  { %v390_v50 = vadd.f32 %v669_v47, %v668_v46  ;;  %v393_v51 = vadd.f32 %v671_v49, %v670_v48  ;;  %v672_v52 = vsel %vm87_vm11, 1.0, %v847_v2  ;;  %v673_v53 = vsel %vm88_vm0, 1.0, %v847_v2  ;;  %703 = vmatprep.mubr.msk.bf16.mxu1 %vm702_vm12, %v848_v42  ;;  %vm692_vm12 = vmpackc.low %vm73_vm3, %vm71_vm1 }
  0x13   :  { %737 = vmatpush3.bf16.msra.mxu0 %v804_v41  ;;  %786 = vmatpush3.bf16.msra.mxu1 %v804_v41  ;;  %v396_v56 = vadd.f32 %v673_v53, %v672_v52  ;;  %vm694_vm15 = vmpackc.low %vm78_vm7, %vm76_vm5  ;;  %vm21_vm7 = vcmask 261120  }
  0x14   :  { %385 = vadd.xlane.f32.xlu0 %v384_v43  ;;  %738 = vmatprep.subr.bf16.mxu0 %v805_v44  ;;  %vm704_vm8 = vmpackc.low %vm85_vm2, %vm83_vm14  ;;  %22 = vst.msk [vmem:[#allocation2] sm:$0xff] %vm21_vm7, %v847_v2 }
  0x15   :  { %388 = vadd.xlane.f32.xlu1 %v387_v45  ;;  %779 = vmatprep.subr.bf16.mxu1 %v805_v44  ;;  %vm706_vm1 = vmpackc.low %vm88_vm0, %vm88_vm0  ;;  %23 = vst.msk [vmem:[#allocation2 + $0x8] sm:$0xff] %vm21_vm7, %v847_v2 }
  0x16   :  { %vm696_vm3 = vmpackc.low %vm77_vm6, %vm75_vm4  ;;  %vm1346_vm4 = vcmp.eq.s32.totalorder %v929_v16, %v924_v14  ;;  %24 = vst.msk [vmem:[#allocation2 + $0x10] sm:$0xff] %vm21_vm7, %v847_v2 }
  0x17   :  { %739 = vmatpush3.bf16.msra.mxu0 %v806_v54  ;;  %787 = vmatpush3.bf16.msra.mxu1 %v806_v54  ;;  %vm698_vm0 = vmpackc.low %vm82_vm13, %vm80_vm10  ;;  %25 = vst.msk [vmem:[#allocation2 + $0x18] sm:$0xff] %vm21_vm7, %v847_v2 }
  0x18   :  { %391 = vadd.xlane.f32.xlu0 %v390_v50  ;;  %740 = vmatprep.subr.bf16.mxu0 %v807_v55  ;;  %vm708_vm5 = vmpackc.low %vm87_vm11, %vm87_vm11  ;;  %26 = vst.msk [vmem:[#allocation2 + $0x20] sm:$0xff] %vm21_vm7, %v847_v2 }
  0x19   :  { %394 = vadd.xlane.f32.xlu1 %v393_v51  ;;  %780 = vmatprep.subr.bf16.mxu1 %v807_v55  ;;  %vm700_vm6 = vmpackc.low %vm1346_vm4, %vm79_vm9  ;;  %27 = vst.msk [vmem:[#allocation2 + $0x28] sm:$0xff] %vm21_vm7, %v847_v2  ;;  %vm1347_vm9 = vcmask 7168  }
  0x1a   :  { %28 = vst.msk [vmem:[#allocation2 + $0x30] sm:$0xff] %vm21_vm7, %v847_v2  ;;  %29 = vst.msk [vmem:[#allocation2 + $0x38] sm:$0xff] %vm21_vm7, %v847_v2 }
  0x1b   :  { %741 = vmatpush3.bf16.msra.mxu0 %v808_v57  ;;  %788 = vmatpush3.bf16.msra.mxu1 %v808_v57  ;;  %30 = vst.msk [vmem:[#allocation2 + $0x40] sm:$0xff] %vm21_vm7, %v847_v2  ;;  %vm1348_vm10 = vmmov %vm1347_vm9  ;;  %v368_v2 = vld [vmem:[#allocation3 + $0x28] sm:$0xff]  ;;  %v89_v52 = vld [vmem:[#allocation2] sm:$0xff] }
  0x1c   :  { %397 = vadd.xlane.f32.xlu0 %v396_v56  ;;  %742 = vmatprep.subr.bf16.mxu0 %v809_v58  ;;  %vm1349_vm13 = vmmov %vm1347_vm9 }
  0x1d   :  { %781 = vmatprep.subr.bf16.mxu1 %v809_v58  ;;  %vm1350_vm14 = vmmov %vm1347_vm9 }
  0x1e   :  { %vm1351_vm2 = vmmov %vm1347_vm9 }
  0x1f   :  { %743 = vmatpush3.bf16.msra.mxu0 %v810_v59  ;;  %789 = vmatpush3.bf16.msra.mxu1 %v810_v59  ;;  %vm1352_vm11 = vmmov %vm1351_vm2 }
  0x21   :  { %v95_v57 = vld [vmem:[#allocation2 + $0x30] sm:$0xff] }
  0x22   :  { %693 = vmatmul.mubr.msk.bf16.vlgmr.msra.gmra.mxu0 %vm692_vm12, %v848_v42  ;;  %705 = vmatmul.mubr.msk.bf16.vlgmr.msra.gmra.mxu1 %vm704_vm8, %v848_v42  ;;  %vm1353_vm12 = vmmov %vm1351_vm2 }
  0x23   :  { %695 = vmatprep.mubr.msk.bf16.mxu0 %vm694_vm15, %v848_v42  ;;  %707 = vmatprep.mubr.msk.bf16.mxu1 %vm706_vm1, %v848_v42  ;;  %vm1354_vm15 = vmmov %vm1351_vm2  ;;  %vm611_vm1 = vcmask 257024  }
  0x24   :  { %vm1355_vm8 = vmmov %vm1351_vm2 }
  0x2a   :  { %697 = vmatmul.mubr.msk.bf16.gmra.mxu0 %vm696_vm3, %v848_v42  ;;  %709 = vmatmul.mubr.msk.bf16.gmra.mxu1 %vm708_vm5, %v848_v42 }
  0x2b   :  { %699 = vmatprep.mubr.msk.bf16.mxu0 %vm698_vm0, %v848_v42 }
  0x32   :  { %701 = vmatmul.mubr.msk.bf16.gmra.mxu0 %vm700_vm6, %v848_v42 }
  0x95   :  { %v374_v63 = vpop.xlane.xlu0 %373 }
  0x96   :  { %v399_v0 = vadd.f32 %v374_v63, %v363_v61  ;;  %v380_v1 = vpop.xlane.xlu1 %379  ;;  %v90_v61 = vld [vmem:[#allocation2 + $0x8] sm:$0xff] }
  0x97   :  { %v401_v3 = vadd.f32 %v380_v1, %v365_v62 }
  0x98   :  { %409 = vst.msk [vmem:[#allocation3] sm:$0xff] %vm1347_vm9, %v399_v0 }
  0x99   :  { %411 = vst.msk [vmem:[#allocation3 + $0x10] sm:$0xff] %vm1348_vm10, %v401_v3  ;;  %v377_v6 = vpop.xlane.xlu0 %376 }
  0x9a   :  { %v400_v7 = vadd.f32 %v377_v6, %v364_v4  ;;  %v383_v8 = vpop.xlane.xlu1 %382  ;;  %v96_v4 = vld [vmem:[#allocation2 + $0x38] sm:$0xff] }
  0x9b   :  { %v402_v9 = vadd.f32 %v383_v8, %v366_v5  ;;  %v91_v8 = vld [vmem:[#allocation2 + $0x10] sm:$0xff] }
  0x9c   :  { %410 = vst.msk [vmem:[#allocation3 + $0x8] sm:$0xff] %vm1349_vm13, %v400_v7 }
  0x9d   :  { %412 = vst.msk [vmem:[#allocation3 + $0x18] sm:$0xff] %vm1350_vm14, %v402_v9  ;;  %v386_v11 = vpop.xlane.xlu0 %385 }
  0x9e   :  { %v403_v12 = vadd.f32 %v386_v11, %v367_v10  ;;  %v389_v13 = vpop.xlane.xlu1 %388 }
  0x9f   :  { %v404_v14 = vadd.f32 %v389_v13, %v368_v2  ;;  %v430_v16 = vld [vmem:[#allocation3] sm:$0xff]  ;;  %v97_v13 = vld [vmem:[#allocation2 + $0x40] sm:$0xff] }
  0xa0   :  { %413 = vst.msk [vmem:[#allocation3 + $0x20] sm:$0xff] %vm1351_vm2, %v403_v12  ;;  %v439_v18 = vmax.f32 %v430_v16, 1.0  ;;  %v432_v19 = vld [vmem:[#allocation3 + $0x10] sm:$0xff] }
  0xa1   :  { %414 = vst.msk [vmem:[#allocation3 + $0x28] sm:$0xff] %vm1352_vm11, %v404_v14  ;;  %v392_v20 = vpop.xlane.xlu0 %391  ;;  %v441_v21 = vmax.f32 %v432_v19, 1.0 }
  0xa2   :  { %v405_v22 = vadd.f32 %v392_v20, %v369_v15  ;;  %v395_v23 = vpop.xlane.xlu1 %394  ;;  %811 = vrcp.f32 %v439_v18 }
  0xa3   :  { %v406_v24 = vadd.f32 %v395_v23, %v370_v17  ;;  %v431_v26 = vld [vmem:[#allocation3 + $0x8] sm:$0xff]  ;;  %813 = vrcp.f32 %v441_v21  ;;  %v92_v17 = vld [vmem:[#allocation2 + $0x18] sm:$0xff] }
  0xa4   :  { %415 = vst.msk [vmem:[#allocation3 + $0x30] sm:$0xff] %vm1353_vm12, %v405_v22  ;;  %v440_v27 = vmax.f32 %v431_v26, 1.0  ;;  %v433_v28 = vld [vmem:[#allocation3 + $0x18] sm:$0xff] }
  0xa5   :  { %416 = vst.msk [vmem:[#allocation3 + $0x38] sm:$0xff] %vm1354_vm15, %v406_v24  ;;  %v398_v29 = vpop.xlane.xlu0 %397  ;;  %v442_v30 = vmax.f32 %v433_v28, 1.0 }
  0xa6   :  { %v407_v31 = vadd.f32 %v398_v29, %v371_v25  ;;  %815 = vrcp.f32 %v440_v27  ;;  %v93_v25 = vld [vmem:[#allocation2 + $0x20] sm:$0xff] }
  0xa7   :  { %v434_v32 = vld [vmem:[#allocation3 + $0x20] sm:$0xff]  ;;  %817 = vrcp.f32 %v442_v30 }
  0xa8   :  { %417 = vst.msk [vmem:[#allocation3 + $0x40] sm:$0xff] %vm1355_vm8, %v407_v31  ;;  %v443_v33 = vmax.f32 %v434_v32, 1.0  ;;  %v435_v34 = vld [vmem:[#allocation3 + $0x28] sm:$0xff]  ;;  %v94_v30 = vld [vmem:[#allocation2 + $0x28] sm:$0xff] }
  0xa9   :  { %v444_v35 = vmax.f32 %v435_v34, 1.0 }
  0xaa   :  { %819 = vrcp.f32 %v443_v33 }
  0xab   :  { %v436_v36 = vld [vmem:[#allocation3 + $0x30] sm:$0xff]  ;;  %821 = vrcp.f32 %v444_v35 }
  0xac   :  { %v445_v38 = vmax.f32 %v436_v36, 1.0  ;;  %v437_v40 = vld [vmem:[#allocation3 + $0x38] sm:$0xff] }
  0xad   :  { %v446_v42 = vmax.f32 %v437_v40, 1.0 }
  0xae   :  { %823 = vrcp.f32 %v445_v38 }
  0xaf   :  { %v812_v37 = vpop.eup %811  ;;  %v438_v44 = vld [vmem:[#allocation3 + $0x40] sm:$0xff]  ;;  %825 = vrcp.f32 %v446_v42 }
  0xb0   :  { %459 = vperm.xlu1 %793, %v812_v37   ;;  %v814_v39 = vpop.eup %813  ;;  %v447_v45 = vmax.f32 %v438_v44, 1.0 }
  0xb2   :  { %827 = vrcp.f32 %v447_v45 }
  0xb3   :  { %v816_v41 = vpop.eup %815 }
  0xb4   :  { %469 = vperm.xlu1 %793, %v814_v39   ;;  %464 = vperm.xlu0 %794, %v816_v41   ;;  %v818_v43 = vpop.eup %817 }
  0xb7   :  { %v820_v46 = vpop.eup %819 }
  0xb8   :  { %474 = vperm.xlu1 %793, %v818_v43   ;;  %v822_v47 = vpop.eup %821 }
  0xbb   :  { %v824_v48 = vpop.eup %823 }
  0xbc   :  { %479 = vperm.xlu1 %793, %v820_v46   ;;  %v826_v49 = vpop.eup %825 }
  0xbf   :  { %v828_v50 = vpop.eup %827 }
  0xc0   :  { %484 = vperm.xlu1 %793, %v822_v47  }
  0xc4   :  { %489 = vperm.xlu1 %793, %v824_v48  }
  0xc8   :  { %494 = vperm.xlu1 %793, %v826_v49  }
  0xcc   :  { %499 = vperm.xlu1 %793, %v828_v50  }
  0xe2   :  { %v744_v51 = vpop.f32.mrf.mxu0  ;;  %v762_v54 = vpop.f32.mrf.mxu1 }
  0xe4   :  { %v745_v53 = vpop.f32.mrf.mxu0  ;;  %v763_v58 = vpop.f32.mrf.mxu1 }
  0xe5   :  { %v746_v55 = vadd.f32 %v745_v53, %v744_v51  ;;  %v764_v60 = vadd.f32 %v763_v58, %v762_v54 }
  0xe6   :  { %v747_v56 = vpop.f32.mrf.mxu0  ;;  %v765_v63 = vpop.f32.mrf.mxu1 }
  0xe7   :  { %v344_v59 = vadd.f32 %v746_v55, %v89_v52  ;;  %v350_v1 = vadd.f32 %v764_v60, %v95_v57 }
  0xe8   :  { %v748_v62 = vpop.f32.mrf.mxu0  ;;  %v766_v5 = vpop.f32.mrf.mxu1 }
  0xe9   :  { %354 = vst.msk [vmem:[#allocation2] sm:$0xff] %vm21_vm7, %v344_v59  ;;  %v749_v0 = vadd.f32 %v748_v62, %v747_v56  ;;  %360 = vst.msk [vmem:[#allocation2 + $0x30] sm:$0xff] %vm21_vm7, %v350_v1  ;;  %v767_v7 = vadd.f32 %v766_v5, %v765_v63 }
  0xea   :  { %v750_v3 = vpop.f32.mrf.mxu0  ;;  %v768_v10 = vpop.f32.mrf.mxu1 }
  0xeb   :  { %v345_v6 = vadd.f32 %v749_v0, %v90_v61  ;;  %v351_v11 = vadd.f32 %v767_v7, %v96_v4 }
  0xec   :  { %v751_v9 = vpop.f32.mrf.mxu0  ;;  %v769_v14 = vpop.f32.mrf.mxu1 }
  0xed   :  { %355 = vst.msk [vmem:[#allocation2 + $0x8] sm:$0xff] %vm21_vm7, %v345_v6  ;;  %v752_v2 = vadd.f32 %v751_v9, %v750_v3  ;;  %361 = vst.msk [vmem:[#allocation2 + $0x38] sm:$0xff] %vm21_vm7, %v351_v11  ;;  %v770_v16 = vadd.f32 %v769_v14, %v768_v10 }
  0xee   :  { %v753_v12 = vpop.f32.mrf.mxu0  ;;  %v771_v19 = vpop.f32.mrf.mxu1 }
  0xef   :  { %v346_v15 = vadd.f32 %v752_v2, %v91_v8  ;;  %v352_v21 = vadd.f32 %v770_v16, %v97_v13 }
  0xf0   :  { %v754_v18 = vpop.f32.mrf.mxu0  ;;  %v772_v23 = vpop.f32.mrf.mxu1  ;;  %v421_v34 = vld [vmem:[#allocation2] sm:$0xff]  ;;  %v427_v0 = vld [vmem:[#allocation2 + $0x30] sm:$0xff] }
  0xf1   :  { %356 = vst.msk [vmem:[#allocation2 + $0x10] sm:$0xff] %vm21_vm7, %v346_v15  ;;  %v755_v20 = vadd.f32 %v754_v18, %v753_v12  ;;  %362 = vst.msk [vmem:[#allocation2 + $0x40] sm:$0xff] %vm21_vm7, %v352_v21 }
  0xf2   :  { %v756_v22 = vpop.f32.mrf.mxu0 }
  0xf3   :  { %v347_v24 = vadd.f32 %v755_v20, %v92_v17 }
  0xf4   :  { %v757_v26 = vpop.f32.mrf.mxu0  ;;  %v422_v41 = vld [vmem:[#allocation2 + $0x8] sm:$0xff]  ;;  %v428_v6 = vld [vmem:[#allocation2 + $0x38] sm:$0xff] }
  0xf5   :  { %357 = vst.msk [vmem:[#allocation2 + $0x18] sm:$0xff] %vm21_vm7, %v347_v24  ;;  %v758_v27 = vadd.f32 %v757_v26, %v756_v22  ;;  %v621_v26 = vld [vmem:[%s1341_s2] sm:$0xff] }
  0xf6   :  { %v759_v28 = vpop.f32.mrf.mxu0 }
  0xf7   :  { %v348_v29 = vadd.f32 %v758_v27, %v93_v25 }
  0xf8   :  { %v760_v31 = vpop.f32.mrf.mxu0  ;;  %v423_v37 = vld [vmem:[#allocation2 + $0x10] sm:$0xff]  ;;  %v429_v2 = vld [vmem:[#allocation2 + $0x40] sm:$0xff] }
  0xf9   :  { %358 = vst.msk [vmem:[#allocation2 + $0x20] sm:$0xff] %vm21_vm7, %v348_v29  ;;  %v761_v32 = vadd.f32 %v760_v31, %v759_v28 }
  0xfb   :  { %v349_v33 = vadd.f32 %v761_v32, %v94_v30 }
  0xfc   :  { %v424_v45 = vld [vmem:[#allocation2 + $0x18] sm:$0xff] }
  0xfd   :  { %359 = vst.msk [vmem:[#allocation2 + $0x28] sm:$0xff] %vm21_vm7, %v349_v33  ;;  %v622_v33 = vld [vmem:[%s1341_s2 + $0x8] sm:$0xff] }
 0x100   :  { %v425_v51 = vld [vmem:[#allocation2 + $0x20] sm:$0xff] }
 0x104   :  { %v426_v57 = vld [vmem:[#allocation2 + $0x28] sm:$0xff] }
 0x12b   :  { %v460_v35 = vpop.permute.xlu1 %459 }
 0x12c   :  { %v1186_v36 = vmul.f32 %v460_v35, %v421_v34 }
 0x12e   :  { %v511_v38 = vmul.f32 %v1186_v36, %v1186_v36 }
 0x12f   :  { %v470_v39 = vpop.permute.xlu1 %469  ;;  %v465_v40 = vpop.permute.xlu0 %464 }
 0x130   :  { %v1190_v42 = vmul.f32 %v470_v39, %v423_v37  ;;  %v1192_v43 = vmul.f32 %v465_v40, %v422_v41  ;;  %v520_v44 = vsel %vm21_vm7, %v511_v38, 0.0 }
 0x131   :  { %521 = vadd.xlane.f32.xlu1 %v520_v44 }
 0x132   :  { %v512_v46 = vmul.f32 %v1192_v43, %v1192_v43  ;;  %v513_v50 = vmul.f32 %v1190_v42, %v1190_v42 }
 0x133   :  { %v475_v47 = vpop.permute.xlu1 %474 }
 0x134   :  { %v1197_v48 = vmul.f32 %v475_v47, %v424_v45  ;;  %v523_v49 = vsel %vm21_vm7, %v512_v46, 0.0  ;;  %v526_v55 = vsel %vm21_vm7, %v513_v50, 0.0 }
 0x135   :  { %524 = vadd.xlane.f32.xlu0 %v523_v49 }
 0x136   :  { %v514_v52 = vmul.f32 %v1197_v48, %v1197_v48 }
 0x137   :  { %v480_v53 = vpop.permute.xlu1 %479 }
 0x138   :  { %v1204_v54 = vmul.f32 %v480_v53, %v425_v51  ;;  %v529_v56 = vsel %vm21_vm7, %v514_v52, 0.0 }
 0x139   :  { %527 = vadd.xlane.f32.xlu0 %v526_v55  ;;  %530 = vadd.xlane.f32.xlu1 %v529_v56 }
 0x13a   :  { %v515_v58 = vmul.f32 %v1204_v54, %v1204_v54 }
 0x13b   :  { %v485_v59 = vpop.permute.xlu1 %484 }
 0x13c   :  { %v1210_v60 = vmul.f32 %v485_v59, %v426_v57  ;;  %v532_v61 = vsel %vm21_vm7, %v515_v58, 0.0 }
 0x13d   :  { %533 = vadd.xlane.f32.xlu0 %v532_v61 }
 0x13e   :  { %v516_v62 = vmul.f32 %v1210_v60, %v1210_v60 }
 0x13f   :  { %v490_v63 = vpop.permute.xlu1 %489 }
 0x140   :  { %v1215_v1 = vmul.f32 %v490_v63, %v427_v0  ;;  %v535_v3 = vsel %vm21_vm7, %v516_v62, 0.0 }
 0x141   :  { %536 = vadd.xlane.f32.xlu1 %v535_v3 }
 0x142   :  { %v517_v4 = vmul.f32 %v1215_v1, %v1215_v1 }
 0x143   :  { %v495_v5 = vpop.permute.xlu1 %494 }
 0x144   :  { %v1220_v7 = vmul.f32 %v495_v5, %v428_v6  ;;  %v538_v8 = vsel %vm21_vm7, %v517_v4, 0.0 }
 0x145   :  { %539 = vadd.xlane.f32.xlu0 %v538_v8 }
 0x146   :  { %v518_v9 = vmul.f32 %v1220_v7, %v1220_v7 }
 0x147   :  { %v500_v10 = vpop.permute.xlu1 %499 }
 0x148   :  { %v1225_v11 = vmul.f32 %v500_v10, %v429_v2  ;;  %v541_v12 = vsel %vm21_vm7, %v518_v9, 0.0 }
 0x149   :  { %542 = vadd.xlane.f32.xlu1 %v541_v12 }
 0x14a   :  { %v519_v13 = vmul.f32 %v1225_v11, %v1225_v11 }
 0x14c   :  { %v544_v14 = vsel %vm21_vm7, %v519_v13, 0.0 }
 0x14d   :  { %545 = vadd.xlane.f32.xlu0 %v544_v14 }
 0x1ba   :  { %v522_v15 = vpop.xlane.xlu1 %521 }
 0x1bb   :  { %v547_v16 = vmax.f32 %v522_v15, 1e-24 }
 0x1bd   :  { %829 = vrsqrt.f32 %v547_v16 }
 0x1be   :  { %v525_v17 = vpop.xlane.xlu0 %524 }
 0x1bf   :  { %v548_v18 = vmax.f32 %v525_v17, 1e-24 }
 0x1c1   :  { %831 = vrsqrt.f32 %v548_v18 }
 0x1c2   :  { %v528_v19 = vpop.xlane.xlu0 %527  ;;  %v531_v20 = vpop.xlane.xlu1 %530 }
 0x1c3   :  { %v549_v21 = vmax.f32 %v528_v19, 1e-24  ;;  %v550_v22 = vmax.f32 %v531_v20, 1e-24 }
 0x1c5   :  { %833 = vrsqrt.f32 %v549_v21 }
 0x1c6   :  { %835 = vrsqrt.f32 %v550_v22  ;;  %v534_v23 = vpop.xlane.xlu0 %533 }
 0x1c7   :  { %v551_v24 = vmax.f32 %v534_v23, 1e-24 }
 0x1c9   :  { %837 = vrsqrt.f32 %v551_v24 }
 0x1ca   :  { %v830_v25 = vpop.eup %829  ;;  %v537_v27 = vpop.xlane.xlu1 %536 }
 0x1cb   :  { %v565_v28 = vmul.f32 %v830_v25, %v1186_v36  ;;  %v552_v29 = vmax.f32 %v537_v27, 1e-24 }
 0x1cd   :  { %v719_v30 = vpack.c.bf16 %v565_v28, %v565_v28  ;;  %v630_v31 = vadd.f32 %v621_v26, %v565_v28  ;;  %839 = vrsqrt.f32 %v552_v29 }
 0x1ce   :  { %v832_v32 = vpop.eup %831  ;;  %v540_v34 = vpop.xlane.xlu0 %539 }
 0x1cf   :  { %612 = vst.msk [vmem:[%s1342_s3] sm:$0xf] %vm611_vm1, %v719_v30  ;;  %v566_v35 = vmul.f32 %v832_v32, %v1192_v43  ;;  %v553_v36 = vmax.f32 %v540_v34, 1e-24 }
 0x1d0   :  { %639 = vst.msk [vmem:[%s1343_s4] sm:$0xff] %vm21_vm7, %v630_v31 }
 0x1d1   :  { %v720_v37 = vpack.c.bf16 %v566_v35, %v566_v35  ;;  %v631_v38 = vadd.f32 %v622_v33, %v566_v35  ;;  %841 = vrsqrt.f32 %v553_v36 }
 0x1d2   :  { %v834_v39 = vpop.eup %833  ;;  %v543_v41 = vpop.xlane.xlu1 %542 }
 0x1d3   :  { %v836_v44 = vpop.eup %835  ;;  %613 = vst.msk [vmem:[%s1342_s3 + $0x4] sm:$0xf] %vm611_vm1, %v720_v37  ;;  %v567_v43 = vmul.f32 %v834_v39, %v1190_v42  ;;  %v554_v46 = vmax.f32 %v543_v41, 1e-24 }
 0x1d4   :  { %v568_v47 = vmul.f32 %v836_v44, %v1197_v48 }
 0x1d5   :  { %v721_v49 = vpack.c.bf16 %v567_v43, %v567_v43  ;;  %843 = vrsqrt.f32 %v554_v46 }
 0x1d6   :  { %v838_v51 = vpop.eup %837  ;;  %v722_v52 = vpack.c.bf16 %v568_v47, %v568_v47  ;;  %v546_v56 = vpop.xlane.xlu0 %545 }
 0x1d7   :  { %v623_v40 = vld [vmem:[%s1341_s2 + $0x10] sm:$0xff]  ;;  %614 = vst.msk [vmem:[%s1342_s3 + $0x8] sm:$0xf] %vm611_vm1, %v721_v49  ;;  %v569_v42 = vmul.f32 %v838_v51, %v1204_v54  ;;  %v555_v48 = vmax.f32 %v546_v56, 1e-24 }
 0x1d8   :  { %640 = vst.msk [vmem:[%s1343_s4 + $0x8] sm:$0xff] %vm21_vm7, %v631_v38  ;;  %v632_v50 = vadd.f32 %v623_v40, %v567_v43 }
 0x1d9   :  { %615 = vst.msk [vmem:[%s1342_s3 + $0xc] sm:$0xf] %vm611_vm1, %v722_v52  ;;  %v723_v57 = vpack.c.bf16 %v569_v42, %v569_v42  ;;  %845 = vrsqrt.f32 %v555_v48 }
 0x1da   :  { %v840_v59 = vpop.eup %839 }
 0x1db   :  { %616 = vst.msk [vmem:[%s1342_s3 + $0x10] sm:$0xf] %vm611_vm1, %v723_v57  ;;  %v570_v54 = vmul.f32 %v840_v59, %v1210_v60 }
 0x1dd   :  { %v724_v62 = vpack.c.bf16 %v570_v54, %v570_v54 }
 0x1de   :  { %v842_v0 = vpop.eup %841 }
 0x1df   :  { %v624_v45 = vld [vmem:[%s1341_s2 + $0x18] sm:$0xff]  ;;  %v625_v55 = vld [vmem:[%s1341_s2 + $0x20] sm:$0xff]  ;;  %617 = vst.msk [vmem:[%s1342_s3 + $0x14] sm:$0xf] %vm611_vm1, %v724_v62  ;;  %v571_v4 = vmul.f32 %v842_v0, %v1215_v1 }
 0x1e0   :  { %v633_v53 = vadd.f32 %v624_v45, %v568_v47  ;;  %641 = vst.msk [vmem:[%s1343_s4 + $0x10] sm:$0xff] %vm21_vm7, %v632_v50  ;;  %v634_v58 = vadd.f32 %v625_v55, %v569_v42 }
 0x1e1   :  { %v725_v60 = vpack.c.bf16 %v571_v4, %v571_v4 }
 0x1e2   :  { %642 = vst.msk [vmem:[%s1343_s4 + $0x18] sm:$0xff] %vm21_vm7, %v633_v53  ;;  %v844_v6 = vpop.eup %843 }
 0x1e3   :  { %618 = vst.msk [vmem:[%s1342_s3 + $0x18] sm:$0xf] %vm611_vm1, %v725_v60  ;;  %v572_v9 = vmul.f32 %v844_v6, %v1220_v7 }
 0x1e5   :  { %v726_v1 = vpack.c.bf16 %v572_v9, %v572_v9 }
 0x1e6   :  { %v846_v2 = vpop.eup %845 }
 0x1e7   :  { %619 = vst.msk [vmem:[%s1342_s3 + $0x1c] sm:$0xf] %vm611_vm1, %v726_v1  ;;  %v573_v13 = vmul.f32 %v846_v2, %v1225_v11 }
 0x1e9   :  { %v626_v61 = vld [vmem:[%s1341_s2 + $0x28] sm:$0xff]  ;;  %v727_v7 = vpack.c.bf16 %v573_v13, %v573_v13 }
 0x1ea   :  { %643 = vst.msk [vmem:[%s1343_s4 + $0x20] sm:$0xff] %vm21_vm7, %v634_v58  ;;  %v635_v63 = vadd.f32 %v626_v61, %v570_v54 }
 0x1eb   :  { %620 = vst.msk [vmem:[%s1342_s3 + $0x20] sm:$0xf] %vm611_vm1, %v727_v7 }
 0x1f1   :  { %v627_v3 = vld [vmem:[%s1341_s2 + $0x30] sm:$0xff] }
 0x1f2   :  { %644 = vst.msk [vmem:[%s1343_s4 + $0x28] sm:$0xff] %vm21_vm7, %v635_v63  ;;  %v636_v5 = vadd.f32 %v627_v3, %v571_v4 }
 0x1f9   :  { %v628_v8 = vld [vmem:[%s1341_s2 + $0x38] sm:$0xff] }
 0x1fa   :  { %645 = vst.msk [vmem:[%s1343_s4 + $0x30] sm:$0xff] %vm21_vm7, %v636_v5  ;;  %v637_v10 = vadd.f32 %v628_v8, %v572_v9 }
 0x201   :  { %v629_v12 = vld [vmem:[%s1341_s2 + $0x40] sm:$0xff] }
 0x202   :  { %646 = vst.msk [vmem:[%s1343_s4 + $0x38] sm:$0xff] %vm21_vm7, %v637_v10  ;;  %v638_v14 = vadd.f32 %v629_v12, %v573_v13 }
 0x204   :  { %647 = vst.msk [vmem:[%s1343_s4 + $0x40] sm:$0xff] %vm21_vm7, %v638_v14 }

// kernel: recommender_forward.7
= control target key start
LH: loop header
LB: loop body
LE: loop exit
PB: predicated region body
PF: predicated region fallthrough
CT: control target
= control target key end

     0   :  { %10 = vsyncpa [#allocation3], 0  ;;  %vm22_vm0 = vcmask 261120   ;;  %s230_s0 = inlined_call_operand.vmem [shape: f32[8,32], index: 0, kind: input, shape index: {}]   ;;  %s231_s1 = inlined_call_operand.vmem [shape: f32[8,32], index: 1, kind: input, shape index: {}]   ;;  %s232_s2 = inlined_call_operand.vmem [shape: f32[8,32], index: 2, kind: input, shape index: {}]   ;;  %s233_s3 = inlined_call_operand.hbm [shape: f32[1,1], index: 3, kind: output, shape index: {0}]   ;;  %s234_s4 = inlined_call_operand.hbm [shape: f32[1,1], index: 4, kind: output, shape index: {1}]  }
   0x1   :  { %v20_v0 = vld [vmem:[%s232_s2] sm:$0xff] }
   0x2   :  { %v18_v1 = vld [vmem:[%s230_s0] sm:$0xff]  ;;  %v82_v3 = vmul.f32 %v20_v0, %v20_v0 }
   0x3   :  { %v19_v2 = vld [vmem:[%s231_s1] sm:$0xff]  ;;  %v57_v4 = vmul.f32 %v18_v1, %v18_v1 }
   0x4   :  { %v69_v5 = vmul.f32 %v19_v2, %v19_v2 }
   0x5   :  { %11 = vsyncpa [#allocation5], 0  ;;  %v21_v6 = vmul.f32 %v19_v2, %v18_v1  ;;  %v83_v7 = vsel %vm22_vm0, %v82_v3, 0.0  ;;  %v58_v8 = vsel %vm22_vm0, %v57_v4, 0.0  ;;  %v26_v10 = vmul.f32 %v20_v0, %v18_v1  ;;  %s181_s0 = smov [#allocation2]   ;;  %s182_s23 = smov [#allocation4]  }
   0x6   :  { %84 = vadd.xlane.f32.xlu1 %v83_v7  ;;  %59 = vadd.xlane.f32.xlu0 %v58_v8  ;;  %v70_v9 = vsel %vm22_vm0, %v69_v5, 0.0  ;;  %s103_s1 = sshll.u32 %s181_s0, 4  ;;  %vm55_vm2 = vcmask 0   ;;  %s113_s24 = sshll.u32 %s182_s23, 4  ;;  %s104_s1 = int_to_ptr.vmem [resolvable:$true] %s103_s1  ;;  %s114_s24 = int_to_ptr.vmem [resolvable:$true] %s113_s24 }
   0x7   :  { %v23_v11 = vsel %vm22_vm0, %v21_v6, 0.0  ;;  %v27_v12 = vsel %vm22_vm0, %v26_v10, 0.0  ;;  %s137_s25 = scalar_lea.vmem %s104_s1, 16  ;;  %s141_s26 = scalar_lea.vmem %s104_s1, 32 }
   0x8   :  { %p138_p0 = scmp.ne.s32.totalorder %s104_s1, %s137_s25  ;;  %p142_p1 = scmp.lt.s32.totalorder %s104_s1, %s104_s1 }
   0x9   :  { %p143_p2 = scmp.lt.s32.totalorder %s141_s26, %s137_s25 }
   0xa   :  { %71 = vadd.xlane.f32.xlu0 %v70_v9  ;;  %24 = vadd.xlane.f32.xlu1 %v23_v11 }
   0xb   :  { %p144_p3 = por %p143_p2, %p142_p1 }
   0xd   :  { %p145_p4 = pnand %p144_p3, %p138_p0 }
   0xe   :  { %28 = vadd.xlane.f32.xlu0 %v27_v12 }
  0x8f   :  { %v85_v13 = vpop.xlane.xlu1 %84  ;;  %v60_v14 = vpop.xlane.xlu0 %59 }
  0x90   :  { %v86_v15 = vrot.slane %v85_v13, 4  ;;  %v61_v16 = vrot.slane %v60_v14, 4 }
  0x92   :  { %v87_v17 = vadd.f32 %v86_v15, %v85_v13  ;;  %v62_v18 = vadd.f32 %v61_v16, %v60_v14 }
  0x93   :  { %v72_v19 = vpop.xlane.xlu0 %71  ;;  %v25_v23 = vpop.xlane.xlu1 %24 }
  0x94   :  { %v88_v20 = vrot.slane %v87_v17, 2  ;;  %v63_v21 = vrot.slane %v62_v18, 2  ;;  %v73_v22 = vrot.slane %v72_v19, 4 }
  0x96   :  { %v74_v24 = vadd.f32 %v73_v22, %v72_v19  ;;  %v64_v25 = vadd.f32 %v63_v21, %v62_v18  ;;  %v89_v27 = vadd.f32 %v88_v20, %v87_v17 }
  0x97   :  { %v29_v26 = vpop.xlane.xlu0 %28 }
  0x98   :  { %v75_v28 = vrot.slane %v74_v24, 2  ;;  %v30_v29 = vsub.f32 %v25_v23, %v29_v26  ;;  %v65_v30 = vrot.slane %v64_v25, 1  ;;  %v90_v34 = vrot.slane %v89_v27, 1 }
  0x9a   :  { %v32_v31 = vand.u32 2147483647, %v30_v29  ;;  %v66_v32 = vadd.f32 %v65_v30, %v64_v25  ;;  %v76_v33 = vadd.f32 %v75_v28, %v74_v24  ;;  %v91_v39 = vadd.f32 %v90_v34, %v89_v27 }
  0x9b   :  { %v31_v48 = vmin.f32 %v30_v29, 0.0 }
  0x9c   :  { %v33_v35 = vsub.f32 0.0, %v32_v31  ;;  %125 = vpush %v66_v32  ;;  %v77_v36 = vrot.slane %v76_v33, 1 }
  0x9e   :  { %v34_v37 = vmul.f32 1.442695, %v33_v35  ;;  %v78_v38 = vadd.f32 %v77_v36, %v76_v33 }
  0xa0   :  { %133 = vpow2.f32 %v34_v37  ;;  %127 = vpush %v78_v38 }
  0xa1   :  { %129 = vpush %v91_v39 }
  0xad   :  { %v134_v40 = vpop.eup %133 }
  0xae   :  { %v36_v41 = vadd.f32 1.0, %v134_v40  ;;  %v39_v42 = vmul.f32 -0.5, %v134_v40  ;;  %v42_v44 = vand.u32 2147483647, %v134_v40 }
  0xb0   :  { %135 = vlog2.f32 %v36_v41  ;;  %v40_v43 = vadd.f32 1.0, %v39_v42  ;;  %vm43_vm1 = vcmp.lt.f32.partialorder %v42_v44, 0.0004427343 }
  0xb2   :  { %v41_v47 = vmul.f32 %v134_v40, %v40_v43 }
  0xbd   :  { %v136_v45 = vpop.eup %135 }
  0xbe   :  { %v38_v46 = vmul.f32 0.6931472, %v136_v45 }
  0xc0   :  { %v44_v49 = vsel %vm43_vm1, %v41_v47, %v38_v46 }
  0xc1   :  { %v45_v50 = vsub.f32 %v31_v48, %v44_v49 }
  0xc3   :  { %v46_v51 = vrot.slane %v45_v50, 4 }
  0xc5   :  { %v47_v52 = vadd.f32 %v46_v51, %v45_v50 }
  0xc7   :  { %v48_v53 = vrot.slane %v47_v52, 2 }
  0xc9   :  { %v49_v54 = vadd.f32 %v48_v53, %v47_v52 }
  0xcb   :  { %v50_v55 = vrot.slane %v49_v54, 1 }
  0xcd   :  { %v51_v56 = vadd.f32 %v50_v55, %v49_v54  ;;  %s126_s2 = spop %125 }
  0xce   :  { %v68_v59 = vstv %s126_s2 }
  0xcf   :  { %v53_v57 = vmul.f32 0.125, %v51_v56 }
  0xd1   :  { %s128_s21 = spop %127  ;;  %v54_v58 = vsub.f32 0.0, %v53_v57 }
  0xd2   :  { %v80_v60 = vstv %s128_s21  ;;  %s130_s22 = spop %129 }
  0xd3   :  { %v81_v61 = vadd.f32 %v80_v60, %v68_v59  ;;  %56 = vst.msk [vmem:[#allocation2] sm:$0x1] %vm55_vm2, %v54_v58  ;;  %v93_v62 = vstv %s130_s22 }
  0xd4   :  { %148 = shalt.err (!%p145_p4)
}
  0xd5   :  { %106 = dma.vmem_to_hbm [thread:$0]  %s104_s1, 16, %s233_s3, [#allocation3]   ;;  %v94_v63 = vadd.f32 %v93_v62, %v81_v61 }
  0xd6   :  { %s157_s29 = scalar_lea.vmem %s114_s24, 16  ;;  %s161_s30 = scalar_lea.vmem %s114_s24, 32 }
  0xd7   :  { %v95_v0 = vmul.f32 0.5, %v94_v63  ;;  %p158_p5 = scmp.ne.s32.totalorder %s114_s24, %s157_s29  ;;  %p162_p6 = scmp.lt.s32.totalorder %s114_s24, %s114_s24 }
  0xd8   :  { %p163_p7 = scmp.lt.s32.totalorder %s161_s30, %s157_s29 }
  0xd9   :  { %96 = vst.msk [vmem:[#allocation4] sm:$0x1] %vm55_vm2, %v95_v0 }
  0xda   :  { %p164_p8 = por %p163_p7, %p162_p6 }
  0xdc   :  { %p165_p9 = pnand %p164_p8, %p158_p5 }
  0xde   :  { %168 = shalt.err (!%p165_p9)
}
  0xdf   :  { %116 = dma.vmem_to_hbm [thread:$0]  %s114_s24, 16, %s234_s4, [#allocation5]  }
  0xe0   :  { %177 = dma.done.wait [#allocation3], 16  }
  0xe1   :  { %178 = vsyncadd [#allocation3], 4294967280 }
  0xe2   :  { %179 = dma.done.wait [#allocation5], 16  }
  0xe3   :  { %180 = vsyncadd [#allocation5], 4294967280 }
  0xe4   :  { %123 = vsyncpa [#allocation3], 1 }
  0xe5   :  { %124 = vsyncpa [#allocation5], 1 }

// kernel: recommender_forward.4
= control target key start
LH: loop header
LB: loop body
LE: loop exit
PB: predicated region body
PF: predicated region fallthrough
CT: control target
= control target key end

     0   :  { %vm1660_vm0 = vcmask 261120   ;;  %s4245_s2 = inlined_call_operand.vmem [shape: f32[2048,32], index: 2, kind: input, shape index: {}]   ;;  %s4246_s0 = inlined_call_operand.vmem [shape: f32[56,2048], index: 0, kind: input, shape index: {}]   ;;  %s4247_s4 = inlined_call_operand.vmem [shape: f32[768,32], index: 4, kind: input, shape index: {}]   ;;  %s4248_s1 = inlined_call_operand.vmem [shape: f32[56,768], index: 1, kind: input, shape index: {}]   ;;  %s4249_s3 = inlined_call_operand.vmem [shape: f32[1,32], index: 3, kind: input, shape index: {}]   ;;  %s4250_s6 = inlined_call_operand.vmem [shape: f32[1,32], index: 6, kind: input, shape index: {}]   ;;  %s4251_s5 = inlined_call_operand.vmem [shape: f32[1,32], index: 5, kind: input, shape index: {}]   ;;  %s4252_s7 = inlined_call_operand.vmem [shape: f32[56,32], index: 7, kind: output, shape index: {}]  }
   0x1   :  { %v169_v0 = vld [vmem:[%s4245_s2 + $0xf8] sm:$0xff]  ;;  %v168_v4 = vld [vmem:[%s4245_s2 + $0xf0] sm:$0xff]  ;;  %v167_v8 = vld [vmem:[%s4245_s2 + $0xe8] sm:$0xff] }
   0x2   :  { %v201_v1 = vld [vmem:[%s4245_s2 + $0x1f8] sm:$0xff]  ;;  %1801 = vmatprep.subr.mxu0 %v169_v0  ;;  %v200_v5 = vld [vmem:[%s4245_s2 + $0x1f0] sm:$0xff]  ;;  %v199_v9 = vld [vmem:[%s4245_s2 + $0x1e8] sm:$0xff] }
   0x3   :  { %v153_v2 = vld [vmem:[%s4245_s2 + $0x78] sm:$0xff]  ;;  %1854 = vmatprep.subr.mxu1 %v201_v1  ;;  %v152_v6 = vld [vmem:[%s4245_s2 + $0x70] sm:$0xff]  ;;  %v151_v10 = vld [vmem:[%s4245_s2 + $0x68] sm:$0xff] }
   0x4   :  { %v185_v3 = vld [vmem:[%s4245_s2 + $0x178] sm:$0xff]  ;;  %1802 = vmatpush3.msra.mxu0 %v153_v2  ;;  %v184_v7 = vld [vmem:[%s4245_s2 + $0x170] sm:$0xff]  ;;  %v183_v11 = vld [vmem:[%s4245_s2 + $0x168] sm:$0xff] }
   0x5   :  { %1855 = vmatpush3.msra.mxu1 %v185_v3  ;;  %1803 = vmatprep.subr.mxu0 %v168_v4  ;;  %v166_v12 = vld [vmem:[%s4245_s2 + $0xe0] sm:$0xff]  ;;  %v165_v16 = vld [vmem:[%s4245_s2 + $0xd8] sm:$0xff]  ;;  %v164_v20 = vld [vmem:[%s4245_s2 + $0xd0] sm:$0xff] }
   0x6   :  { %1856 = vmatprep.subr.mxu1 %v200_v5  ;;  %1804 = vmatpush3.msra.mxu0 %v152_v6  ;;  %v198_v13 = vld [vmem:[%s4245_s2 + $0x1e0] sm:$0xff]  ;;  %v197_v17 = vld [vmem:[%s4245_s2 + $0x1d8] sm:$0xff]  ;;  %v196_v21 = vld [vmem:[%s4245_s2 + $0x1d0] sm:$0xff] }
   0x7   :  { %1857 = vmatpush3.msra.mxu1 %v184_v7  ;;  %1805 = vmatprep.subr.mxu0 %v167_v8  ;;  %v150_v14 = vld [vmem:[%s4245_s2 + $0x60] sm:$0xff]  ;;  %v149_v18 = vld [vmem:[%s4245_s2 + $0x58] sm:$0xff]  ;;  %v148_v22 = vld [vmem:[%s4245_s2 + $0x50] sm:$0xff] }
   0x8   :  { %1858 = vmatprep.subr.mxu1 %v199_v9  ;;  %v182_v15 = vld [vmem:[%s4245_s2 + $0x160] sm:$0xff]  ;;  %1806 = vmatpush3.msra.mxu0 %v151_v10  ;;  %v181_v19 = vld [vmem:[%s4245_s2 + $0x158] sm:$0xff]  ;;  %v180_v23 = vld [vmem:[%s4245_s2 + $0x150] sm:$0xff] }
   0x9   :  { %1859 = vmatpush3.msra.mxu1 %v183_v11  ;;  %1807 = vmatprep.subr.mxu0 %v166_v12  ;;  %v163_v24 = vld [vmem:[%s4245_s2 + $0xc8] sm:$0xff]  ;;  %v162_v28 = vld [vmem:[%s4245_s2 + $0xc0] sm:$0xff]  ;;  %v161_v32 = vld [vmem:[%s4245_s2 + $0xb8] sm:$0xff] }
   0xa   :  { %1860 = vmatprep.subr.mxu1 %v198_v13  ;;  %1808 = vmatpush3.msra.mxu0 %v150_v14  ;;  %v195_v25 = vld [vmem:[%s4245_s2 + $0x1c8] sm:$0xff]  ;;  %v194_v29 = vld [vmem:[%s4245_s2 + $0x1c0] sm:$0xff]  ;;  %v193_v33 = vld [vmem:[%s4245_s2 + $0x1b8] sm:$0xff] }
   0xb   :  { %1861 = vmatpush3.msra.mxu1 %v182_v15  ;;  %1809 = vmatprep.subr.mxu0 %v165_v16  ;;  %v147_v26 = vld [vmem:[%s4245_s2 + $0x48] sm:$0xff]  ;;  %v146_v30 = vld [vmem:[%s4245_s2 + $0x40] sm:$0xff]  ;;  %v145_v34 = vld [vmem:[%s4245_s2 + $0x38] sm:$0xff] }
   0xc   :  { %1862 = vmatprep.subr.mxu1 %v197_v17  ;;  %1810 = vmatpush3.msra.mxu0 %v149_v18  ;;  %v179_v27 = vld [vmem:[%s4245_s2 + $0x148] sm:$0xff]  ;;  %v178_v31 = vld [vmem:[%s4245_s2 + $0x140] sm:$0xff]  ;;  %v177_v35 = vld [vmem:[%s4245_s2 + $0x138] sm:$0xff] }
   0xd   :  { %1863 = vmatpush3.msra.mxu1 %v181_v19  ;;  %1811 = vmatprep.subr.mxu0 %v164_v20  ;;  %v160_v36 = vld [vmem:[%s4245_s2 + $0xb0] sm:$0xff]  ;;  %v159_v40 = vld [vmem:[%s4245_s2 + $0xa8] sm:$0xff]  ;;  %v158_v44 = vld [vmem:[%s4245_s2 + $0xa0] sm:$0xff] }
   0xe   :  { %1864 = vmatprep.subr.mxu1 %v196_v21  ;;  %1812 = vmatpush3.msra.mxu0 %v148_v22  ;;  %v192_v37 = vld [vmem:[%s4245_s2 + $0x1b0] sm:$0xff]  ;;  %v191_v41 = vld [vmem:[%s4245_s2 + $0x1a8] sm:$0xff]  ;;  %v190_v45 = vld [vmem:[%s4245_s2 + $0x1a0] sm:$0xff] }
   0xf   :  { %1865 = vmatpush3.msra.mxu1 %v180_v23  ;;  %1813 = vmatprep.subr.mxu0 %v163_v24  ;;  %v144_v38 = vld [vmem:[%s4245_s2 + $0x30] sm:$0xff]  ;;  %v143_v42 = vld [vmem:[%s4245_s2 + $0x28] sm:$0xff]  ;;  %v142_v46 = vld [vmem:[%s4245_s2 + $0x20] sm:$0xff] }
  0x10   :  { %1866 = vmatprep.subr.mxu1 %v195_v25  ;;  %1814 = vmatpush3.msra.mxu0 %v147_v26  ;;  %v176_v39 = vld [vmem:[%s4245_s2 + $0x130] sm:$0xff]  ;;  %v175_v43 = vld [vmem:[%s4245_s2 + $0x128] sm:$0xff]  ;;  %v174_v47 = vld [vmem:[%s4245_s2 + $0x120] sm:$0xff] }
  0x11   :  { %1867 = vmatpush3.msra.mxu1 %v179_v27  ;;  %1815 = vmatprep.subr.mxu0 %v162_v28  ;;  %v157_v48 = vld [vmem:[%s4245_s2 + $0x98] sm:$0xff]  ;;  %v156_v52 = vld [vmem:[%s4245_s2 + $0x90] sm:$0xff]  ;;  %v155_v56 = vld [vmem:[%s4245_s2 + $0x88] sm:$0xff] }
  0x12   :  { %1868 = vmatprep.subr.mxu1 %v194_v29  ;;  %1816 = vmatpush3.msra.mxu0 %v146_v30  ;;  %v189_v49 = vld [vmem:[%s4245_s2 + $0x198] sm:$0xff]  ;;  %v188_v53 = vld [vmem:[%s4245_s2 + $0x190] sm:$0xff]  ;;  %v187_v57 = vld [vmem:[%s4245_s2 + $0x188] sm:$0xff] }
  0x13   :  { %1869 = vmatpush3.msra.mxu1 %v178_v31  ;;  %1817 = vmatprep.subr.mxu0 %v161_v32  ;;  %v141_v50 = vld [vmem:[%s4245_s2 + $0x18] sm:$0xff]  ;;  %v140_v54 = vld [vmem:[%s4245_s2 + $0x10] sm:$0xff]  ;;  %v139_v58 = vld [vmem:[%s4245_s2 + $0x8] sm:$0xff] }
  0x14   :  { %1870 = vmatprep.subr.mxu1 %v193_v33  ;;  %1818 = vmatpush3.msra.mxu0 %v145_v34  ;;  %v173_v51 = vld [vmem:[%s4245_s2 + $0x118] sm:$0xff]  ;;  %v172_v55 = vld [vmem:[%s4245_s2 + $0x110] sm:$0xff]  ;;  %v171_v59 = vld [vmem:[%s4245_s2 + $0x108] sm:$0xff] }
  0x15   :  { %1871 = vmatpush3.msra.mxu1 %v177_v35  ;;  %1819 = vmatprep.subr.mxu0 %v160_v36  ;;  %v154_v60 = vld [vmem:[%s4245_s2 + $0x80] sm:$0xff]  ;;  %v27_v63 = vld [vmem:[%s4246_s0 + $0x8] sm:$0xff]  ;;  %v29_v2 = vld [vmem:[%s4246_s0 + $0x18] sm:$0xff] }
  0x16   :  { %1872 = vmatprep.subr.mxu1 %v192_v37  ;;  %1820 = vmatpush3.msra.mxu0 %v144_v38  ;;  %v186_v61 = vld [vmem:[%s4245_s2 + $0x180] sm:$0xff]  ;;  %v233_v3 = vld [vmem:[%s4245_s2 + $0x2f8] sm:$0xff]  ;;  %v28_v5 = vld [vmem:[%s4246_s0 + $0x10] sm:$0xff] }
  0x17   :  { %1873 = vmatpush3.msra.mxu1 %v176_v39  ;;  %1821 = vmatprep.subr.mxu0 %v159_v40  ;;  %v138_v62 = vld [vmem:[%s4245_s2] sm:$0xff]  ;;  %v265_v4 = vld [vmem:[%s4245_s2 + $0x3f8] sm:$0xff]  ;;  %v232_v8 = vld [vmem:[%s4245_s2 + $0x2f0] sm:$0xff] }
  0x18   :  { %1874 = vmatprep.subr.mxu1 %v191_v41  ;;  %1822 = vmatpush3.msra.mxu0 %v143_v42  ;;  %v170_v0 = vld [vmem:[%s4245_s2 + $0x100] sm:$0xff]  ;;  %v217_v6 = vld [vmem:[%s4245_s2 + $0x278] sm:$0xff]  ;;  %v264_v9 = vld [vmem:[%s4245_s2 + $0x3f0] sm:$0xff] }
  0x19   :  { %1875 = vmatpush3.msra.mxu1 %v175_v43  ;;  %1823 = vmatprep.subr.mxu0 %v158_v44  ;;  %v26_v1 = vld [vmem:[%s4246_s0] sm:$0xff]  ;;  %v249_v7 = vld [vmem:[%s4245_s2 + $0x378] sm:$0xff]  ;;  %v216_v10 = vld [vmem:[%s4245_s2 + $0x270] sm:$0xff] }
  0x1a   :  { %1876 = vmatprep.subr.mxu1 %v190_v45  ;;  %1824 = vmatpush3.msra.mxu0 %v142_v46  ;;  %v248_v11 = vld [vmem:[%s4245_s2 + $0x370] sm:$0xff]  ;;  %v231_v12 = vld [vmem:[%s4245_s2 + $0x2e8] sm:$0xff]  ;;  %v230_v17 = vld [vmem:[%s4245_s2 + $0x2e0] sm:$0xff] }
  0x1b   :  { %1877 = vmatpush3.msra.mxu1 %v174_v47  ;;  %1825 = vmatprep.subr.mxu0 %v157_v48  ;;  %v263_v13 = vld [vmem:[%s4245_s2 + $0x3e8] sm:$0xff]  ;;  %v262_v18 = vld [vmem:[%s4245_s2 + $0x3e0] sm:$0xff]  ;;  %v45_v22 = vld [vmem:[%s4246_s0 + $0x98] sm:$0xff] }
  0x1c   :  { %1878 = vmatprep.subr.mxu1 %v189_v49  ;;  %1826 = vmatpush3.msra.mxu0 %v141_v50  ;;  %v215_v14 = vld [vmem:[%s4245_s2 + $0x268] sm:$0xff]  ;;  %v42_v19 = vld [vmem:[%s4246_s0 + $0x80] sm:$0xff]  ;;  %v229_v23 = vld [vmem:[%s4245_s2 + $0x2d8] sm:$0xff] }
  0x1d   :  { %1879 = vmatpush3.msra.mxu1 %v173_v51  ;;  %1827 = vmatprep.subr.mxu0 %v156_v52  ;;  %v247_v15 = vld [vmem:[%s4245_s2 + $0x368] sm:$0xff]  ;;  %v214_v20 = vld [vmem:[%s4245_s2 + $0x260] sm:$0xff]  ;;  %v261_v24 = vld [vmem:[%s4245_s2 + $0x3d8] sm:$0xff] }
  0x1e   :  { %1880 = vmatprep.subr.mxu1 %v188_v53  ;;  %1828 = vmatpush3.msra.mxu0 %v140_v54  ;;  %v43_v16 = vld [vmem:[%s4246_s0 + $0x88] sm:$0xff]  ;;  %v246_v21 = vld [vmem:[%s4245_s2 + $0x360] sm:$0xff]  ;;  %v44_v25 = vld [vmem:[%s4246_s0 + $0x90] sm:$0xff] }
  0x1f   :  { %1881 = vmatpush3.msra.mxu1 %v172_v55  ;;  %1829 = vmatprep.subr.mxu0 %v155_v56  ;;  %v213_v26 = vld [vmem:[%s4245_s2 + $0x258] sm:$0xff]  ;;  %v59_v28 = vld [vmem:[%s4246_s0 + $0x108] sm:$0xff]  ;;  %v228_v29 = vld [vmem:[%s4245_s2 + $0x2d0] sm:$0xff] }
  0x20   :  { %1882 = vmatprep.subr.mxu1 %v187_v57  ;;  %1830 = vmatpush3.msra.mxu0 %v139_v58  ;;  %v245_v27 = vld [vmem:[%s4245_s2 + $0x358] sm:$0xff]  ;;  %v260_v30 = vld [vmem:[%s4245_s2 + $0x3d0] sm:$0xff]  ;;  %v58_v31 = vld [vmem:[%s4246_s0 + $0x100] sm:$0xff] }
  0x21   :  { %1883 = vmatpush3.msra.mxu1 %v171_v59  ;;  %1831 = vmatprep.subr.mxu0 %v154_v60  ;;  %v212_v32 = vld [vmem:[%s4245_s2 + $0x250] sm:$0xff]  ;;  %v61_v34 = vld [vmem:[%s4246_s0 + $0x118] sm:$0xff]  ;;  %v227_v35 = vld [vmem:[%s4245_s2 + $0x2c8] sm:$0xff] }
  0x22   :  { %1884 = vmatprep.subr.mxu1 %v186_v61  ;;  %1832 = vmatpush3.msra.mxu0 %v138_v62  ;;  %v244_v33 = vld [vmem:[%s4245_s2 + $0x350] sm:$0xff]  ;;  %v259_v36 = vld [vmem:[%s4245_s2 + $0x3c8] sm:$0xff]  ;;  %v226_v41 = vld [vmem:[%s4245_s2 + $0x2c0] sm:$0xff] }
  0x23   :  { %465 = vmatprep.mubr.f32.mxu0 %v27_v63  ;;  %1885 = vmatpush3.msra.mxu1 %v170_v0  ;;  %v60_v37 = vld [vmem:[%s4246_s0 + $0x110] sm:$0xff]  ;;  %v211_v38 = vld [vmem:[%s4245_s2 + $0x248] sm:$0xff]  ;;  %v258_v42 = vld [vmem:[%s4245_s2 + $0x3c0] sm:$0xff] }
  0x24   :  { %466 = vmatmul.mubr.f32.vlgmr.msra.gmra.mxu0 %v26_v1  ;;  %565 = vmatprep.mubr.f32.mxu1 %v29_v2  ;;  %v243_v39 = vld [vmem:[%s4245_s2 + $0x348] sm:$0xff]  ;;  %v74_v43 = vld [vmem:[%s4246_s0 + $0x180] sm:$0xff]  ;;  %v77_v46 = vld [vmem:[%s4246_s0 + $0x198] sm:$0xff] }
  0x25   :  { %1907 = vmatprep.subr.mxu0 %v233_v3  ;;  %1960 = vmatprep.subr.mxu1 %v265_v4  ;;  %v75_v40 = vld [vmem:[%s4246_s0 + $0x188] sm:$0xff]  ;;  %v210_v44 = vld [vmem:[%s4245_s2 + $0x240] sm:$0xff]  ;;  %v225_v47 = vld [vmem:[%s4245_s2 + $0x2b8] sm:$0xff] }
  0x26   :  { %566 = vmatmul.mubr.f32.vlgmr.msra.gmra.mxu1 %v28_v5  ;;  %1908 = vmatpush3.msra.mxu0 %v217_v6  ;;  %v242_v45 = vld [vmem:[%s4245_s2 + $0x340] sm:$0xff]  ;;  %v257_v48 = vld [vmem:[%s4245_s2 + $0x3b8] sm:$0xff]  ;;  %v76_v49 = vld [vmem:[%s4246_s0 + $0x190] sm:$0xff] }
  0x27   :  { %1961 = vmatpush3.msra.mxu1 %v249_v7  ;;  %1909 = vmatprep.subr.mxu0 %v232_v8  ;;  %v209_v50 = vld [vmem:[%s4245_s2 + $0x238] sm:$0xff]  ;;  %v91_v52 = vld [vmem:[%s4246_s0 + $0x208] sm:$0xff]  ;;  %v224_v53 = vld [vmem:[%s4245_s2 + $0x2b0] sm:$0xff] }
  0x28   :  { %1962 = vmatprep.subr.mxu1 %v264_v9  ;;  %1910 = vmatpush3.msra.mxu0 %v216_v10  ;;  %v241_v51 = vld [vmem:[%s4245_s2 + $0x338] sm:$0xff]  ;;  %v256_v54 = vld [vmem:[%s4245_s2 + $0x3b0] sm:$0xff]  ;;  %v90_v55 = vld [vmem:[%s4246_s0 + $0x200] sm:$0xff] }
  0x29   :  { %1963 = vmatpush3.msra.mxu1 %v248_v11  ;;  %1911 = vmatprep.subr.mxu0 %v231_v12  ;;  %v208_v56 = vld [vmem:[%s4245_s2 + $0x230] sm:$0xff]  ;;  %v93_v58 = vld [vmem:[%s4246_s0 + $0x218] sm:$0xff]  ;;  %v223_v59 = vld [vmem:[%s4245_s2 + $0x2a8] sm:$0xff] }
  0x2a   :  { %1964 = vmatprep.subr.mxu1 %v263_v13  ;;  %1912 = vmatpush3.msra.mxu0 %v215_v14  ;;  %v240_v57 = vld [vmem:[%s4245_s2 + $0x330] sm:$0xff]  ;;  %v255_v60 = vld [vmem:[%s4245_s2 + $0x3a8] sm:$0xff]  ;;  %v222_v1 = vld [vmem:[%s4245_s2 + $0x2a0] sm:$0xff] }
  0x2b   :  { %1965 = vmatpush3.msra.mxu1 %v247_v15  ;;  %470 = vmatprep.mubr.f32.mxu0 %v43_v16  ;;  %v92_v61 = vld [vmem:[%s4246_s0 + $0x210] sm:$0xff]  ;;  %v207_v62 = vld [vmem:[%s4245_s2 + $0x228] sm:$0xff]  ;;  %v254_v2 = vld [vmem:[%s4245_s2 + $0x3a0] sm:$0xff] }
  0x2c   :  { %1913 = vmatprep.subr.mxu0 %v230_v17  ;;  %1966 = vmatprep.subr.mxu1 %v262_v18  ;;  %v239_v63 = vld [vmem:[%s4245_s2 + $0x328] sm:$0xff]  ;;  %v106_v3 = vld [vmem:[%s4246_s0 + $0x280] sm:$0xff]  ;;  %v109_v6 = vld [vmem:[%s4246_s0 + $0x298] sm:$0xff] }
  0x2d   :  { %471 = vmatmul.mubr.f32.gmra.mxu0 %v42_v19  ;;  %1967 = vmatpush3.msra.mxu1 %v246_v21  ;;  %v107_v0 = vld [vmem:[%s4246_s0 + $0x288] sm:$0xff]  ;;  %v206_v4 = vld [vmem:[%s4245_s2 + $0x220] sm:$0xff]  ;;  %v221_v7 = vld [vmem:[%s4245_s2 + $0x298] sm:$0xff] }
  0x2e   :  { %1914 = vmatpush3.msra.mxu0 %v214_v20  ;;  %570 = vmatprep.mubr.f32.mxu1 %v45_v22  ;;  %v238_v5 = vld [vmem:[%s4245_s2 + $0x320] sm:$0xff]  ;;  %v253_v8 = vld [vmem:[%s4245_s2 + $0x398] sm:$0xff]  ;;  %v108_v9 = vld [vmem:[%s4246_s0 + $0x290] sm:$0xff] }
  0x2f   :  { %1915 = vmatprep.subr.mxu0 %v229_v23  ;;  %1968 = vmatprep.subr.mxu1 %v261_v24  ;;  %v205_v10 = vld [vmem:[%s4245_s2 + $0x218] sm:$0xff]  ;;  %v123_v12 = vld [vmem:[%s4246_s0 + $0x308] sm:$0xff]  ;;  %v220_v13 = vld [vmem:[%s4245_s2 + $0x290] sm:$0xff] }
  0x30   :  { %571 = vmatmul.mubr.f32.gmra.mxu1 %v44_v25  ;;  %1916 = vmatpush3.msra.mxu0 %v213_v26  ;;  %v237_v11 = vld [vmem:[%s4245_s2 + $0x318] sm:$0xff]  ;;  %v252_v14 = vld [vmem:[%s4245_s2 + $0x390] sm:$0xff]  ;;  %v122_v15 = vld [vmem:[%s4246_s0 + $0x300] sm:$0xff] }
  0x31   :  { %1969 = vmatpush3.msra.mxu1 %v245_v27  ;;  %475 = vmatprep.mubr.f32.mxu0 %v59_v28  ;;  %v204_v16 = vld [vmem:[%s4245_s2 + $0x210] sm:$0xff]  ;;  %v125_v18 = vld [vmem:[%s4246_s0 + $0x318] sm:$0xff]  ;;  %v219_v19 = vld [vmem:[%s4245_s2 + $0x288] sm:$0xff] }
  0x32   :  { %1917 = vmatprep.subr.mxu0 %v228_v29  ;;  %1970 = vmatprep.subr.mxu1 %v260_v30  ;;  %v236_v17 = vld [vmem:[%s4245_s2 + $0x310] sm:$0xff]  ;;  %v251_v20 = vld [vmem:[%s4245_s2 + $0x388] sm:$0xff]  ;;  %v218_v24 = vld [vmem:[%s4245_s2 + $0x280] sm:$0xff] }
  0x33   :  { %476 = vmatmul.mubr.f32.gmra.mxu0 %v58_v31  ;;  %1971 = vmatpush3.msra.mxu1 %v244_v33  ;;  %v124_v21 = vld [vmem:[%s4246_s0 + $0x310] sm:$0xff]  ;;  %v203_v22 = vld [vmem:[%s4245_s2 + $0x208] sm:$0xff]  ;;  %v250_v25 = vld [vmem:[%s4245_s2 + $0x380] sm:$0xff] }
  0x34   :  { %1918 = vmatpush3.msra.mxu0 %v212_v32  ;;  %575 = vmatprep.mubr.f32.mxu1 %v61_v34  ;;  %v235_v23 = vld [vmem:[%s4245_s2 + $0x308] sm:$0xff]  ;;  %v202_v26 = vld [vmem:[%s4245_s2 + $0x200] sm:$0xff]  ;;  %v33_v30 = vld [vmem:[%s4246_s0 + $0x38] sm:$0xff] }
  0x35   :  { %1919 = vmatprep.subr.mxu0 %v227_v35  ;;  %1972 = vmatprep.subr.mxu1 %v259_v36  ;;  %v31_v27 = vld [vmem:[%s4246_s0 + $0x28] sm:$0xff]  ;;  %v234_v28 = vld [vmem:[%s4245_s2 + $0x300] sm:$0xff]  ;;  %v297_v31 = vld [vmem:[%s4245_s2 + $0x4f8] sm:$0xff] }
  0x36   :  { %576 = vmatmul.mubr.f32.gmra.mxu1 %v60_v37  ;;  %1920 = vmatpush3.msra.mxu0 %v211_v38  ;;  %v30_v29 = vld [vmem:[%s4246_s0 + $0x20] sm:$0xff]  ;;  %v329_v32 = vld [vmem:[%s4245_s2 + $0x5f8] sm:$0xff]  ;;  %v32_v33 = vld [vmem:[%s4246_s0 + $0x30] sm:$0xff] }
  0x37   :  { %1973 = vmatpush3.msra.mxu1 %v243_v39  ;;  %480 = vmatprep.mubr.f32.mxu0 %v75_v40  ;;  %v281_v34 = vld [vmem:[%s4245_s2 + $0x478] sm:$0xff]  ;;  %v296_v36 = vld [vmem:[%s4245_s2 + $0x4f0] sm:$0xff]  ;;  %v47_v38 = vld [vmem:[%s4246_s0 + $0xa8] sm:$0xff] }
  0x38   :  { %1921 = vmatprep.subr.mxu0 %v226_v41  ;;  %1974 = vmatprep.subr.mxu1 %v258_v42  ;;  %v313_v35 = vld [vmem:[%s4245_s2 + $0x578] sm:$0xff]  ;;  %v328_v37 = vld [vmem:[%s4245_s2 + $0x5f0] sm:$0xff]  ;;  %v46_v41 = vld [vmem:[%s4246_s0 + $0xa0] sm:$0xff] }
  0x39   :  { %481 = vmatmul.mubr.f32.gmra.mxu0 %v74_v43  ;;  %1975 = vmatpush3.msra.mxu1 %v242_v45  ;;  %v280_v39 = vld [vmem:[%s4245_s2 + $0x470] sm:$0xff]  ;;  %v295_v42 = vld [vmem:[%s4245_s2 + $0x4e8] sm:$0xff] }
  0x3a   :  { %1922 = vmatpush3.msra.mxu0 %v210_v44  ;;  %580 = vmatprep.mubr.f32.mxu1 %v77_v46  ;;  %v312_v40 = vld [vmem:[%s4245_s2 + $0x570] sm:$0xff]  ;;  %v327_v43 = vld [vmem:[%s4245_s2 + $0x5e8] sm:$0xff]  ;;  %v49_v44 = vld [vmem:[%s4246_s0 + $0xb8] sm:$0xff] }
  0x3b   :  { %1923 = vmatprep.subr.mxu0 %v225_v47  ;;  %1976 = vmatprep.subr.mxu1 %v257_v48  ;;  %v279_v45 = vld [vmem:[%s4245_s2 + $0x468] sm:$0xff]  ;;  %v294_v47 = vld [vmem:[%s4245_s2 + $0x4e0] sm:$0xff]  ;;  %v48_v48 = vld [vmem:[%s4246_s0 + $0xb0] sm:$0xff] }
  0x3c   :  { %581 = vmatmul.mubr.f32.gmra.mxu1 %v76_v49  ;;  %1924 = vmatpush3.msra.mxu0 %v209_v50  ;;  %v311_v46 = vld [vmem:[%s4245_s2 + $0x568] sm:$0xff]  ;;  %v326_v49 = vld [vmem:[%s4245_s2 + $0x5e0] sm:$0xff] }
  0x3d   :  { %1977 = vmatpush3.msra.mxu1 %v241_v51  ;;  %485 = vmatprep.mubr.f32.mxu0 %v91_v52  ;;  %v63_v50 = vld [vmem:[%s4246_s0 + $0x128] sm:$0xff]  ;;  %v278_v51 = vld [vmem:[%s4245_s2 + $0x460] sm:$0xff] }
  0x3e   :  { %1925 = vmatprep.subr.mxu0 %v224_v53  ;;  %1978 = vmatprep.subr.mxu1 %v256_v54  ;;  %v310_v52 = vld [vmem:[%s4245_s2 + $0x560] sm:$0xff]  ;;  %v293_v54 = vld [vmem:[%s4245_s2 + $0x4d8] sm:$0xff] }
  0x3f   :  { %486 = vmatmul.mubr.f32.gmra.mxu0 %v90_v55  ;;  %1979 = vmatpush3.msra.mxu1 %v240_v57  ;;  %v62_v53 = vld [vmem:[%s4246_s0 + $0x120] sm:$0xff]  ;;  %v325_v55 = vld [vmem:[%s4245_s2 + $0x5d8] sm:$0xff] }
  0x40   :  { %1926 = vmatpush3.msra.mxu0 %v208_v56  ;;  %585 = vmatprep.mubr.f32.mxu1 %v93_v58  ;;  %v65_v56 = vld [vmem:[%s4246_s0 + $0x138] sm:$0xff] }
  0x41   :  { %1927 = vmatprep.subr.mxu0 %v223_v59  ;;  %1980 = vmatprep.subr.mxu1 %v255_v60  ;;  %v277_v57 = vld [vmem:[%s4245_s2 + $0x458] sm:$0xff]  ;;  %v292_v59 = vld [vmem:[%s4245_s2 + $0x4d0] sm:$0xff] }
  0x42   :  { %586 = vmatmul.mubr.f32.gmra.mxu1 %v92_v61  ;;  %1928 = vmatpush3.msra.mxu0 %v207_v62  ;;  %v309_v58 = vld [vmem:[%s4245_s2 + $0x558] sm:$0xff]  ;;  %v64_v60 = vld [vmem:[%s4246_s0 + $0x130] sm:$0xff]  ;;  %v79_v62 = vld [vmem:[%s4246_s0 + $0x1a8] sm:$0xff] }
  0x43   :  { %1981 = vmatpush3.msra.mxu1 %v239_v63  ;;  %490 = vmatprep.mubr.f32.mxu0 %v107_v0  ;;  %v324_v61 = vld [vmem:[%s4245_s2 + $0x5d0] sm:$0xff] }
  0x44   :  { %1929 = vmatprep.subr.mxu0 %v222_v1  ;;  %1982 = vmatprep.subr.mxu1 %v254_v2  ;;  %v276_v63 = vld [vmem:[%s4245_s2 + $0x450] sm:$0xff]  ;;  %v78_v1 = vld [vmem:[%s4246_s0 + $0x1a0] sm:$0xff]  ;;  %v291_v2 = vld [vmem:[%s4245_s2 + $0x4c8] sm:$0xff] }
  0x45   :  { %491 = vmatmul.mubr.f32.gmra.mxu0 %v106_v3  ;;  %1983 = vmatpush3.msra.mxu1 %v238_v5  ;;  %v308_v0 = vld [vmem:[%s4245_s2 + $0x550] sm:$0xff]  ;;  %v323_v3 = vld [vmem:[%s4245_s2 + $0x5c8] sm:$0xff] }
  0x46   :  { %1930 = vmatpush3.msra.mxu0 %v206_v4  ;;  %590 = vmatprep.mubr.f32.mxu1 %v109_v6  ;;  %v81_v4 = vld [vmem:[%s4246_s0 + $0x1b8] sm:$0xff]  ;;  %v275_v5 = vld [vmem:[%s4245_s2 + $0x448] sm:$0xff] }
  0x47   :  { %1931 = vmatprep.subr.mxu0 %v221_v7  ;;  %1984 = vmatprep.subr.mxu1 %v253_v8  ;;  %v307_v6 = vld [vmem:[%s4245_s2 + $0x548] sm:$0xff]  ;;  %v290_v7 = vld [vmem:[%s4245_s2 + $0x4c0] sm:$0xff]  ;;  %v80_v8 = vld [vmem:[%s4246_s0 + $0x1b0] sm:$0xff] }
  0x48   :  { %591 = vmatmul.mubr.f32.gmra.mxu1 %v108_v9  ;;  %1932 = vmatpush3.msra.mxu0 %v205_v10  ;;  %v322_v9 = vld [vmem:[%s4245_s2 + $0x5c0] sm:$0xff]  ;;  %v95_v10 = vld [vmem:[%s4246_s0 + $0x228] sm:$0xff] }
  0x49   :  { %1985 = vmatpush3.msra.mxu1 %v237_v11  ;;  %495 = vmatprep.mubr.f32.mxu0 %v123_v12  ;;  %v274_v11 = vld [vmem:[%s4245_s2 + $0x440] sm:$0xff] }
  0x4a   :  { %1933 = vmatprep.subr.mxu0 %v220_v13  ;;  %1986 = vmatprep.subr.mxu1 %v252_v14  ;;  %v306_v12 = vld [vmem:[%s4245_s2 + $0x540] sm:$0xff]  ;;  %v289_v14 = vld [vmem:[%s4245_s2 + $0x4b8] sm:$0xff] }
  0x4b   :  { %496 = vmatmul.mubr.f32.gmra.mxu0 %v122_v15  ;;  %1987 = vmatpush3.msra.mxu1 %v236_v17  ;;  %v94_v13 = vld [vmem:[%s4246_s0 + $0x220] sm:$0xff]  ;;  %v321_v15 = vld [vmem:[%s4245_s2 + $0x5b8] sm:$0xff] }
  0x4c   :  { %1934 = vmatpush3.msra.mxu0 %v204_v16  ;;  %595 = vmatprep.mubr.f32.mxu1 %v125_v18  ;;  %v97_v16 = vld [vmem:[%s4246_s0 + $0x238] sm:$0xff] }
  0x4d   :  { %1935 = vmatprep.subr.mxu0 %v219_v19  ;;  %1988 = vmatprep.subr.mxu1 %v251_v20  ;;  %v273_v17 = vld [vmem:[%s4245_s2 + $0x438] sm:$0xff]  ;;  %v288_v19 = vld [vmem:[%s4245_s2 + $0x4b0] sm:$0xff] }
  0x4e   :  { %596 = vmatmul.mubr.f32.gmra.mxu1 %v124_v21  ;;  %1936 = vmatpush3.msra.mxu0 %v203_v22  ;;  %v305_v18 = vld [vmem:[%s4245_s2 + $0x538] sm:$0xff]  ;;  %v96_v20 = vld [vmem:[%s4246_s0 + $0x230] sm:$0xff]  ;;  %v111_v22 = vld [vmem:[%s4246_s0 + $0x2a8] sm:$0xff] }
  0x4f   :  { %1989 = vmatpush3.msra.mxu1 %v235_v23  ;;  %1937 = vmatprep.subr.mxu0 %v218_v24  ;;  %v320_v21 = vld [vmem:[%s4245_s2 + $0x5b0] sm:$0xff] }
  0x50   :  { %1990 = vmatprep.subr.mxu1 %v250_v25  ;;  %1938 = vmatpush3.msra.mxu0 %v202_v26  ;;  %v272_v23 = vld [vmem:[%s4245_s2 + $0x430] sm:$0xff]  ;;  %v110_v25 = vld [vmem:[%s4246_s0 + $0x2a0] sm:$0xff]  ;;  %v287_v26 = vld [vmem:[%s4245_s2 + $0x4a8] sm:$0xff] }
  0x51   :  { %665 = vmatprep.mubr.f32.mxu0 %v31_v27  ;;  %1991 = vmatpush3.msra.mxu1 %v234_v28  ;;  %v304_v24 = vld [vmem:[%s4245_s2 + $0x530] sm:$0xff]  ;;  %v319_v27 = vld [vmem:[%s4245_s2 + $0x5a8] sm:$0xff]  ;;  %v113_v28 = vld [vmem:[%s4246_s0 + $0x2b8] sm:$0xff] }
  0x52   :  { %666 = vmatmul.mubr.f32.vlgmr.msra.gmra.mxu0 %v30_v29  ;;  %765 = vmatprep.mubr.f32.mxu1 %v33_v30  ;;  %v271_v29 = vld [vmem:[%s4245_s2 + $0x428] sm:$0xff] }
  0x53   :  { %2013 = vmatprep.subr.mxu0 %v297_v31  ;;  %2066 = vmatprep.subr.mxu1 %v329_v32  ;;  %v303_v30 = vld [vmem:[%s4245_s2 + $0x528] sm:$0xff]  ;;  %v286_v31 = vld [vmem:[%s4245_s2 + $0x4a0] sm:$0xff]  ;;  %v112_v32 = vld [vmem:[%s4246_s0 + $0x2b0] sm:$0xff] }
  0x54   :  { %766 = vmatmul.mubr.f32.vlgmr.msra.gmra.mxu1 %v32_v33  ;;  %2014 = vmatpush3.msra.mxu0 %v281_v34  ;;  %v318_v33 = vld [vmem:[%s4245_s2 + $0x5a0] sm:$0xff]  ;;  %v127_v34 = vld [vmem:[%s4246_s0 + $0x328] sm:$0xff] }
  0x55   :  { %2067 = vmatpush3.msra.mxu1 %v313_v35  ;;  %2015 = vmatprep.subr.mxu0 %v296_v36  ;;  %v270_v35 = vld [vmem:[%s4245_s2 + $0x420] sm:$0xff] }
  0x56   :  { %2068 = vmatprep.subr.mxu1 %v328_v37  ;;  %670 = vmatprep.mubr.f32.mxu0 %v47_v38  ;;  %v302_v36 = vld [vmem:[%s4245_s2 + $0x520] sm:$0xff]  ;;  %v285_v38 = vld [vmem:[%s4245_s2 + $0x498] sm:$0xff] }
  0x57   :  { %2016 = vmatpush3.msra.mxu0 %v280_v39  ;;  %2069 = vmatpush3.msra.mxu1 %v312_v40  ;;  %v126_v37 = vld [vmem:[%s4246_s0 + $0x320] sm:$0xff]  ;;  %v317_v39 = vld [vmem:[%s4245_s2 + $0x598] sm:$0xff] }
  0x58   :  { %671 = vmatmul.mubr.f32.gmra.mxu0 %v46_v41  ;;  %2017 = vmatprep.subr.mxu0 %v295_v42  ;;  %v129_v40 = vld [vmem:[%s4246_s0 + $0x338] sm:$0xff] }
  0x59   :  { %2070 = vmatprep.subr.mxu1 %v327_v43  ;;  %770 = vmatprep.mubr.f32.mxu1 %v49_v44  ;;  %v269_v41 = vld [vmem:[%s4245_s2 + $0x418] sm:$0xff]  ;;  %v284_v43 = vld [vmem:[%s4245_s2 + $0x490] sm:$0xff] }
  0x5a   :  { %2018 = vmatpush3.msra.mxu0 %v279_v45  ;;  %2071 = vmatpush3.msra.mxu1 %v311_v46  ;;  %v301_v42 = vld [vmem:[%s4245_s2 + $0x518] sm:$0xff]  ;;  %v128_v44 = vld [vmem:[%s4246_s0 + $0x330] sm:$0xff] }
  0x5b   :  { %2019 = vmatprep.subr.mxu0 %v294_v47  ;;  %771 = vmatmul.mubr.f32.gmra.mxu1 %v48_v48  ;;  %v316_v45 = vld [vmem:[%s4245_s2 + $0x590] sm:$0xff]  ;;  %v283_v48 = vld [vmem:[%s4245_s2 + $0x488] sm:$0xff] }
  0x5c   :  { %2072 = vmatprep.subr.mxu1 %v326_v49  ;;  %675 = vmatprep.mubr.f32.mxu0 %v63_v50  ;;  %v268_v46 = vld [vmem:[%s4245_s2 + $0x410] sm:$0xff]  ;;  %v315_v49 = vld [vmem:[%s4245_s2 + $0x588] sm:$0xff] }
  0x5d   :  { %2020 = vmatpush3.msra.mxu0 %v278_v51  ;;  %2073 = vmatpush3.msra.mxu1 %v310_v52  ;;  %v300_v47 = vld [vmem:[%s4245_s2 + $0x510] sm:$0xff]  ;;  %v267_v50 = vld [vmem:[%s4245_s2 + $0x408] sm:$0xff]  ;;  %v282_v52 = vld [vmem:[%s4245_s2 + $0x480] sm:$0xff] }
  0x5e   :  { %676 = vmatmul.mubr.f32.gmra.mxu0 %v62_v53  ;;  %2021 = vmatprep.subr.mxu0 %v293_v54  ;;  %v299_v51 = vld [vmem:[%s4245_s2 + $0x508] sm:$0xff]  ;;  %v314_v53 = vld [vmem:[%s4245_s2 + $0x580] sm:$0xff] }
  0x5f   :  { %2074 = vmatprep.subr.mxu1 %v325_v55  ;;  %775 = vmatprep.mubr.f32.mxu1 %v65_v56  ;;  %v266_v54 = vld [vmem:[%s4245_s2 + $0x400] sm:$0xff]  ;;  %v35_v55 = vld [vmem:[%s4246_s0 + $0x48] sm:$0xff] }
  0x60   :  { %2022 = vmatpush3.msra.mxu0 %v277_v57  ;;  %2075 = vmatpush3.msra.mxu1 %v309_v58  ;;  %v298_v56 = vld [vmem:[%s4245_s2 + $0x500] sm:$0xff]  ;;  %v37_v58 = vld [vmem:[%s4246_s0 + $0x58] sm:$0xff] }
  0x61   :  { %2023 = vmatprep.subr.mxu0 %v292_v59  ;;  %776 = vmatmul.mubr.f32.gmra.mxu1 %v64_v60  ;;  %v34_v57 = vld [vmem:[%s4246_s0 + $0x40] sm:$0xff]  ;;  %v361_v59 = vld [vmem:[%s4245_s2 + $0x6f8] sm:$0xff] }
  0x62   :  { %2076 = vmatprep.subr.mxu1 %v324_v61  ;;  %680 = vmatprep.mubr.f32.mxu0 %v79_v62  ;;  %v393_v60 = vld [vmem:[%s4245_s2 + $0x7f8] sm:$0xff]  ;;  %v36_v61 = vld [vmem:[%s4246_s0 + $0x50] sm:$0xff] }
  0x63   :  { %2024 = vmatpush3.msra.mxu0 %v276_v63  ;;  %2077 = vmatpush3.msra.mxu1 %v308_v0  ;;  %v345_v62 = vld [vmem:[%s4245_s2 + $0x678] sm:$0xff]  ;;  %v360_v0 = vld [vmem:[%s4245_s2 + $0x6f0] sm:$0xff] }
  0x64   :  { %681 = vmatmul.mubr.f32.gmra.mxu0 %v78_v1  ;;  %2025 = vmatprep.subr.mxu0 %v291_v2  ;;  %v377_v63 = vld [vmem:[%s4245_s2 + $0x778] sm:$0xff]  ;;  %v392_v1 = vld [vmem:[%s4245_s2 + $0x7f0] sm:$0xff]  ;;  %v51_v2 = vld [vmem:[%s4246_s0 + $0xc8] sm:$0xff] }
  0x65   :  { %2078 = vmatprep.subr.mxu1 %v323_v3  ;;  %780 = vmatprep.mubr.f32.mxu1 %v81_v4  ;;  %v344_v3 = vld [vmem:[%s4245_s2 + $0x670] sm:$0xff] }
  0x66   :  { %2026 = vmatpush3.msra.mxu0 %v275_v5  ;;  %2079 = vmatpush3.msra.mxu1 %v307_v6  ;;  %v376_v4 = vld [vmem:[%s4245_s2 + $0x770] sm:$0xff]  ;;  %v50_v5 = vld [vmem:[%s4246_s0 + $0xc0] sm:$0xff]  ;;  %v359_v6 = vld [vmem:[%s4245_s2 + $0x6e8] sm:$0xff] }
  0x67   :  { %2027 = vmatprep.subr.mxu0 %v290_v7  ;;  %781 = vmatmul.mubr.f32.gmra.mxu1 %v80_v8  ;;  %v391_v7 = vld [vmem:[%s4245_s2 + $0x7e8] sm:$0xff]  ;;  %v53_v8 = vld [vmem:[%s4246_s0 + $0xd8] sm:$0xff] }
  0x68   :  { %2080 = vmatprep.subr.mxu1 %v322_v9  ;;  %685 = vmatprep.mubr.f32.mxu0 %v95_v10  ;;  %v343_v9 = vld [vmem:[%s4245_s2 + $0x668] sm:$0xff] }
  0x69   :  { %2028 = vmatpush3.msra.mxu0 %v274_v11  ;;  %2081 = vmatpush3.msra.mxu1 %v306_v12  ;;  %v375_v10 = vld [vmem:[%s4245_s2 + $0x768] sm:$0xff]  ;;  %v358_v11 = vld [vmem:[%s4245_s2 + $0x6e0] sm:$0xff]  ;;  %v52_v12 = vld [vmem:[%s4246_s0 + $0xd0] sm:$0xff] }
  0x6a   :  { %686 = vmatmul.mubr.f32.gmra.mxu0 %v94_v13  ;;  %2029 = vmatprep.subr.mxu0 %v289_v14  ;;  %v390_v13 = vld [vmem:[%s4245_s2 + $0x7e0] sm:$0xff]  ;;  %v67_v14 = vld [vmem:[%s4246_s0 + $0x148] sm:$0xff] }
  0x6b   :  { %2082 = vmatprep.subr.mxu1 %v321_v15  ;;  %785 = vmatprep.mubr.f32.mxu1 %v97_v16  ;;  %v342_v15 = vld [vmem:[%s4245_s2 + $0x660] sm:$0xff] }
  0x6c   :  { %2030 = vmatpush3.msra.mxu0 %v273_v17  ;;  %2083 = vmatpush3.msra.mxu1 %v305_v18  ;;  %v374_v16 = vld [vmem:[%s4245_s2 + $0x760] sm:$0xff]  ;;  %v357_v18 = vld [vmem:[%s4245_s2 + $0x6d8] sm:$0xff] }
  0x6d   :  { %2031 = vmatprep.subr.mxu0 %v288_v19  ;;  %786 = vmatmul.mubr.f32.gmra.mxu1 %v96_v20  ;;  %v66_v17 = vld [vmem:[%s4246_s0 + $0x140] sm:$0xff]  ;;  %v389_v19 = vld [vmem:[%s4245_s2 + $0x7d8] sm:$0xff] }
  0x6e   :  { %2084 = vmatprep.subr.mxu1 %v320_v21  ;;  %690 = vmatprep.mubr.f32.mxu0 %v111_v22  ;;  %v69_v20 = vld [vmem:[%s4246_s0 + $0x158] sm:$0xff] }
  0x6f   :  { %2032 = vmatpush3.msra.mxu0 %v272_v23  ;;  %2085 = vmatpush3.msra.mxu1 %v304_v24  ;;  %v341_v21 = vld [vmem:[%s4245_s2 + $0x658] sm:$0xff]  ;;  %v356_v23 = vld [vmem:[%s4245_s2 + $0x6d0] sm:$0xff] }
  0x70   :  { %691 = vmatmul.mubr.f32.gmra.mxu0 %v110_v25  ;;  %2033 = vmatprep.subr.mxu0 %v287_v26  ;;  %v373_v22 = vld [vmem:[%s4245_s2 + $0x758] sm:$0xff]  ;;  %v68_v24 = vld [vmem:[%s4246_s0 + $0x150] sm:$0xff]  ;;  %v83_v26 = vld [vmem:[%s4246_s0 + $0x1c8] sm:$0xff] }
  0x71   :  { %2086 = vmatprep.subr.mxu1 %v319_v27  ;;  %790 = vmatprep.mubr.f32.mxu1 %v113_v28  ;;  %v388_v25 = vld [vmem:[%s4245_s2 + $0x7d0] sm:$0xff] }
  0x72   :  { %2034 = vmatpush3.msra.mxu0 %v271_v29  ;;  %2087 = vmatpush3.msra.mxu1 %v303_v30  ;;  %v340_v27 = vld [vmem:[%s4245_s2 + $0x650] sm:$0xff]  ;;  %v82_v29 = vld [vmem:[%s4246_s0 + $0x1c0] sm:$0xff]  ;;  %v355_v30 = vld [vmem:[%s4245_s2 + $0x6c8] sm:$0xff] }
  0x73   :  { %2035 = vmatprep.subr.mxu0 %v286_v31  ;;  %791 = vmatmul.mubr.f32.gmra.mxu1 %v112_v32  ;;  %v372_v28 = vld [vmem:[%s4245_s2 + $0x750] sm:$0xff]  ;;  %v387_v31 = vld [vmem:[%s4245_s2 + $0x7c8] sm:$0xff]  ;;  %v85_v32 = vld [vmem:[%s4246_s0 + $0x1d8] sm:$0xff] }
  0x74   :  { %2088 = vmatprep.subr.mxu1 %v318_v33  ;;  %695 = vmatprep.mubr.f32.mxu0 %v127_v34  ;;  %v339_v33 = vld [vmem:[%s4245_s2 + $0x648] sm:$0xff] }
  0x75   :  { %2036 = vmatpush3.msra.mxu0 %v270_v35  ;;  %2089 = vmatpush3.msra.mxu1 %v302_v36  ;;  %v371_v34 = vld [vmem:[%s4245_s2 + $0x748] sm:$0xff]  ;;  %v354_v35 = vld [vmem:[%s4245_s2 + $0x6c0] sm:$0xff]  ;;  %v84_v36 = vld [vmem:[%s4246_s0 + $0x1d0] sm:$0xff] }
  0x76   :  { %696 = vmatmul.mubr.f32.gmra.mxu0 %v126_v37  ;;  %2037 = vmatprep.subr.mxu0 %v285_v38  ;;  %v386_v37 = vld [vmem:[%s4245_s2 + $0x7c0] sm:$0xff]  ;;  %v99_v38 = vld [vmem:[%s4246_s0 + $0x248] sm:$0xff] }
  0x77   :  { %2090 = vmatprep.subr.mxu1 %v317_v39  ;;  %795 = vmatprep.mubr.f32.mxu1 %v129_v40  ;;  %v338_v39 = vld [vmem:[%s4245_s2 + $0x640] sm:$0xff] }
  0x78   :  { %2038 = vmatpush3.msra.mxu0 %v269_v41  ;;  %2091 = vmatpush3.msra.mxu1 %v301_v42  ;;  %v370_v40 = vld [vmem:[%s4245_s2 + $0x740] sm:$0xff]  ;;  %v353_v42 = vld [vmem:[%s4245_s2 + $0x6b8] sm:$0xff] }
  0x79   :  { %2039 = vmatprep.subr.mxu0 %v284_v43  ;;  %796 = vmatmul.mubr.f32.gmra.mxu1 %v128_v44  ;;  %v98_v41 = vld [vmem:[%s4246_s0 + $0x240] sm:$0xff]  ;;  %v385_v43 = vld [vmem:[%s4245_s2 + $0x7b8] sm:$0xff] }
  0x7a   :  { %2092 = vmatprep.subr.mxu1 %v316_v45  ;;  %2040 = vmatpush3.msra.mxu0 %v268_v46  ;;  %v101_v44 = vld [vmem:[%s4246_s0 + $0x258] sm:$0xff] }
  0x7b   :  { %2093 = vmatpush3.msra.mxu1 %v300_v47  ;;  %2041 = vmatprep.subr.mxu0 %v283_v48  ;;  %v337_v45 = vld [vmem:[%s4245_s2 + $0x638] sm:$0xff]  ;;  %v352_v47 = vld [vmem:[%s4245_s2 + $0x6b0] sm:$0xff] }
  0x7c   :  { %2094 = vmatprep.subr.mxu1 %v315_v49  ;;  %2042 = vmatpush3.msra.mxu0 %v267_v50  ;;  %v369_v46 = vld [vmem:[%s4245_s2 + $0x738] sm:$0xff]  ;;  %v100_v48 = vld [vmem:[%s4246_s0 + $0x250] sm:$0xff]  ;;  %v115_v50 = vld [vmem:[%s4246_s0 + $0x2c8] sm:$0xff] }
  0x7d   :  { %2095 = vmatpush3.msra.mxu1 %v299_v51  ;;  %2043 = vmatprep.subr.mxu0 %v282_v52  ;;  %v384_v49 = vld [vmem:[%s4245_s2 + $0x7b0] sm:$0xff] }
  0x7e   :  { %2096 = vmatprep.subr.mxu1 %v314_v53  ;;  %2044 = vmatpush3.msra.mxu0 %v266_v54  ;;  %v336_v51 = vld [vmem:[%s4245_s2 + $0x630] sm:$0xff]  ;;  %v114_v53 = vld [vmem:[%s4246_s0 + $0x2c0] sm:$0xff]  ;;  %v351_v54 = vld [vmem:[%s4245_s2 + $0x6a8] sm:$0xff] }
  0x7f   :  { %865 = vmatprep.mubr.f32.mxu0 %v35_v55  ;;  %2097 = vmatpush3.msra.mxu1 %v298_v56  ;;  %v368_v52 = vld [vmem:[%s4245_s2 + $0x730] sm:$0xff]  ;;  %v383_v55 = vld [vmem:[%s4245_s2 + $0x7a8] sm:$0xff]  ;;  %v117_v56 = vld [vmem:[%s4246_s0 + $0x2d8] sm:$0xff] }
  0x80   :  { %866 = vmatmul.mubr.f32.vlgmr.msra.gmra.mxu0 %v34_v57  ;;  %965 = vmatprep.mubr.f32.mxu1 %v37_v58  ;;  %v335_v57 = vld [vmem:[%s4245_s2 + $0x628] sm:$0xff] }
  0x81   :  { %2119 = vmatprep.subr.mxu0 %v361_v59  ;;  %2172 = vmatprep.subr.mxu1 %v393_v60  ;;  %v367_v58 = vld [vmem:[%s4245_s2 + $0x728] sm:$0xff]  ;;  %v350_v59 = vld [vmem:[%s4245_s2 + $0x6a0] sm:$0xff]  ;;  %v116_v60 = vld [vmem:[%s4246_s0 + $0x2d0] sm:$0xff] }
  0x82   :  { %966 = vmatmul.mubr.f32.vlgmr.msra.gmra.mxu1 %v36_v61  ;;  %2120 = vmatpush3.msra.mxu0 %v345_v62  ;;  %v382_v61 = vld [vmem:[%s4245_s2 + $0x7a0] sm:$0xff]  ;;  %v131_v62 = vld [vmem:[%s4246_s0 + $0x348] sm:$0xff] }
  0x83   :  { %2173 = vmatpush3.msra.mxu1 %v377_v63  ;;  %2121 = vmatprep.subr.mxu0 %v360_v0  ;;  %v334_v63 = vld [vmem:[%s4245_s2 + $0x620] sm:$0xff] }
  0x84   :  { %2174 = vmatprep.subr.mxu1 %v392_v1  ;;  %870 = vmatprep.mubr.f32.mxu0 %v51_v2  ;;  %v366_v0 = vld [vmem:[%s4245_s2 + $0x720] sm:$0xff]  ;;  %v349_v2 = vld [vmem:[%s4245_s2 + $0x698] sm:$0xff] }
  0x85   :  { %2122 = vmatpush3.msra.mxu0 %v344_v3  ;;  %2175 = vmatpush3.msra.mxu1 %v376_v4  ;;  %v130_v1 = vld [vmem:[%s4246_s0 + $0x340] sm:$0xff]  ;;  %v381_v3 = vld [vmem:[%s4245_s2 + $0x798] sm:$0xff] }
  0x86   :  { %871 = vmatmul.mubr.f32.gmra.mxu0 %v50_v5  ;;  %2123 = vmatprep.subr.mxu0 %v359_v6  ;;  %v133_v4 = vld [vmem:[%s4246_s0 + $0x358] sm:$0xff] }
  0x87   :  { %2176 = vmatprep.subr.mxu1 %v391_v7  ;;  %970 = vmatprep.mubr.f32.mxu1 %v53_v8  ;;  %v333_v5 = vld [vmem:[%s4245_s2 + $0x618] sm:$0xff]  ;;  %v348_v7 = vld [vmem:[%s4245_s2 + $0x690] sm:$0xff] }
  0x88   :  { %2124 = vmatpush3.msra.mxu0 %v343_v9  ;;  %2177 = vmatpush3.msra.mxu1 %v375_v10  ;;  %v365_v6 = vld [vmem:[%s4245_s2 + $0x718] sm:$0xff]  ;;  %v132_v8 = vld [vmem:[%s4246_s0 + $0x350] sm:$0xff] }
  0x89   :  { %2125 = vmatprep.subr.mxu0 %v358_v11  ;;  %971 = vmatmul.mubr.f32.gmra.mxu1 %v52_v12  ;;  %v380_v9 = vld [vmem:[%s4245_s2 + $0x790] sm:$0xff]  ;;  %v347_v12 = vld [vmem:[%s4245_s2 + $0x688] sm:$0xff] }
  0x8a   :  { %2178 = vmatprep.subr.mxu1 %v390_v13  ;;  %875 = vmatprep.mubr.f32.mxu0 %v67_v14  ;;  %v332_v10 = vld [vmem:[%s4245_s2 + $0x610] sm:$0xff]  ;;  %v379_v13 = vld [vmem:[%s4245_s2 + $0x788] sm:$0xff] }
  0x8b   :  { %2126 = vmatpush3.msra.mxu0 %v342_v15  ;;  %2179 = vmatpush3.msra.mxu1 %v374_v16  ;;  %v364_v11 = vld [vmem:[%s4245_s2 + $0x710] sm:$0xff]  ;;  %v331_v14 = vld [vmem:[%s4245_s2 + $0x608] sm:$0xff]  ;;  %v346_v16 = vld [vmem:[%s4245_s2 + $0x680] sm:$0xff] }
  0x8c   :  { %876 = vmatmul.mubr.f32.gmra.mxu0 %v66_v17  ;;  %2127 = vmatprep.subr.mxu0 %v357_v18  ;;  %v363_v15 = vld [vmem:[%s4245_s2 + $0x708] sm:$0xff]  ;;  %v378_v17 = vld [vmem:[%s4245_s2 + $0x780] sm:$0xff] }
  0x8d   :  { %2180 = vmatprep.subr.mxu1 %v389_v19  ;;  %975 = vmatprep.mubr.f32.mxu1 %v69_v20  ;;  %v330_v18 = vld [vmem:[%s4245_s2 + $0x600] sm:$0xff]  ;;  %v39_v19 = vld [vmem:[%s4246_s0 + $0x68] sm:$0xff] }
  0x8e   :  { %2128 = vmatpush3.msra.mxu0 %v341_v21  ;;  %2181 = vmatpush3.msra.mxu1 %v373_v22  ;;  %v362_v20 = vld [vmem:[%s4245_s2 + $0x700] sm:$0xff]  ;;  %v41_v22 = vld [vmem:[%s4246_s0 + $0x78] sm:$0xff] }
  0x8f   :  { %2129 = vmatprep.subr.mxu0 %v356_v23  ;;  %976 = vmatmul.mubr.f32.gmra.mxu1 %v68_v24  ;;  %v38_v21 = vld [vmem:[%s4246_s0 + $0x60] sm:$0xff]  ;;  %v1274_v23 = vld [vmem:[%s4247_s4 + $0xf8] sm:$0xff] }
  0x90   :  { %2182 = vmatprep.subr.mxu1 %v388_v25  ;;  %880 = vmatprep.mubr.f32.mxu0 %v83_v26  ;;  %v1306_v24 = vld [vmem:[%s4247_s4 + $0x1f8] sm:$0xff]  ;;  %v40_v25 = vld [vmem:[%s4246_s0 + $0x70] sm:$0xff] }
  0x91   :  { %2130 = vmatpush3.msra.mxu0 %v340_v27  ;;  %2183 = vmatpush3.msra.mxu1 %v372_v28  ;;  %v1258_v26 = vld [vmem:[%s4247_s4 + $0x78] sm:$0xff]  ;;  %v1273_v28 = vld [vmem:[%s4247_s4 + $0xf0] sm:$0xff] }
  0x92   :  { %881 = vmatmul.mubr.f32.gmra.mxu0 %v82_v29  ;;  %2131 = vmatprep.subr.mxu0 %v355_v30  ;;  %v1290_v27 = vld [vmem:[%s4247_s4 + $0x178] sm:$0xff]  ;;  %v1305_v29 = vld [vmem:[%s4247_s4 + $0x1f0] sm:$0xff]  ;;  %v55_v30 = vld [vmem:[%s4246_s0 + $0xe8] sm:$0xff] }
  0x93   :  { %2184 = vmatprep.subr.mxu1 %v387_v31  ;;  %980 = vmatprep.mubr.f32.mxu1 %v85_v32  ;;  %v1257_v31 = vld [vmem:[%s4247_s4 + $0x70] sm:$0xff] }
  0x94   :  { %2132 = vmatpush3.msra.mxu0 %v339_v33  ;;  %2185 = vmatpush3.msra.mxu1 %v371_v34  ;;  %v1289_v32 = vld [vmem:[%s4247_s4 + $0x170] sm:$0xff]  ;;  %v54_v33 = vld [vmem:[%s4246_s0 + $0xe0] sm:$0xff]  ;;  %v1272_v34 = vld [vmem:[%s4247_s4 + $0xe8] sm:$0xff] }
  0x95   :  { %2133 = vmatprep.subr.mxu0 %v354_v35  ;;  %981 = vmatmul.mubr.f32.gmra.mxu1 %v84_v36  ;;  %v1304_v35 = vld [vmem:[%s4247_s4 + $0x1e8] sm:$0xff]  ;;  %v57_v36 = vld [vmem:[%s4246_s0 + $0xf8] sm:$0xff] }
  0x96   :  { %2186 = vmatprep.subr.mxu1 %v386_v37  ;;  %885 = vmatprep.mubr.f32.mxu0 %v99_v38  ;;  %v1256_v37 = vld [vmem:[%s4247_s4 + $0x68] sm:$0xff] }
  0x97   :  { %2134 = vmatpush3.msra.mxu0 %v338_v39  ;;  %2187 = vmatpush3.msra.mxu1 %v370_v40  ;;  %v1288_v38 = vld [vmem:[%s4247_s4 + $0x168] sm:$0xff]  ;;  %v1271_v39 = vld [vmem:[%s4247_s4 + $0xe0] sm:$0xff]  ;;  %v56_v40 = vld [vmem:[%s4246_s0 + $0xf0] sm:$0xff] }
  0x98   :  { %886 = vmatmul.mubr.f32.gmra.mxu0 %v98_v41  ;;  %2135 = vmatprep.subr.mxu0 %v353_v42  ;;  %v1303_v41 = vld [vmem:[%s4247_s4 + $0x1e0] sm:$0xff]  ;;  %v71_v42 = vld [vmem:[%s4246_s0 + $0x168] sm:$0xff] }
  0x99   :  { %2188 = vmatprep.subr.mxu1 %v385_v43  ;;  %985 = vmatprep.mubr.f32.mxu1 %v101_v44  ;;  %v1255_v43 = vld [vmem:[%s4247_s4 + $0x60] sm:$0xff] }
  0x9a   :  { %2136 = vmatpush3.msra.mxu0 %v337_v45  ;;  %2189 = vmatpush3.msra.mxu1 %v369_v46  ;;  %v1287_v44 = vld [vmem:[%s4247_s4 + $0x160] sm:$0xff]  ;;  %v1270_v46 = vld [vmem:[%s4247_s4 + $0xd8] sm:$0xff] }
  0x9b   :  { %2137 = vmatprep.subr.mxu0 %v352_v47  ;;  %986 = vmatmul.mubr.f32.gmra.mxu1 %v100_v48  ;;  %v70_v45 = vld [vmem:[%s4246_s0 + $0x160] sm:$0xff]  ;;  %v1302_v47 = vld [vmem:[%s4247_s4 + $0x1d8] sm:$0xff] }
  0x9c   :  { %2190 = vmatprep.subr.mxu1 %v384_v49  ;;  %890 = vmatprep.mubr.f32.mxu0 %v115_v50  ;;  %v73_v48 = vld [vmem:[%s4246_s0 + $0x178] sm:$0xff] }
  0x9d   :  { %2138 = vmatpush3.msra.mxu0 %v336_v51  ;;  %2191 = vmatpush3.msra.mxu1 %v368_v52  ;;  %v1254_v49 = vld [vmem:[%s4247_s4 + $0x58] sm:$0xff]  ;;  %v1269_v51 = vld [vmem:[%s4247_s4 + $0xd0] sm:$0xff] }
  0x9e   :  { %891 = vmatmul.mubr.f32.gmra.mxu0 %v114_v53  ;;  %2139 = vmatprep.subr.mxu0 %v351_v54  ;;  %v1286_v50 = vld [vmem:[%s4247_s4 + $0x158] sm:$0xff]  ;;  %v72_v52 = vld [vmem:[%s4246_s0 + $0x170] sm:$0xff]  ;;  %v87_v54 = vld [vmem:[%s4246_s0 + $0x1e8] sm:$0xff] }
  0x9f   :  { %2192 = vmatprep.subr.mxu1 %v383_v55  ;;  %990 = vmatprep.mubr.f32.mxu1 %v117_v56  ;;  %v1301_v53 = vld [vmem:[%s4247_s4 + $0x1d0] sm:$0xff] }
  0xa0   :  { %2140 = vmatpush3.msra.mxu0 %v335_v57  ;;  %2193 = vmatpush3.msra.mxu1 %v367_v58  ;;  %v1253_v55 = vld [vmem:[%s4247_s4 + $0x50] sm:$0xff]  ;;  %v86_v57 = vld [vmem:[%s4246_s0 + $0x1e0] sm:$0xff]  ;;  %v1268_v58 = vld [vmem:[%s4247_s4 + $0xc8] sm:$0xff] }
  0xa1   :  { %2141 = vmatprep.subr.mxu0 %v350_v59  ;;  %991 = vmatmul.mubr.f32.gmra.mxu1 %v116_v60  ;;  %v1285_v56 = vld [vmem:[%s4247_s4 + $0x150] sm:$0xff]  ;;  %v1300_v59 = vld [vmem:[%s4247_s4 + $0x1c8] sm:$0xff]  ;;  %v89_v60 = vld [vmem:[%s4246_s0 + $0x1f8] sm:$0xff] }
  0xa2   :  { %2194 = vmatprep.subr.mxu1 %v382_v61  ;;  %895 = vmatprep.mubr.f32.mxu0 %v131_v62  ;;  %v1252_v61 = vld [vmem:[%s4247_s4 + $0x48] sm:$0xff] }
  0xa3   :  { %2142 = vmatpush3.msra.mxu0 %v334_v63  ;;  %2195 = vmatpush3.msra.mxu1 %v366_v0  ;;  %v1284_v62 = vld [vmem:[%s4247_s4 + $0x148] sm:$0xff]  ;;  %v1267_v63 = vld [vmem:[%s4247_s4 + $0xc0] sm:$0xff]  ;;  %v88_v0 = vld [vmem:[%s4246_s0 + $0x1f0] sm:$0xff] }
  0xa4   :  { %896 = vmatmul.mubr.f32.gmra.mxu0 %v130_v1  ;;  %2143 = vmatprep.subr.mxu0 %v349_v2  ;;  %v1299_v1 = vld [vmem:[%s4247_s4 + $0x1c0] sm:$0xff]  ;;  %v103_v2 = vld [vmem:[%s4246_s0 + $0x268] sm:$0xff] }
  0xa5   :  { %2196 = vmatprep.subr.mxu1 %v381_v3  ;;  %995 = vmatprep.mubr.f32.mxu1 %v133_v4  ;;  %v1251_v3 = vld [vmem:[%s4247_s4 + $0x40] sm:$0xff] }
  0xa6   :  { %2144 = vmatpush3.msra.mxu0 %v333_v5  ;;  %2197 = vmatpush3.msra.mxu1 %v365_v6  ;;  %v1283_v4 = vld [vmem:[%s4247_s4 + $0x140] sm:$0xff]  ;;  %v1266_v6 = vld [vmem:[%s4247_s4 + $0xb8] sm:$0xff] }
  0xa7   :  { %2145 = vmatprep.subr.mxu0 %v348_v7  ;;  %996 = vmatmul.mubr.f32.gmra.mxu1 %v132_v8  ;;  %v102_v5 = vld [vmem:[%s4246_s0 + $0x260] sm:$0xff]  ;;  %v1298_v7 = vld [vmem:[%s4247_s4 + $0x1b8] sm:$0xff] }
  0xa8   :  { %2198 = vmatprep.subr.mxu1 %v380_v9  ;;  %2146 = vmatpush3.msra.mxu0 %v332_v10  ;;  %v105_v8 = vld [vmem:[%s4246_s0 + $0x278] sm:$0xff] }
  0xa9   :  { %2199 = vmatpush3.msra.mxu1 %v364_v11  ;;  %2147 = vmatprep.subr.mxu0 %v347_v12  ;;  %v1250_v9 = vld [vmem:[%s4247_s4 + $0x38] sm:$0xff]  ;;  %v1265_v11 = vld [vmem:[%s4247_s4 + $0xb0] sm:$0xff] }
  0xaa   :  { %2200 = vmatprep.subr.mxu1 %v379_v13  ;;  %2148 = vmatpush3.msra.mxu0 %v331_v14  ;;  %v1282_v10 = vld [vmem:[%s4247_s4 + $0x138] sm:$0xff]  ;;  %v104_v12 = vld [vmem:[%s4246_s0 + $0x270] sm:$0xff]  ;;  %v119_v14 = vld [vmem:[%s4246_s0 + $0x2e8] sm:$0xff] }
  0xab   :  { %2201 = vmatpush3.msra.mxu1 %v363_v15  ;;  %2149 = vmatprep.subr.mxu0 %v346_v16  ;;  %v1297_v13 = vld [vmem:[%s4247_s4 + $0x1b0] sm:$0xff] }
  0xac   :  { %2202 = vmatprep.subr.mxu1 %v378_v17  ;;  %2150 = vmatpush3.msra.mxu0 %v330_v18  ;;  %v1249_v15 = vld [vmem:[%s4247_s4 + $0x30] sm:$0xff]  ;;  %v118_v17 = vld [vmem:[%s4246_s0 + $0x2e0] sm:$0xff]  ;;  %v1264_v18 = vld [vmem:[%s4247_s4 + $0xa8] sm:$0xff] }
  0xad   :  { %1065 = vmatprep.mubr.f32.mxu0 %v39_v19  ;;  %2203 = vmatpush3.msra.mxu1 %v362_v20  ;;  %v1281_v16 = vld [vmem:[%s4247_s4 + $0x130] sm:$0xff]  ;;  %v1296_v19 = vld [vmem:[%s4247_s4 + $0x1a8] sm:$0xff]  ;;  %v121_v20 = vld [vmem:[%s4246_s0 + $0x2f8] sm:$0xff] }
  0xae   :  { %1066 = vmatmul.mubr.f32.vlgmr.msra.gmra.mxu0 %v38_v21  ;;  %1165 = vmatprep.mubr.f32.mxu1 %v41_v22  ;;  %v1248_v21 = vld [vmem:[%s4247_s4 + $0x28] sm:$0xff] }
  0xaf   :  { %2225 = vmatprep.subr.mxu0 %v1274_v23  ;;  %2278 = vmatprep.subr.mxu1 %v1306_v24  ;;  %v1280_v22 = vld [vmem:[%s4247_s4 + $0x128] sm:$0xff]  ;;  %v1263_v23 = vld [vmem:[%s4247_s4 + $0xa0] sm:$0xff]  ;;  %v120_v24 = vld [vmem:[%s4246_s0 + $0x2f0] sm:$0xff] }
  0xb0   :  { %1166 = vmatmul.mubr.f32.vlgmr.msra.gmra.mxu1 %v40_v25  ;;  %2226 = vmatpush3.msra.mxu0 %v1258_v26  ;;  %v1295_v25 = vld [vmem:[%s4247_s4 + $0x1a0] sm:$0xff]  ;;  %v135_v26 = vld [vmem:[%s4246_s0 + $0x368] sm:$0xff] }
  0xb1   :  { %2279 = vmatpush3.msra.mxu1 %v1290_v27  ;;  %2227 = vmatprep.subr.mxu0 %v1273_v28  ;;  %v1247_v27 = vld [vmem:[%s4247_s4 + $0x20] sm:$0xff] }
  0xb2   :  { %2280 = vmatprep.subr.mxu1 %v1305_v29  ;;  %1070 = vmatprep.mubr.f32.mxu0 %v55_v30  ;;  %v1279_v28 = vld [vmem:[%s4247_s4 + $0x120] sm:$0xff]  ;;  %v1262_v30 = vld [vmem:[%s4247_s4 + $0x98] sm:$0xff] }
  0xb3   :  { %2228 = vmatpush3.msra.mxu0 %v1257_v31  ;;  %2281 = vmatpush3.msra.mxu1 %v1289_v32  ;;  %v134_v29 = vld [vmem:[%s4246_s0 + $0x360] sm:$0xff]  ;;  %v1294_v31 = vld [vmem:[%s4247_s4 + $0x198] sm:$0xff] }
  0xb4   :  { %1071 = vmatmul.mubr.f32.gmra.mxu0 %v54_v33  ;;  %2229 = vmatprep.subr.mxu0 %v1272_v34  ;;  %v137_v32 = vld [vmem:[%s4246_s0 + $0x378] sm:$0xff] }
  0xb5   :  { %2282 = vmatprep.subr.mxu1 %v1304_v35  ;;  %1170 = vmatprep.mubr.f32.mxu1 %v57_v36  ;;  %v1246_v33 = vld [vmem:[%s4247_s4 + $0x18] sm:$0xff]  ;;  %v1261_v35 = vld [vmem:[%s4247_s4 + $0x90] sm:$0xff] }
  0xb6   :  { %2230 = vmatpush3.msra.mxu0 %v1256_v37  ;;  %2283 = vmatpush3.msra.mxu1 %v1288_v38  ;;  %v1278_v34 = vld [vmem:[%s4247_s4 + $0x118] sm:$0xff]  ;;  %v136_v36 = vld [vmem:[%s4246_s0 + $0x370] sm:$0xff] }
  0xb7   :  { %2231 = vmatprep.subr.mxu0 %v1271_v39  ;;  %1171 = vmatmul.mubr.f32.gmra.mxu1 %v56_v40  ;;  %v1293_v37 = vld [vmem:[%s4247_s4 + $0x190] sm:$0xff]  ;;  %v1260_v40 = vld [vmem:[%s4247_s4 + $0x88] sm:$0xff] }
  0xb8   :  { %2284 = vmatprep.subr.mxu1 %v1303_v41  ;;  %1075 = vmatprep.mubr.f32.mxu0 %v71_v42  ;;  %v1245_v38 = vld [vmem:[%s4247_s4 + $0x10] sm:$0xff]  ;;  %v1292_v41 = vld [vmem:[%s4247_s4 + $0x188] sm:$0xff] }
  0xb9   :  { %2232 = vmatpush3.msra.mxu0 %v1255_v43  ;;  %2285 = vmatpush3.msra.mxu1 %v1287_v44  ;;  %v1277_v39 = vld [vmem:[%s4247_s4 + $0x110] sm:$0xff]  ;;  %v1244_v42 = vld [vmem:[%s4247_s4 + $0x8] sm:$0xff]  ;;  %v1259_v44 = vld [vmem:[%s4247_s4 + $0x80] sm:$0xff] }
  0xba   :  { %1076 = vmatmul.mubr.f32.gmra.mxu0 %v70_v45  ;;  %2233 = vmatprep.subr.mxu0 %v1270_v46  ;;  %v1276_v43 = vld [vmem:[%s4247_s4 + $0x108] sm:$0xff]  ;;  %v1291_v45 = vld [vmem:[%s4247_s4 + $0x180] sm:$0xff] }
  0xbb   :  { %2286 = vmatprep.subr.mxu1 %v1302_v47  ;;  %1175 = vmatprep.mubr.f32.mxu1 %v73_v48  ;;  %v1243_v46 = vld [vmem:[%s4247_s4] sm:$0xff]  ;;  %v1202_v47 = vld [vmem:[%s4248_s1 + $0x8] sm:$0xff] }
  0xbc   :  { %2234 = vmatpush3.msra.mxu0 %v1254_v49  ;;  %2287 = vmatpush3.msra.mxu1 %v1286_v50  ;;  %v1275_v48 = vld [vmem:[%s4247_s4 + $0x100] sm:$0xff]  ;;  %v1204_v50 = vld [vmem:[%s4248_s1 + $0x18] sm:$0xff] }
  0xbd   :  { %2235 = vmatprep.subr.mxu0 %v1269_v51  ;;  %1176 = vmatmul.mubr.f32.gmra.mxu1 %v72_v52  ;;  %v1201_v49 = vld [vmem:[%s4248_s1] sm:$0xff]  ;;  %v1338_v51 = vld [vmem:[%s4247_s4 + $0x2f8] sm:$0xff]  ;;  %v1203_v52 = vld [vmem:[%s4248_s1 + $0x10] sm:$0xff] }
  0xbe   :  { %2288 = vmatprep.subr.mxu1 %v1301_v53  ;;  %1080 = vmatprep.mubr.f32.mxu0 %v87_v54  ;;  %v1322_v53 = vld [vmem:[%s4247_s4 + $0x278] sm:$0xff]  ;;  %v1337_v54 = vld [vmem:[%s4247_s4 + $0x2f0] sm:$0xff] }
  0xbf   :  { %2236 = vmatpush3.msra.mxu0 %v1253_v55  ;;  %2289 = vmatpush3.msra.mxu1 %v1285_v56  ;;  %v1321_v55 = vld [vmem:[%s4247_s4 + $0x270] sm:$0xff]  ;;  %v1336_v56 = vld [vmem:[%s4247_s4 + $0x2e8] sm:$0xff] }
  0xc0   :  { %1081 = vmatmul.mubr.f32.gmra.mxu0 %v86_v57  ;;  %2237 = vmatprep.subr.mxu0 %v1268_v58  ;;  %v1208_v57 = vld [vmem:[%s4248_s1 + $0x38] sm:$0xff]  ;;  %v1320_v58 = vld [vmem:[%s4247_s4 + $0x268] sm:$0xff] }
  0xc1   :  { %2290 = vmatprep.subr.mxu1 %v1300_v59  ;;  %1180 = vmatprep.mubr.f32.mxu1 %v89_v60  ;;  %v1207_v59 = vld [vmem:[%s4248_s1 + $0x30] sm:$0xff]  ;;  %v1335_v60 = vld [vmem:[%s4247_s4 + $0x2e0] sm:$0xff] }
  0xc2   :  { %2238 = vmatpush3.msra.mxu0 %v1252_v61  ;;  %2291 = vmatpush3.msra.mxu1 %v1284_v62  ;;  %v1210_v61 = vld [vmem:[%s4248_s1 + $0x48] sm:$0xff]  ;;  %v1319_v62 = vld [vmem:[%s4247_s4 + $0x260] sm:$0xff] }
  0xc3   :  { %2239 = vmatprep.subr.mxu0 %v1267_v63  ;;  %1181 = vmatmul.mubr.f32.gmra.mxu1 %v88_v0  ;;  %v1334_v63 = vld [vmem:[%s4247_s4 + $0x2d8] sm:$0xff] }
  0xc4   :  { %2292 = vmatprep.subr.mxu1 %v1299_v1  ;;  %1085 = vmatprep.mubr.f32.mxu0 %v103_v2  ;;  %v1209_v1 = vld [vmem:[%s4248_s1 + $0x40] sm:$0xff]  ;;  %v1214_v2 = vld [vmem:[%s4248_s1 + $0x68] sm:$0xff] }
  0xc5   :  { %2240 = vmatpush3.msra.mxu0 %v1251_v3  ;;  %2293 = vmatpush3.msra.mxu1 %v1283_v4  ;;  %v1318_v3 = vld [vmem:[%s4247_s4 + $0x258] sm:$0xff]  ;;  %v3840_v4 = vld [vmem:[%s4249_s3] ss:$0 sm:$0xff] }
  0xc6   :  { %1086 = vmatmul.mubr.f32.gmra.mxu0 %v102_v5  ;;  %2241 = vmatprep.subr.mxu0 %v1266_v6 }
  0xc7   :  { %2294 = vmatprep.subr.mxu1 %v1298_v7  ;;  %1185 = vmatprep.mubr.f32.mxu1 %v105_v8  ;;  %v1213_v7 = vld [vmem:[%s4248_s1 + $0x60] sm:$0xff] }
  0xc8   :  { %2242 = vmatpush3.msra.mxu0 %v1250_v9  ;;  %2295 = vmatpush3.msra.mxu1 %v1282_v10  ;;  %v1333_v9 = vld [vmem:[%s4247_s4 + $0x2d0] sm:$0xff] }
  0xc9   :  { %2243 = vmatprep.subr.mxu0 %v1265_v11  ;;  %1186 = vmatmul.mubr.f32.gmra.mxu1 %v104_v12  ;;  %v1216_v11 = vld [vmem:[%s4248_s1 + $0x78] sm:$0xff]  ;;  %v1317_v12 = vld [vmem:[%s4247_s4 + $0x250] sm:$0xff] }
  0xca   :  { %2296 = vmatprep.subr.mxu1 %v1297_v13  ;;  %1090 = vmatprep.mubr.f32.mxu0 %v119_v14 }
  0xcb   :  { %2244 = vmatpush3.msra.mxu0 %v1249_v15  ;;  %2297 = vmatpush3.msra.mxu1 %v1281_v16  ;;  %v1332_v15 = vld [vmem:[%s4247_s4 + $0x2c8] sm:$0xff]  ;;  %v1215_v16 = vld [vmem:[%s4248_s1 + $0x70] sm:$0xff] }
  0xcc   :  { %1091 = vmatmul.mubr.f32.gmra.mxu0 %v118_v17  ;;  %2245 = vmatprep.subr.mxu0 %v1264_v18  ;;  %v1220_v18 = vld [vmem:[%s4248_s1 + $0x98] sm:$0xff] }
  0xcd   :  { %2298 = vmatprep.subr.mxu1 %v1296_v19  ;;  %1190 = vmatprep.mubr.f32.mxu1 %v121_v20  ;;  %v1316_v19 = vld [vmem:[%s4247_s4 + $0x248] sm:$0xff]  ;;  %v1219_v20 = vld [vmem:[%s4248_s1 + $0x90] sm:$0xff] }
  0xce   :  { %2246 = vmatpush3.msra.mxu0 %v1248_v21  ;;  %2299 = vmatpush3.msra.mxu1 %v1280_v22  ;;  %v1331_v22 = vld [vmem:[%s4247_s4 + $0x2c0] sm:$0xff] }
  0xcf   :  { %2247 = vmatprep.subr.mxu0 %v1263_v23  ;;  %1191 = vmatmul.mubr.f32.gmra.mxu1 %v120_v24  ;;  %v1222_v23 = vld [vmem:[%s4248_s1 + $0xa8] sm:$0xff]  ;;  %v1315_v24 = vld [vmem:[%s4247_s4 + $0x240] sm:$0xff] }
  0xd0   :  { %2300 = vmatprep.subr.mxu1 %v1295_v25  ;;  %1095 = vmatprep.mubr.f32.mxu0 %v135_v26  ;;  %v1330_v26 = vld [vmem:[%s4247_s4 + $0x2b8] sm:$0xff] }
  0xd1   :  { %2248 = vmatpush3.msra.mxu0 %v1247_v27  ;;  %2301 = vmatpush3.msra.mxu1 %v1279_v28 }
  0xd2   :  { %1096 = vmatmul.mubr.f32.gmra.mxu0 %v134_v29  ;;  %2249 = vmatprep.subr.mxu0 %v1262_v30  ;;  %v1221_v29 = vld [vmem:[%s4248_s1 + $0xa0] sm:$0xff]  ;;  %v1226_v30 = vld [vmem:[%s4248_s1 + $0xc8] sm:$0xff] }
  0xd3   :  { %2302 = vmatprep.subr.mxu1 %v1294_v31  ;;  %1195 = vmatprep.mubr.f32.mxu1 %v137_v32  ;;  %v1314_v31 = vld [vmem:[%s4247_s4 + $0x238] sm:$0xff] }
  0xd4   :  { %2250 = vmatpush3.msra.mxu0 %v1246_v33  ;;  %2303 = vmatpush3.msra.mxu1 %v1278_v34  ;;  %v1225_v34 = vld [vmem:[%s4248_s1 + $0xc0] sm:$0xff] }
  0xd5   :  { %2251 = vmatprep.subr.mxu0 %v1261_v35  ;;  %1196 = vmatmul.mubr.f32.gmra.mxu1 %v136_v36 }
  0xd6   :  { %2304 = vmatprep.subr.mxu1 %v1293_v37  ;;  %2252 = vmatpush3.msra.mxu0 %v1245_v38  ;;  %v1329_v37 = vld [vmem:[%s4247_s4 + $0x2b0] sm:$0xff]  ;;  %v1228_v38 = vld [vmem:[%s4248_s1 + $0xd8] sm:$0xff] }
  0xd7   :  { %2305 = vmatpush3.msra.mxu1 %v1277_v39  ;;  %2253 = vmatprep.subr.mxu0 %v1260_v40  ;;  %v1313_v39 = vld [vmem:[%s4247_s4 + $0x230] sm:$0xff] }
  0xd8   :  { %2306 = vmatprep.subr.mxu1 %v1292_v41  ;;  %2254 = vmatpush3.msra.mxu0 %v1244_v42  ;;  %v1328_v42 = vld [vmem:[%s4247_s4 + $0x2a8] sm:$0xff] }
  0xd9   :  { %2307 = vmatpush3.msra.mxu1 %v1276_v43  ;;  %2255 = vmatprep.subr.mxu0 %v1259_v44 }
  0xda   :  { %2308 = vmatprep.subr.mxu1 %v1291_v45  ;;  %2256 = vmatpush3.msra.mxu0 %v1243_v46  ;;  %v1227_v45 = vld [vmem:[%s4248_s1 + $0xd0] sm:$0xff]  ;;  %v1232_v46 = vld [vmem:[%s4248_s1 + $0xf8] sm:$0xff] }
  0xdb   :  { %1410 = vmatprep.mubr.f32.mxu0 %v1202_v47  ;;  %2309 = vmatpush3.msra.mxu1 %v1275_v48  ;;  %v1312_v47 = vld [vmem:[%s4247_s4 + $0x228] sm:$0xff] }
  0xdc   :  { %1411 = vmatmul.mubr.f32.vlgmr.msra.gmra.mxu0 %v1201_v49  ;;  %1510 = vmatprep.mubr.f32.mxu1 %v1204_v50  ;;  %v1231_v50 = vld [vmem:[%s4248_s1 + $0xf0] sm:$0xff] }
  0xdd   :  { %2331 = vmatprep.subr.mxu0 %v1338_v51  ;;  %2384 = vmatprep.subr.mxu1 %v1338_v51 }
  0xde   :  { %1511 = vmatmul.mubr.f32.vlgmr.msra.gmra.mxu1 %v1203_v52  ;;  %2332 = vmatpush3.msra.mxu0 %v1322_v53 }
  0xdf   :  { %2400 = vmatpush3.msra.mxu1 %v1322_v53  ;;  %2333 = vmatprep.subr.mxu0 %v1337_v54  ;;  %v1327_v53 = vld [vmem:[%s4247_s4 + $0x2a0] sm:$0xff] }
  0xe0   :  { %2385 = vmatprep.subr.mxu1 %v1337_v54  ;;  %2334 = vmatpush3.msra.mxu0 %v1321_v55  ;;  %v1234_v54 = vld [vmem:[%s4248_s1 + $0x108] sm:$0xff] }
  0xe1   :  { %2401 = vmatpush3.msra.mxu1 %v1321_v55  ;;  %2335 = vmatprep.subr.mxu0 %v1336_v56  ;;  %v1311_v55 = vld [vmem:[%s4247_s4 + $0x220] sm:$0xff] }
  0xe2   :  { %2386 = vmatprep.subr.mxu1 %v1336_v56  ;;  %1415 = vmatprep.mubr.f32.mxu0 %v1208_v57 }
  0xe3   :  { %2336 = vmatpush3.msra.mxu0 %v1320_v58  ;;  %2402 = vmatpush3.msra.mxu1 %v1320_v58  ;;  %v1326_v58 = vld [vmem:[%s4247_s4 + $0x298] sm:$0xff] }
  0xe4   :  { %1416 = vmatmul.mubr.f32.gmra.mxu0 %v1207_v59  ;;  %v1833_v0 = vpop.f32.mrf.mxu0  ;;  %2337 = vmatprep.subr.mxu0 %v1335_v60 }
  0xe5   :  { %2387 = vmatprep.subr.mxu1 %v1335_v60  ;;  %1515 = vmatprep.mubr.f32.mxu1 %v1210_v61  ;;  %v1233_v61 = vld [vmem:[%s4248_s1 + $0x100] sm:$0xff] }
  0xe6   :  { %2338 = vmatpush3.msra.mxu0 %v1319_v62  ;;  %v1834_v5 = vpop.f32.mrf.mxu0  ;;  %v1886_v6 = vpop.f32.mrf.mxu1  ;;  %2403 = vmatpush3.msra.mxu1 %v1319_v62  ;;  %v1238_v62 = vld [vmem:[%s4248_s1 + $0x128] sm:$0xff] }
  0xe7   :  { %2339 = vmatprep.subr.mxu0 %v1334_v63  ;;  %v1835_v8 = vadd.f32 %v1834_v5, %v1833_v0  ;;  %1516 = vmatmul.mubr.f32.gmra.mxu1 %v1209_v1 }
  0xe8   :  { %2388 = vmatprep.subr.mxu1 %v1334_v63  ;;  %v1887_v10 = vpop.f32.mrf.mxu1  ;;  %1420 = vmatprep.mubr.f32.mxu0 %v1214_v2  ;;  %v1310_v63 = vld [vmem:[%s4247_s4 + $0x218] sm:$0xff]  ;;  %v1237_v2 = vld [vmem:[%s4248_s1 + $0x120] sm:$0xff] }
  0xe9   :  { %2340 = vmatpush3.msra.mxu0 %v1318_v3  ;;  %v468_v13 = vadd.f32 %v1835_v8, %v3840_v4  ;;  %v1888_v14 = vadd.f32 %v1887_v10, %v1886_v6  ;;  %2404 = vmatpush3.msra.mxu1 %v1318_v3  ;;  %v1325_v6 = vld [vmem:[%s4247_s4 + $0x290] sm:$0xff] }
  0xea   :  { %1421 = vmatmul.mubr.f32.gmra.mxu0 %v1213_v7  ;;  %2341 = vmatprep.subr.mxu0 %v1333_v9  ;;  %v1240_v7 = vld [vmem:[%s4248_s1 + $0x138] sm:$0xff]  ;;  %v1309_v8 = vld [vmem:[%s4247_s4 + $0x210] sm:$0xff] }
  0xeb   :  { %2389 = vmatprep.subr.mxu1 %v1333_v9  ;;  %v3861_v17 = vadd.f32 %v1888_v14, %v468_v13  ;;  %1520 = vmatprep.mubr.f32.mxu1 %v1216_v11  ;;  %v1324_v11 = vld [vmem:[%s4247_s4 + $0x288] sm:$0xff]  ;;  %v1239_v14 = vld [vmem:[%s4248_s1 + $0x130] sm:$0xff] }
  0xec   :  { %2342 = vmatpush3.msra.mxu0 %v1317_v12  ;;  %2405 = vmatpush3.msra.mxu1 %v1317_v12 }
  0xed   :  { %2343 = vmatprep.subr.mxu0 %v1332_v15  ;;  %v1836_v21 = vpop.f32.mrf.mxu0  ;;  %1521 = vmatmul.mubr.f32.gmra.mxu1 %v1215_v16 }
  0xee   :  { %2390 = vmatprep.subr.mxu1 %v1332_v15  ;;  %1425 = vmatprep.mubr.f32.mxu0 %v1220_v18  ;;  %v1308_v15 = vld [vmem:[%s4247_s4 + $0x208] sm:$0xff] }
  0xef   :  { %2344 = vmatpush3.msra.mxu0 %v1316_v19  ;;  %v1837_v25 = vpop.f32.mrf.mxu0  ;;  %2406 = vmatpush3.msra.mxu1 %v1316_v19  ;;  %v1323_v19 = vld [vmem:[%s4247_s4 + $0x280] sm:$0xff] }
  0xf0   :  { %1426 = vmatmul.mubr.f32.gmra.mxu0 %v1219_v20  ;;  %v1838_v27 = vadd.f32 %v1837_v25, %v1836_v21  ;;  %v1889_v28 = vpop.f32.mrf.mxu1  ;;  %2345 = vmatprep.subr.mxu0 %v1331_v22 }
  0xf1   :  { %2391 = vmatprep.subr.mxu1 %v1331_v22  ;;  %1525 = vmatprep.mubr.f32.mxu1 %v1222_v23  ;;  %v1307_v22 = vld [vmem:[%s4247_s4 + $0x200] sm:$0xff]  ;;  %v1206_v23 = vld [vmem:[%s4248_s1 + $0x28] sm:$0xff] }
  0xf2   :  { %2346 = vmatpush3.msra.mxu0 %v1315_v24  ;;  %v473_v32 = vadd.f32 %v1838_v27, %v3840_v4  ;;  %v1890_v33 = vpop.f32.mrf.mxu1  ;;  %2407 = vmatpush3.msra.mxu1 %v1315_v24  ;;  %v1230_v24 = vld [vmem:[%s4248_s1 + $0xe8] sm:$0xff]  ;;  %v1205_v27 = vld [vmem:[%s4248_s1 + $0x20] sm:$0xff] }
  0xf3   :  { %2347 = vmatprep.subr.mxu0 %v1330_v26  ;;  %v1839_v35 = vpop.f32.mrf.mxu0  ;;  %v1891_v36 = vadd.f32 %v1890_v33, %v1889_v28  ;;  %1526 = vmatmul.mubr.f32.gmra.mxu1 %v1221_v29  ;;  %v1229_v28 = vld [vmem:[%s4248_s1 + $0xe0] sm:$0xff] }
  0xf4   :  { %2392 = vmatprep.subr.mxu1 %v1330_v26  ;;  %1430 = vmatprep.mubr.f32.mxu0 %v1226_v30 }
  0xf5   :  { %2348 = vmatpush3.msra.mxu0 %v1314_v31  ;;  %v3906_v40 = vadd.f32 %v1891_v36, %v473_v32  ;;  %v1840_v41 = vpop.f32.mrf.mxu0  ;;  %2408 = vmatpush3.msra.mxu1 %v1314_v31  ;;  %v1212_v31 = vld [vmem:[%s4248_s1 + $0x58] sm:$0xff] }
  0xf6   :  { %1431 = vmatmul.mubr.f32.gmra.mxu0 %v1225_v34  ;;  %v1841_v43 = vadd.f32 %v1840_v41, %v1839_v35  ;;  %v1892_v44 = vpop.f32.mrf.mxu1  ;;  %2349 = vmatprep.subr.mxu0 %v1329_v37  ;;  %v1236_v32 = vld [vmem:[%s4248_s1 + $0x118] sm:$0xff]  ;;  %v1242_v41 = vld [vmem:[%s4248_s1 + $0x148] sm:$0xff] }
  0xf7   :  { %2393 = vmatprep.subr.mxu1 %v1329_v37  ;;  %1530 = vmatprep.mubr.f32.mxu1 %v1228_v38  ;;  %v1211_v37 = vld [vmem:[%s4248_s1 + $0x50] sm:$0xff] }
  0xf8   :  { %2350 = vmatpush3.msra.mxu0 %v1313_v39  ;;  %v478_v48 = vadd.f32 %v1841_v43, %v3840_v4  ;;  %v1893_v49 = vpop.f32.mrf.mxu1  ;;  %2409 = vmatpush3.msra.mxu1 %v1313_v39  ;;  %v1235_v38 = vld [vmem:[%s4248_s1 + $0x110] sm:$0xff]  ;;  %v1218_v39 = vld [vmem:[%s4248_s1 + $0x88] sm:$0xff] }
  0xf9   :  { %2351 = vmatprep.subr.mxu0 %v1328_v42  ;;  %v1842_v51 = vpop.f32.mrf.mxu0  ;;  %v1894_v52 = vadd.f32 %v1893_v49, %v1892_v44  ;;  %1531 = vmatmul.mubr.f32.gmra.mxu1 %v1227_v45 }
  0xfa   :  { %2394 = vmatprep.subr.mxu1 %v1328_v42  ;;  %1435 = vmatprep.mubr.f32.mxu0 %v1232_v46  ;;  %v1217_v46 = vld [vmem:[%s4248_s1 + $0x80] sm:$0xff] }
  0xfb   :  { %2352 = vmatpush3.msra.mxu0 %v1312_v47  ;;  %v3933_v56 = vadd.f32 %v1894_v52, %v478_v48  ;;  %v1843_v57 = vpop.f32.mrf.mxu0  ;;  %2410 = vmatpush3.msra.mxu1 %v1312_v47  ;;  %v1241_v47 = vld [vmem:[%s4248_s1 + $0x140] sm:$0xff] }
  0xfc   :  { %1436 = vmatmul.mubr.f32.gmra.mxu0 %v1231_v50  ;;  %v1844_v59 = vadd.f32 %v1843_v57, %v1842_v51  ;;  %v1895_v60 = vpop.f32.mrf.mxu1  ;;  %2353 = vmatprep.subr.mxu0 %v1327_v53  ;;  %v1224_v50 = vld [vmem:[%s4248_s1 + $0xb8] sm:$0xff] }
  0xfd   :  { %2395 = vmatprep.subr.mxu1 %v1327_v53  ;;  %1535 = vmatprep.mubr.f32.mxu1 %v1234_v54  ;;  %v1223_v54 = vld [vmem:[%s4248_s1 + $0xb0] sm:$0xff] }
  0xfe   :  { %2354 = vmatpush3.msra.mxu0 %v1311_v55  ;;  %v483_v0 = vadd.f32 %v1844_v59, %v3840_v4  ;;  %v1896_v1 = vpop.f32.mrf.mxu1  ;;  %2411 = vmatpush3.msra.mxu1 %v1311_v55 }
  0xff   :  { %2355 = vmatprep.subr.mxu0 %v1326_v58  ;;  %v1845_v3 = vpop.f32.mrf.mxu0  ;;  %v1897_v5 = vadd.f32 %v1896_v1, %v1895_v60  ;;  %1536 = vmatmul.mubr.f32.gmra.mxu1 %v1233_v61 }
 0x100   :  { %2396 = vmatprep.subr.mxu1 %v1326_v58  ;;  %1440 = vmatprep.mubr.f32.mxu0 %v1238_v62 }
 0x101   :  { %2356 = vmatpush3.msra.mxu0 %v1310_v63  ;;  %v3960_v9 = vadd.f32 %v1897_v5, %v483_v0  ;;  %v1846_v10 = vpop.f32.mrf.mxu0  ;;  %2412 = vmatpush3.msra.mxu1 %v1310_v63 }
 0x102   :  { %1441 = vmatmul.mubr.f32.gmra.mxu0 %v1237_v2  ;;  %v1847_v12 = vadd.f32 %v1846_v10, %v1845_v3  ;;  %v1898_v13 = vpop.f32.mrf.mxu1  ;;  %2357 = vmatprep.subr.mxu0 %v1325_v6 }
 0x103   :  { %2397 = vmatprep.subr.mxu1 %v1325_v6  ;;  %1540 = vmatprep.mubr.f32.mxu1 %v1240_v7 }
 0x104   :  { %2358 = vmatpush3.msra.mxu0 %v1309_v8  ;;  %v488_v16 = vadd.f32 %v1847_v12, %v3840_v4  ;;  %v1899_v18 = vpop.f32.mrf.mxu1  ;;  %2413 = vmatpush3.msra.mxu1 %v1309_v8 }
 0x105   :  { %2359 = vmatprep.subr.mxu0 %v1324_v11  ;;  %v1848_v20 = vpop.f32.mrf.mxu0  ;;  %v1900_v21 = vadd.f32 %v1899_v18, %v1898_v13  ;;  %1541 = vmatmul.mubr.f32.gmra.mxu1 %v1239_v14 }
 0x106   :  { %2398 = vmatprep.subr.mxu1 %v1324_v11  ;;  %2360 = vmatpush3.msra.mxu0 %v1308_v15 }
 0x107   :  { %2414 = vmatpush3.msra.mxu1 %v1308_v15  ;;  %v3984_v25 = vadd.f32 %v1900_v21, %v488_v16  ;;  %v1849_v26 = vpop.f32.mrf.mxu0  ;;  %2361 = vmatprep.subr.mxu0 %v1323_v19 }
 0x108   :  { %2399 = vmatprep.subr.mxu1 %v1323_v19  ;;  %v1850_v29 = vadd.f32 %v1849_v26, %v1848_v20  ;;  %v1901_v30 = vpop.f32.mrf.mxu1  ;;  %2362 = vmatpush3.msra.mxu0 %v1307_v22 }
 0x109   :  { %2415 = vmatpush3.msra.mxu1 %v1307_v22  ;;  %1610 = vmatprep.mubr.f32.mxu0 %v1206_v23 }
 0x10a   :  { %1630 = vmatprep.mubr.f32.mxu1 %v1230_v24  ;;  %v493_v33 = vadd.f32 %v1850_v29, %v3840_v4  ;;  %v1902_v34 = vpop.f32.mrf.mxu1  ;;  %1611 = vmatmul.mubr.f32.vlgmr.msra.gmra.mxu0 %v1205_v27 }
 0x10b   :  { %1631 = vmatmul.mubr.f32.vlgmr.msra.gmra.mxu1 %v1229_v28  ;;  %v1851_v35 = vpop.f32.mrf.mxu0  ;;  %v1903_v36 = vadd.f32 %v1902_v34, %v1901_v30  ;;  %1615 = vmatprep.mubr.f32.mxu0 %v1212_v31 }
 0x10c   :  { %1635 = vmatprep.mubr.f32.mxu1 %v1236_v32 }
 0x10d   :  { %v4011_v42 = vadd.f32 %v1903_v36, %v493_v33  ;;  %v1852_v43 = vpop.f32.mrf.mxu0 }
 0x10e   :  { %v1853_v44 = vadd.f32 %v1852_v43, %v1851_v35  ;;  %v1904_v45 = vpop.f32.mrf.mxu1  ;;  %1616 = vmatmul.mubr.f32.gmra.mxu0 %v1211_v37 }
 0x10f   :  { %1636 = vmatmul.mubr.f32.gmra.mxu1 %v1235_v38  ;;  %1620 = vmatprep.mubr.f32.mxu0 %v1218_v39 }
 0x110   :  { %1640 = vmatprep.mubr.f32.mxu1 %v1242_v41  ;;  %v498_v48 = vadd.f32 %v1853_v44, %v3840_v4  ;;  %v1905_v49 = vpop.f32.mrf.mxu1 }
 0x111   :  { %v1906_v51 = vadd.f32 %v1905_v49, %v1904_v45 }
 0x112   :  { %v1939_v52 = vpop.f32.mrf.mxu0  ;;  %1621 = vmatmul.mubr.f32.gmra.mxu0 %v1217_v46 }
 0x113   :  { %1641 = vmatmul.mubr.f32.gmra.mxu1 %v1241_v47  ;;  %v598_v53 = vadd.f32 %v1906_v51, %v498_v48  ;;  %1625 = vmatprep.mubr.f32.mxu0 %v1224_v50 }
 0x114   :  { %v1940_v55 = vpop.f32.mrf.mxu0  ;;  %v1992_v57 = vpop.f32.mrf.mxu1 }
 0x115   :  { %v1941_v50 = vadd.f32 %v1940_v55, %v1939_v52 }
 0x116   :  { %1626 = vmatmul.mubr.f32.gmra.mxu0 %v1223_v54  ;;  %v1993_v4 = vpop.f32.mrf.mxu1 }
 0x117   :  { %v668_v54 = vadd.f32 %v1941_v50, %v3861_v17 }
 0x118   :  { %v1942_v58 = vpop.f32.mrf.mxu0 }
 0x11a   :  { %v1943_v59 = vpop.f32.mrf.mxu0 }
 0x11b   :  { %v1995_v60 = vpop.f32.mrf.mxu1 }
 0x11d   :  { %v1996_v62 = vpop.f32.mrf.mxu1 }
 0x11e   :  { %v1945_v61 = vpop.f32.mrf.mxu0 }
 0x120   :  { %v1946_v63 = vpop.f32.mrf.mxu0 }
 0x121   :  { %v4026_v0 = vpop.f32.mrf.mxu1 }
 0x123   :  { %v4030_v2 = vpop.f32.mrf.mxu1 }
 0x124   :  { %v4028_v1 = vpop.f32.mrf.mxu0 }
 0x126   :  { %v4032_v3 = vpop.f32.mrf.mxu0 }
 0x127   :  { %v4034_v5 = vpop.f32.mrf.mxu1 }
 0x129   :  { %v4038_v7 = vpop.f32.mrf.mxu1 }
 0x12a   :  { %v4036_v6 = vpop.f32.mrf.mxu0 }
 0x12c   :  { %v4040_v8 = vpop.f32.mrf.mxu0 }
 0x12d   :  { %v4042_v10 = vpop.f32.mrf.mxu1 }
 0x12f   :  { %v4046_v12 = vpop.f32.mrf.mxu1 }
 0x130   :  { %v4044_v11 = vpop.f32.mrf.mxu0 }
 0x132   :  { %v4048_v13 = vpop.f32.mrf.mxu0 }
 0x133   :  { %v4050_v14 = vpop.f32.mrf.mxu1 }
 0x135   :  { %v4052_v16 = vpop.f32.mrf.mxu1 }
 0x136   :  { %v1957_v15 = vpop.f32.mrf.mxu0 }
 0x138   :  { %v1958_v18 = vpop.f32.mrf.mxu0 }
 0x139   :  { %v1959_v19 = vadd.f32 %v1958_v18, %v1957_v15  ;;  %v2010_v20 = vpop.f32.mrf.mxu1  ;;  %v1994_v15 = vadd.f32 %v1993_v4, %v1992_v57 }
 0x13b   :  { %v698_v21 = vadd.f32 %v1959_v19, %v598_v53  ;;  %v2011_v22 = vpop.f32.mrf.mxu1  ;;  %v1944_v19 = vadd.f32 %v1943_v59, %v1942_v58 }
 0x13c   :  { %v2012_v23 = vadd.f32 %v2011_v22, %v2010_v20  ;;  %v768_v22 = vadd.f32 %v1994_v15, %v668_v54 }
 0x13e   :  { %v4054_v24 = vadd.f32 %v2012_v23, %v698_v21 }
 0x140   :  { %4253 = vst [vmem:[#allocation2_spill] sm:$0xff] %v4054_v24  ;;  %v2045_v26 = vpop.f32.mrf.mxu0  ;;  %v673_v24 = vadd.f32 %v1944_v19, %v3906_v40 }
 0x142   :  { %v2046_v27 = vpop.f32.mrf.mxu0  ;;  %v2098_v28 = vpop.f32.mrf.mxu1 }
 0x143   :  { %v2047_v20 = vadd.f32 %v2046_v27, %v2045_v26  ;;  %v2000_v27 = vadd.f32 %v4030_v2, %v4026_v0 }
 0x144   :  { %v2099_v30 = vpop.f32.mrf.mxu1 }
 0x145   :  { %v868_v52 = vadd.f32 %v2047_v20, %v768_v22  ;;  %v2100_v55 = vadd.f32 %v2099_v30, %v2098_v28 }
 0x146   :  { %v2048_v29 = vpop.f32.mrf.mxu0 }
 0x147   :  { %v968_v58 = vadd.f32 %v2100_v55, %v868_v52 }
 0x148   :  { %v2049_v31 = vpop.f32.mrf.mxu0 }
 0x149   :  { %v2101_v32 = vpop.f32.mrf.mxu1  ;;  %v2050_v17 = vadd.f32 %v2049_v31, %v2048_v29 }
 0x14b   :  { %v2102_v34 = vpop.f32.mrf.mxu1 }
 0x14c   :  { %v2051_v33 = vpop.f32.mrf.mxu0 }
 0x14e   :  { %v2052_v35 = vpop.f32.mrf.mxu0 }
 0x14f   :  { %v2104_v36 = vpop.f32.mrf.mxu1  ;;  %v2053_v29 = vadd.f32 %v2052_v35, %v2051_v33  ;;  %v1953_v35 = vadd.f32 %v4040_v8, %v4036_v6 }
 0x151   :  { %v2105_v38 = vpop.f32.mrf.mxu1 }
 0x152   :  { %v4056_v37 = vpop.f32.mrf.mxu0 }
 0x154   :  { %v4058_v39 = vpop.f32.mrf.mxu0 }
 0x155   :  { %v4060_v41 = vpop.f32.mrf.mxu1  ;;  %v2056_v20 = vadd.f32 %v4058_v39, %v4056_v37  ;;  %v1956_v39 = vadd.f32 %v4048_v13, %v4044_v11  ;;  %v2009_v11 = vadd.f32 %v4052_v16, %v4050_v14 }
 0x157   :  { %v4064_v44 = vpop.f32.mrf.mxu1 }
 0x158   :  { %v4062_v43 = vpop.f32.mrf.mxu0  ;;  %v2109_v8 = vadd.f32 %v4064_v44, %v4060_v41 }
 0x15a   :  { %v4066_v45 = vpop.f32.mrf.mxu0 }
 0x15b   :  { %v4068_v46 = vpop.f32.mrf.mxu1 }
 0x15d   :  { %v4070_v47 = vpop.f32.mrf.mxu1 }
 0x15e   :  { %v4072_v48 = vpop.f32.mrf.mxu0 }
 0x15f   :  { %4254 = vst [vmem:[#allocation3_spill] sm:$0xff] %v4072_v48 }
 0x160   :  { %v4076_v51 = vpop.f32.mrf.mxu0 }
 0x161   :  { %v4074_v49 = vpop.f32.mrf.mxu1  ;;  %4256 = vst [vmem:[#allocation5_spill] sm:$0xff] %v4076_v51  ;;  %v1947_v51 = vadd.f32 %v1946_v63, %v1945_v61  ;;  %v1950_v61 = vadd.f32 %v4032_v3, %v4028_v1  ;;  %v2003_v1 = vadd.f32 %v4038_v7, %v4034_v5 }
 0x162   :  { %4255 = vst [vmem:[#allocation4_spill] sm:$0xff] %v4074_v49  ;;  %v1997_v49 = vadd.f32 %v1996_v62, %v1995_v60  ;;  %v2103_v60 = vadd.f32 %v2102_v34, %v2101_v32 }
 0x163   :  { %v4078_v53 = vpop.f32.mrf.mxu1  ;;  %v678_v26 = vadd.f32 %v1947_v51, %v3933_v56  ;;  %v683_v34 = vadd.f32 %v1950_v61, %v3960_v9  ;;  %v2106_v51 = vadd.f32 %v2105_v38, %v2104_v36  ;;  %v688_v36 = vadd.f32 %v1953_v35, %v3984_v25 }
 0x164   :  { %4257 = vst [vmem:[#allocation6_spill] sm:$0xff] %v4078_v53  ;;  %v4081_v18 = vpop.f32.mrf.mxu0  ;;  %v773_v50 = vadd.f32 %v1997_v49, %v673_v24  ;;  %v4098_v24 = vld [vmem:[%s4250_s6] ss:$0 sm:$0xff]  ;;  %v2006_v38 = vadd.f32 %v4046_v12, %v4042_v10  ;;  %v2059_v25 = vadd.f32 %v4066_v45, %v4062_v43  ;;  %v2112_v43 = vadd.f32 %v4070_v47, %v4068_v46 }
 0x165   :  { %v778_v0 = vadd.f32 %v2000_v27, %v678_v26  ;;  %v783_v52 = vadd.f32 %v2003_v1, %v683_v34  ;;  %v693_v27 = vadd.f32 %v1956_v39, %v4011_v42 }
 0x166   :  { %v4085_v23 = vpop.f32.mrf.mxu0  ;;  %v873_v40 = vadd.f32 %v2050_v17, %v773_v50 }
 0x167   :  { %v4083_v21 = vpop.f32.mrf.mxu1  ;;  %v878_v49 = vadd.f32 %v2053_v29, %v778_v0  ;;  %v883_v6 = vadd.f32 %v2056_v20, %v783_v52  ;;  %v793_v14 = vadd.f32 %v2009_v11, %v693_v27  ;;  %v4262_v52 = vld [vmem:[#allocation2_spill] sm:$0xff] }
 0x168   :  { %v973_v2 = vadd.f32 %v2103_v60, %v873_v40  ;;  %v4259_v61 = vld [vmem:[#allocation5_spill] sm:$0xff] }
 0x169   :  { %v4088_v48 = vpop.f32.mrf.mxu1  ;;  %v978_v55 = vadd.f32 %v2106_v51, %v878_v49  ;;  %v983_v26 = vadd.f32 %v2109_v8, %v883_v6 }
 0x16e   :  { %v2151_v53 = vpop.f32.mrf.mxu0 }
 0x170   :  { %v2152_v57 = vpop.f32.mrf.mxu0  ;;  %v2204_v4 = vpop.f32.mrf.mxu1 }
 0x171   :  { %v2153_v59 = vadd.f32 %v2152_v57, %v2151_v53 }
 0x172   :  { %v2205_v54 = vpop.f32.mrf.mxu1 }
 0x173   :  { %v1068_v62 = vadd.f32 %v2153_v59, %v968_v58  ;;  %v2206_v28 = vadd.f32 %v2205_v54, %v2204_v4  ;;  %v788_v59 = vadd.f32 %v2006_v38, %v688_v36 }
 0x174   :  { %v2154_v63 = vpop.f32.mrf.mxu0 }
 0x175   :  { %v4100_v30 = vadd.f32 %v2206_v28, %v1068_v62  ;;  %v888_v54 = vadd.f32 %v2059_v25, %v788_v59  ;;  %v4258_v28 = vld [vmem:[#allocation3_spill] sm:$0xff] }
 0x176   :  { %v2155_v56 = vpop.f32.mrf.mxu0 }
 0x177   :  { %v2156_v31 = vadd.f32 %v2155_v56, %v2154_v63  ;;  %v1653_v32 = vmul.f32 %v4098_v24, %v4100_v30  ;;  %v2207_v3 = vpop.f32.mrf.mxu1  ;;  %v2062_v63 = vadd.f32 %v4259_v61, %v4258_v28  ;;  %v988_v16 = vadd.f32 %v2112_v43, %v888_v54 }
 0x179   :  { %v1073_v53 = vadd.f32 %v2156_v31, %v973_v2  ;;  %v1661_v33 = vsel %vm1660_vm0, %v1653_v32, 0.0  ;;  %v2208_v19 = vpop.f32.mrf.mxu1  ;;  %v893_v47 = vadd.f32 %v2062_v63, %v793_v14  ;;  %v4260_v31 = vld [vmem:[#allocation4_spill] sm:$0xff]  ;;  %v4261_v32 = vld [vmem:[#allocation6_spill] sm:$0xff] }
 0x17a   :  { %v2157_v15 = vpop.f32.mrf.mxu0  ;;  %1662 = vadd.xlane.f32.xlu0 %v1661_v33  ;;  %v2209_v22 = vadd.f32 %v2208_v19, %v2207_v3  ;;  %v2115_v34 = vadd.f32 %v4261_v32, %v4260_v31 }
 0x17c   :  { %v2158_v9 = vpop.f32.mrf.mxu0  ;;  %v4112_v5 = vadd.f32 %v2209_v22, %v1073_v53  ;;  %v2065_v53 = vadd.f32 %v4085_v23, %v4081_v18  ;;  %v993_v19 = vadd.f32 %v2115_v34, %v893_v47 }
 0x17d   :  { %v2159_v7 = vadd.f32 %v2158_v9, %v2157_v15  ;;  %v2210_v17 = vpop.f32.mrf.mxu1 }
 0x17e   :  { %v1654_v37 = vmul.f32 %v4098_v24, %v4112_v5 }
 0x17f   :  { %v1078_v57 = vadd.f32 %v2159_v7, %v978_v55  ;;  %v2211_v50 = vpop.f32.mrf.mxu1  ;;  %v898_v55 = vadd.f32 %v2065_v53, %v4262_v52  ;;  %v2118_v7 = vadd.f32 %v4088_v48, %v4083_v21 }
 0x180   :  { %v2160_v4 = vpop.f32.mrf.mxu0  ;;  %v2212_v58 = vadd.f32 %v2211_v50, %v2210_v17  ;;  %v1664_v10 = vsel %vm1660_vm0, %v1654_v37, 0.0 }
 0x181   :  { %1665 = vadd.xlane.f32.xlu0 %v1664_v10 }
 0x182   :  { %v2161_v12 = vpop.f32.mrf.mxu0  ;;  %v4126_v41 = vadd.f32 %v2212_v58, %v1078_v57  ;;  %v998_v57 = vadd.f32 %v2118_v7, %v898_v55 }
 0x183   :  { %v2162_v44 = vadd.f32 %v2161_v12, %v2160_v4  ;;  %v2213_v13 = vpop.f32.mrf.mxu1 }
 0x184   :  { %v1655_v40 = vmul.f32 %v4098_v24, %v4126_v41 }
 0x185   :  { %v1083_v45 = vadd.f32 %v2162_v44, %v983_v26  ;;  %v2214_v62 = vpop.f32.mrf.mxu1 }
 0x186   :  { %v2163_v60 = vpop.f32.mrf.mxu0  ;;  %v2215_v29 = vadd.f32 %v2214_v62, %v2213_v13  ;;  %v1667_v42 = vsel %vm1660_vm0, %v1655_v40, 0.0 }
 0x187   :  { %1668 = vadd.xlane.f32.xlu1 %v1667_v42 }
 0x188   :  { %v2164_v56 = vpop.f32.mrf.mxu0  ;;  %v4138_v0 = vadd.f32 %v2215_v29, %v1083_v45 }
 0x189   :  { %v2165_v2 = vadd.f32 %v2164_v56, %v2163_v60  ;;  %v2216_v46 = vpop.f32.mrf.mxu1 }
 0x18a   :  { %v1656_v3 = vmul.f32 %v4098_v24, %v4138_v0 }
 0x18b   :  { %v1088_v1 = vadd.f32 %v2165_v2, %v988_v16  ;;  %v2217_v51 = vpop.f32.mrf.mxu1 }
 0x18c   :  { %v2166_v49 = vpop.f32.mrf.mxu0  ;;  %v2218_v33 = vadd.f32 %v2217_v51, %v2216_v46  ;;  %v1670_v35 = vsel %vm1660_vm0, %v1656_v3, 0.0  ;;  %v1799_v3 = vld [vmem:[%s4251_s5] ss:$0 sm:$0xff] }
 0x18d   :  { %1671 = vadd.xlane.f32.xlu1 %v1670_v35 }
 0x18e   :  { %v2167_v15 = vpop.f32.mrf.mxu0  ;;  %v4147_v20 = vadd.f32 %v2218_v33, %v1088_v1 }
 0x18f   :  { %v2168_v22 = vadd.f32 %v2167_v15, %v2166_v49  ;;  %v2219_v9 = vpop.f32.mrf.mxu1 }
 0x190   :  { %v1657_v38 = vmul.f32 %v4098_v24, %v4147_v20 }
 0x191   :  { %v1093_v36 = vadd.f32 %v2168_v22, %v993_v19  ;;  %v2220_v23 = vpop.f32.mrf.mxu1 }
 0x192   :  { %v2169_v18 = vpop.f32.mrf.mxu0  ;;  %v2221_v17 = vadd.f32 %v2220_v23, %v2219_v9  ;;  %v1673_v6 = vsel %vm1660_vm0, %v1657_v38, 0.0 }
 0x193   :  { %1674 = vadd.xlane.f32.xlu0 %v1673_v6 }
 0x194   :  { %v2170_v8 = vpop.f32.mrf.mxu0  ;;  %v4155_v37 = vadd.f32 %v2221_v17, %v1093_v36 }
 0x195   :  { %v2171_v39 = vadd.f32 %v2170_v8, %v2169_v18  ;;  %v2222_v4 = vpop.f32.mrf.mxu1 }
 0x196   :  { %v1658_v48 = vmul.f32 %v4098_v24, %v4155_v37 }
 0x197   :  { %v1098_v50 = vadd.f32 %v2171_v39, %v998_v57  ;;  %v2223_v21 = vpop.f32.mrf.mxu1 }
 0x198   :  { %v2224_v25 = vadd.f32 %v2223_v21, %v2222_v4  ;;  %v1676_v58 = vsel %vm1660_vm0, %v1658_v48, 0.0 }
 0x199   :  { %1677 = vadd.xlane.f32.xlu1 %v1676_v58 }
 0x19a   :  { %v4160_v10 = vadd.f32 %v2224_v25, %v1098_v50 }
 0x19c   :  { %v1659_v12 = vmul.f32 %v4098_v24, %v4160_v10  ;;  %v2257_v59 = vpop.f32.mrf.mxu0 }
 0x19e   :  { %v1679_v26 = vsel %vm1660_vm0, %v1659_v12, 0.0  ;;  %v2258_v44 = vpop.f32.mrf.mxu0  ;;  %v2310_v27 = vpop.f32.mrf.mxu1 }
 0x19f   :  { %1680 = vadd.xlane.f32.xlu0 %v1679_v26  ;;  %v2259_v34 = vadd.f32 %v2258_v44, %v2257_v59 }
 0x1a0   :  { %v2311_v13 = vpop.f32.mrf.mxu1 }
 0x1a1   :  { %v1413_v33 = vadd.f32 %v2259_v34, %v1799_v3  ;;  %v2312_v35 = vadd.f32 %v2311_v13, %v2310_v27 }
 0x1a3   :  { %v1513_v36 = vadd.f32 %v2312_v35, %v1413_v33 }
 0x1a4   :  { %v2260_v11 = vpop.f32.mrf.mxu0 }
 0x1a6   :  { %v2261_v54 = vpop.f32.mrf.mxu0 }
 0x1a7   :  { %v2313_v43 = vpop.f32.mrf.mxu1  ;;  %v2262_v15 = vadd.f32 %v2261_v54, %v2260_v11 }
 0x1a9   :  { %v2314_v40 = vpop.f32.mrf.mxu1  ;;  %v1418_v38 = vadd.f32 %v2262_v15, %v1799_v3 }
 0x1aa   :  { %v2263_v45 = vpop.f32.mrf.mxu0  ;;  %v2315_v18 = vadd.f32 %v2314_v40, %v2313_v43 }
 0x1ac   :  { %v2264_v60 = vpop.f32.mrf.mxu0  ;;  %v1518_v12 = vadd.f32 %v2315_v18, %v1418_v38 }
 0x1ad   :  { %v2316_v62 = vpop.f32.mrf.mxu1  ;;  %v2265_v7 = vadd.f32 %v2264_v60, %v2263_v45 }
 0x1af   :  { %v2317_v61 = vpop.f32.mrf.mxu1  ;;  %v1423_v48 = vadd.f32 %v2265_v7, %v1799_v3 }
 0x1b0   :  { %v2266_v28 = vpop.f32.mrf.mxu0  ;;  %v2318_v21 = vadd.f32 %v2317_v61, %v2316_v62 }
 0x1b2   :  { %v2267_v63 = vpop.f32.mrf.mxu0  ;;  %v1523_v60 = vadd.f32 %v2318_v21, %v1423_v48 }
 0x1b3   :  { %v2319_v29 = vpop.f32.mrf.mxu1  ;;  %v2268_v59 = vadd.f32 %v2267_v63, %v2266_v28 }
 0x1b5   :  { %v2320_v56 = vpop.f32.mrf.mxu1  ;;  %v1428_v28 = vadd.f32 %v2268_v59, %v1799_v3 }
 0x1b6   :  { %v2269_v42 = vpop.f32.mrf.mxu0  ;;  %v2321_v63 = vadd.f32 %v2320_v56, %v2319_v29 }
 0x1b8   :  { %v2270_v14 = vpop.f32.mrf.mxu0 }
 0x1b9   :  { %v2322_v16 = vpop.f32.mrf.mxu1  ;;  %v2271_v49 = vadd.f32 %v2270_v14, %v2269_v42 }
 0x1bb   :  { %v2323_v2 = vpop.f32.mrf.mxu1  ;;  %v1433_v22 = vadd.f32 %v2271_v49, %v1799_v3 }
 0x1bc   :  { %v2272_v46 = vpop.f32.mrf.mxu0  ;;  %v2324_v9 = vadd.f32 %v2323_v2, %v2322_v16 }
 0x1be   :  { %v2273_v31 = vpop.f32.mrf.mxu0  ;;  %v1533_v6 = vadd.f32 %v2324_v9, %v1433_v22 }
 0x1bf   :  { %v2325_v47 = vpop.f32.mrf.mxu1  ;;  %v2274_v26 = vadd.f32 %v2273_v31, %v2272_v46 }
 0x1c1   :  { %v2326_v32 = vpop.f32.mrf.mxu1  ;;  %v1438_v14 = vadd.f32 %v2274_v26, %v1799_v3 }
 0x1c2   :  { %v2275_v1 = vpop.f32.mrf.mxu0  ;;  %v2327_v16 = vadd.f32 %v2326_v32, %v2325_v47  ;;  %v1528_v47 = vadd.f32 %v2321_v63, %v1428_v28 }
 0x1c4   :  { %v2276_v19 = vpop.f32.mrf.mxu0  ;;  %v1538_v32 = vadd.f32 %v2327_v16, %v1438_v14 }
 0x1c5   :  { %v2328_v51 = vpop.f32.mrf.mxu1  ;;  %v2277_v8 = vadd.f32 %v2276_v19, %v2275_v1 }
 0x1c7   :  { %v2329_v53 = vpop.f32.mrf.mxu1  ;;  %v1443_v11 = vadd.f32 %v2277_v8, %v1799_v3 }
 0x1c8   :  { %v2330_v13 = vadd.f32 %v2329_v53, %v2328_v51 }
 0x1ca   :  { %v2363_v52 = vpop.f32.mrf.mxu0  ;;  %v1543_v31 = vadd.f32 %v2330_v13, %v1443_v11 }
 0x1cb   :  { %v2375_v55 = vpop.f32.mrf.mxu1 }
 0x1cc   :  { %v2364_v23 = vpop.f32.mrf.mxu0 }
 0x1cd   :  { %v2376_v17 = vpop.f32.mrf.mxu1  ;;  %v2365_v57 = vadd.f32 %v2364_v23, %v2363_v52 }
 0x1ce   :  { %v2377_v39 = vadd.f32 %v2376_v17, %v2375_v55  ;;  %v2366_v4 = vpop.f32.mrf.mxu0 }
 0x1cf   :  { %v2378_v50 = vpop.f32.mrf.mxu1  ;;  %v4168_v25 = vadd.f32 %v2365_v57, %v1513_v36 }
 0x1d0   :  { %v4170_v58 = vadd.f32 %v2377_v39, %v1533_v6  ;;  %v2367_v44 = vpop.f32.mrf.mxu0 }
 0x1d1   :  { %v2379_v27 = vpop.f32.mrf.mxu1  ;;  %v2368_v54 = vadd.f32 %v2367_v44, %v2366_v4  ;;  %v1689_v43 = vmul.f32 %v4098_v24, %v4168_v25 }
 0x1d2   :  { %v2369_v45 = vpop.f32.mrf.mxu0  ;;  %v1693_v61 = vmul.f32 %v4098_v24, %v4170_v58  ;;  %v2380_v51 = vadd.f32 %v2379_v27, %v2378_v50 }
 0x1d3   :  { %v2381_v40 = vpop.f32.mrf.mxu1  ;;  %v4174_v42 = vadd.f32 %v2368_v54, %v1518_v12  ;;  %v1696_v62 = vsel %vm1660_vm0, %v1689_v43, 0.0 }
 0x1d4   :  { %v2370_v2 = vpop.f32.mrf.mxu0  ;;  %1697 = vadd.xlane.f32.xlu1 %v1696_v62  ;;  %v1708_v15 = vsel %vm1660_vm0, %v1693_v61, 0.0  ;;  %v4189_v22 = vadd.f32 %v2380_v51, %v1538_v32 }
 0x1d5   :  { %v2382_v46 = vpop.f32.mrf.mxu1  ;;  %v2371_v34 = vadd.f32 %v2370_v2, %v2369_v45  ;;  %v1690_v49 = vmul.f32 %v4098_v24, %v4174_v42 }
 0x1d6   :  { %v2383_v1 = vadd.f32 %v2382_v46, %v2381_v40  ;;  %v2372_v53 = vpop.f32.mrf.mxu0  ;;  %v1694_v18 = vmul.f32 %v4098_v24, %v4189_v22 }
 0x1d7   :  { %v4181_v33 = vadd.f32 %v2371_v34, %v1523_v60  ;;  %v1699_v29 = vsel %vm1660_vm0, %v1690_v49, 0.0 }
 0x1d8   :  { %v4183_v35 = vadd.f32 %v2383_v1, %v1543_v31  ;;  %v2373_v56 = vpop.f32.mrf.mxu0  ;;  %1709 = vadd.xlane.f32.xlu1 %v1708_v15  ;;  %1700 = vadd.xlane.f32.xlu0 %v1699_v29  ;;  %v1711_v23 = vsel %vm1660_vm0, %v1694_v18, 0.0 }
 0x1d9   :  { %v2374_v3 = vadd.f32 %v2373_v56, %v2372_v53  ;;  %v1691_v19 = vmul.f32 %v4098_v24, %v4181_v33 }
 0x1da   :  { %v1695_v55 = vmul.f32 %v4098_v24, %v4183_v35 }
 0x1db   :  { %v4191_v9 = vadd.f32 %v2374_v3, %v1528_v47  ;;  %v1702_v52 = vsel %vm1660_vm0, %v1691_v19, 0.0 }
 0x1dc   :  { %1703 = vadd.xlane.f32.xlu1 %v1702_v52  ;;  %v1714_v36 = vsel %vm1660_vm0, %v1695_v55, 0.0 }
 0x1dd   :  { %v1692_v7 = vmul.f32 %v4098_v24, %v4191_v9 }
 0x1df   :  { %v1705_v38 = vsel %vm1660_vm0, %v1692_v7, 0.0 }
 0x1e0   :  { %1715 = vadd.xlane.f32.xlu1 %v1714_v36  ;;  %1706 = vadd.xlane.f32.xlu0 %v1705_v38 }
 0x1e4   :  { %1712 = vadd.xlane.f32.xlu0 %v1711_v23 }
 0x203   :  { %v1663_v17 = vpop.xlane.xlu0 %1662 }
 0x204   :  { %v1682_v21 = vmax.f32 %v1663_v17, 0.0 }
 0x20a   :  { %v1666_v8 = vpop.xlane.xlu0 %1665 }
 0x20b   :  { %v1683_v26 = vmax.f32 %v1666_v8, 0.0 }
 0x210   :  { %v1669_v6 = vpop.xlane.xlu1 %1668 }
 0x211   :  { %v1684_v60 = vmax.f32 %v1669_v6, 0.0 }
 0x216   :  { %v1672_v57 = vpop.xlane.xlu1 %1671 }
 0x217   :  { %v1685_v14 = vmax.f32 %v1672_v57, 0.0 }
 0x21c   :  { %v1675_v39 = vpop.xlane.xlu0 %1674 }
 0x21d   :  { %v1686_v24 = vmax.f32 %v1675_v39, 0.0 }
 0x222   :  { %v1678_v4 = vpop.xlane.xlu1 %1677 }
 0x223   :  { %v1687_v15 = vmax.f32 %v1678_v4, 0.0 }
 0x228   :  { %v1681_v50 = vpop.xlane.xlu0 %1680 }
 0x229   :  { %v1688_v46 = vmax.f32 %v1681_v50, 0.0 }
 0x25d   :  { %v1698_v48 = vpop.xlane.xlu1 %1697 }
 0x25e   :  { %v1717_v12 = vmax.f32 %v1698_v48, 0.0 }
 0x260   :  { %v1724_v59 = vsub.f32 %v1717_v12, %v1682_v21 }
 0x261   :  { %v1710_v44 = vpop.xlane.xlu1 %1709  ;;  %v1701_v27 = vpop.xlane.xlu0 %1700 }
 0x262   :  { %v1731_v11 = vmul.f32 1.442695, %v1724_v59  ;;  %v1721_v13 = vmax.f32 %v1710_v44, 0.0  ;;  %v1718_v54 = vmax.f32 %v1701_v27, 0.0 }
 0x264   :  { %2416 = vpow2.f32 %v1731_v11  ;;  %v1728_v43 = vsub.f32 %v1721_v13, %v1686_v24  ;;  %v1725_v45 = vsub.f32 %v1718_v54, %v1683_v26 }
 0x265   :  { %v1704_v40 = vpop.xlane.xlu1 %1703 }
 0x266   :  { %v1739_v62 = vmul.f32 1.442695, %v1728_v43  ;;  %v1733_v61 = vmul.f32 1.442695, %v1725_v45  ;;  %v1719_v28 = vmax.f32 %v1704_v40, 0.0 }
 0x268   :  { %2418 = vpow2.f32 %v1739_v62  ;;  %v1726_v63 = vsub.f32 %v1719_v28, %v1684_v60 }
 0x269   :  { %2420 = vpow2.f32 %v1733_v61  ;;  %v1716_v16 = vpop.xlane.xlu1 %1715  ;;  %v1707_v2 = vpop.xlane.xlu0 %1706 }
 0x26a   :  { %v1735_v31 = vmul.f32 1.442695, %v1726_v63  ;;  %v1723_v34 = vmax.f32 %v1716_v16, 0.0  ;;  %v1720_v1 = vmax.f32 %v1707_v2, 0.0 }
 0x26c   :  { %2422 = vpow2.f32 %v1735_v31  ;;  %v1730_v49 = vsub.f32 %v1723_v34, %v1688_v46  ;;  %v1727_v51 = vsub.f32 %v1720_v1, %v1685_v14 }
 0x26d   :  { %v1713_v53 = vpop.xlane.xlu0 %1712 }
 0x26e   :  { %v1743_v29 = vmul.f32 1.442695, %v1730_v49  ;;  %v1737_v56 = vmul.f32 1.442695, %v1727_v51  ;;  %v1722_v47 = vmax.f32 %v1713_v53, 0.0 }
 0x270   :  { %2424 = vpow2.f32 %v1743_v29  ;;  %v1729_v32 = vsub.f32 %v1722_v47, %v1687_v15 }
 0x271   :  { %v2417_v3 = vpop.eup %2416  ;;  %2426 = vpow2.f32 %v1737_v56 }
 0x272   :  { %v1745_v19 = vadd.f32 1.0, %v2417_v3  ;;  %v1741_v52 = vmul.f32 1.442695, %v1729_v32 }
 0x274   :  { %2428 = vrcp.f32 %v1745_v19 }
 0x275   :  { %v2419_v55 = vpop.eup %2418  ;;  %2430 = vpow2.f32 %v1741_v52 }
 0x276   :  { %v2421_v7 = vpop.eup %2420  ;;  %v1749_v36 = vadd.f32 1.0, %v2419_v55 }
 0x277   :  { %v1746_v38 = vadd.f32 1.0, %v2421_v7 }
 0x278   :  { %2432 = vrcp.f32 %v1749_v36 }
 0x279   :  { %v2423_v18 = vpop.eup %2422  ;;  %2434 = vrcp.f32 %v1746_v38 }
 0x27a   :  { %v1747_v23 = vadd.f32 1.0, %v2423_v18 }
 0x27c   :  { %2436 = vrcp.f32 %v1747_v23 }
 0x27d   :  { %v2425_v17 = vpop.eup %2424 }
 0x27e   :  { %v2427_v6 = vpop.eup %2426  ;;  %v1751_v8 = vadd.f32 1.0, %v2425_v17 }
 0x27f   :  { %v1748_v57 = vadd.f32 1.0, %v2427_v6 }
 0x280   :  { %2438 = vrcp.f32 %v1751_v8 }
 0x281   :  { %v2429_v39 = vpop.eup %2428  ;;  %2440 = vrcp.f32 %v1748_v57 }
 0x282   :  { %v2431_v4 = vpop.eup %2430  ;;  %v1766_v50 = vsub.f32 1.0, %v2429_v39  ;;  %v1759_v21 = vmul.f32 %v2429_v39, %v4100_v30 }
 0x283   :  { %v1750_v48 = vadd.f32 1.0, %v2431_v4 }
 0x284   :  { %v1773_v12 = vmul.f32 %v1766_v50, %v4168_v25 }
 0x285   :  { %v2433_v59 = vpop.eup %2432  ;;  %2442 = vrcp.f32 %v1750_v48 }
 0x286   :  { %v2435_v26 = vpop.eup %2434  ;;  %v1780_v44 = vadd.f32 %v1773_v12, %v1759_v21  ;;  %v1770_v27 = vsub.f32 1.0, %v2433_v59  ;;  %v1763_v11 = vmul.f32 %v2433_v59, %v4147_v20 }
 0x287   :  { %v1767_v24 = vsub.f32 1.0, %v2435_v26  ;;  %v1760_v30 = vmul.f32 %v2435_v26, %v4112_v5 }
 0x288   :  { %1787 = vst.msk [vmem:[%s4252_s7] sm:$0xff] %vm1660_vm0, %v1780_v44  ;;  %v1777_v13 = vmul.f32 %v1770_v27, %v4170_v58 }
 0x289   :  { %v2437_v54 = vpop.eup %2436  ;;  %v1774_v25 = vmul.f32 %v1767_v24, %v4174_v42 }
 0x28a   :  { %v1784_v43 = vadd.f32 %v1777_v13, %v1763_v11  ;;  %v1768_v45 = vsub.f32 1.0, %v2437_v54  ;;  %v1761_v60 = vmul.f32 %v2437_v54, %v4126_v41 }
 0x28b   :  { %v1781_v40 = vadd.f32 %v1774_v25, %v1760_v30 }
 0x28c   :  { %1791 = vst.msk [vmem:[%s4252_s7 + $0x20] sm:$0xff] %vm1660_vm0, %v1784_v43  ;;  %v1775_v62 = vmul.f32 %v1768_v45, %v4181_v33 }
 0x28d   :  { %v2439_v20 = vpop.eup %2438  ;;  %1788 = vst.msk [vmem:[%s4252_s7 + $0x8] sm:$0xff] %vm1660_vm0, %v1781_v40 }
 0x28e   :  { %v2441_v5 = vpop.eup %2440  ;;  %v1782_v58 = vadd.f32 %v1775_v62, %v1761_v60  ;;  %v1772_v42 = vsub.f32 1.0, %v2439_v20  ;;  %v1765_v28 = vmul.f32 %v2439_v20, %v4160_v10 }
 0x28f   :  { %v1769_v61 = vsub.f32 1.0, %v2441_v5  ;;  %v1762_v33 = vmul.f32 %v2441_v5, %v4138_v0 }
 0x290   :  { %1789 = vst.msk [vmem:[%s4252_s7 + $0x10] sm:$0xff] %vm1660_vm0, %v1782_v58  ;;  %v1779_v41 = vmul.f32 %v1772_v42, %v4183_v35 }
 0x291   :  { %v1776_v63 = vmul.f32 %v1769_v61, %v4191_v9 }
 0x292   :  { %v2443_v14 = vpop.eup %2442  ;;  %v1786_v16 = vadd.f32 %v1779_v41, %v1765_v28 }
 0x293   :  { %v1783_v2 = vadd.f32 %v1776_v63, %v1762_v33  ;;  %v1771_v46 = vsub.f32 1.0, %v2443_v14  ;;  %v1764_v10 = vmul.f32 %v2443_v14, %v4155_v37 }
 0x294   :  { %1793 = vst.msk [vmem:[%s4252_s7 + $0x30] sm:$0xff] %vm1660_vm0, %v1786_v16 }
 0x295   :  { %1790 = vst.msk [vmem:[%s4252_s7 + $0x18] sm:$0xff] %vm1660_vm0, %v1783_v2  ;;  %v1778_v0 = vmul.f32 %v1771_v46, %v4189_v22 }
 0x297   :  { %v1785_v35 = vadd.f32 %v1778_v0, %v1764_v10 }
 0x299   :  { %1792 = vst.msk [vmem:[%s4252_s7 + $0x28] sm:$0xff] %vm1660_vm0, %v1785_v35 }

</bundles_post_ra>
